<compile_context>
chip_gen: v5e
topology: v5e:2x2
jax: 0.10.0
libtpu: 0.0.40
codegen_flags: <defaults>
</compile_context>

<pallas_src>
import functools

import jax
import jax.numpy as jnp
from jax import lax
from jax.experimental import pallas as pl
from jax.experimental.pallas import tpu as pltpu


# ----------------------------------------------------------------------------
# Fused Pallas kernel: block0 -> block1 -> final_conv, one batch element per
# grid step.
# ----------------------------------------------------------------------------
def mstgcn_fused_kernel(
    x_ref,       # (1, N*T, C0)   input slab, row = n*T + t, col = F_in  (f32)
    cbk_ref,     # (K, N*T, N*T)  kron(T_k^T, I_T)  graph operator  (dot dtype)
    th0_ref,     # (K, C0, F)     block0 Theta_k                    (dot dtype)
    wt0_ref,     # (3, F, F)      block0 time_conv taps wt[d][i,o]=W[o,i,0,d]
    wr0_ref,     # (C0, F)        block0 residual_conv  wr[c,o]=W[o,c,0,0]
    v0_ref,      # (4, F)         block0 [time bias, res bias, ln gamma, ln beta] (f32)
    th1_ref,     # (K, F, F)      block1 params (same packing)
    wt1_ref,     # (3, F, F)
    wr1_ref,     # (F, F)
    v1_ref,      # (4, F)
    wcat_ref,    # (F, T*P)       final conv  wcat[f, t*P+p] = W[p,t,0,f]
    msel_ref,    # (N*T, T*P)     time-selection mask  [r%T == t]   (f32)
    gsum_ref,    # (N, N*T)       node group-sum       [r//T == n]
    rsel_ref,    # (T*P, P)       column fold          [p' == p]
    bf_ref,      # (1, P)         final conv bias (f32)
    out_ref,     # (1, N, P)      (f32)
    *,
    t_in,        # static: timesteps per node block of the slab
):
    K = cbk_ref.shape[0]
    NT = cbk_ref.shape[1]
    F = wt0_ref.shape[1]
    dot_dtype = cbk_ref.dtype   # bf16 fast path / f32 validation path

    def dot(a, b):
        # MXU-friendly operands, f32 accumulation.
        return jnp.dot(a.astype(dot_dtype), b.astype(dot_dtype),
                       preferred_element_type=jnp.float32)

    # Time position of every slab row (row = n*T + t); computed once, reused
    # by both blocks to zero the out-of-range temporal-conv taps.
    t_of_row = lax.broadcasted_iota(jnp.int32, (NT, F), 0) % t_in
    first_t = t_of_row == 0
    last_t = t_of_row == (t_in - 1)

    def block(x_s, th_ref, wt_ref, wr_ref, v_ref):
        # --- K-order Chebyshev graph conv (+ ReLU), all T at once ----------
        g = dot(cbk_ref[0], dot(x_s, th_ref[0]))
        for k in range(1, K):
            g = g + dot(cbk_ref[k], dot(x_s, th_ref[k]))
        cheb = jnp.maximum(g, 0.0)                       # (N*T, F), f32

        # --- temporal 1x3 conv (pad 1, stride 1) + residual 1x1 conv -------
        # t-1 / t+1 taps via sublane roll (XLU) + edge masks (VPU); the
        # wrap-around rows are exactly the masked ones.
        prev = jnp.where(first_t, 0.0, pltpu.roll(cheb, 1, axis=0))
        nxt = jnp.where(last_t, 0.0, pltpu.roll(cheb, NT - 1, axis=0))
        bt = v_ref[0:1, :]
        br = v_ref[1:2, :]
        gamma = v_ref[2:3, :]
        beta = v_ref[3:4, :]
        tc = (dot(prev, wt_ref[0]) + dot(cheb, wt_ref[1])
              + dot(nxt, wt_ref[2]) + bt)
        res = dot(x_s, wr_ref[...]) + br

        # --- ReLU + LayerNorm over the feature dim (lanes), all in f32 -----
        z = jnp.maximum(res + tc, 0.0)
        mu = jnp.mean(z, axis=-1, keepdims=True)
        var = jnp.mean((z - mu) ** 2, axis=-1, keepdims=True)
        zn = (z - mu) * lax.rsqrt(var + 1e-5)            # nn.LayerNorm eps
        return zn * gamma + beta                         # (N*T, F), f32

    h = block(x_ref[0], th0_ref, wt0_ref, wr0_ref, v0_ref)
    h = block(h, th1_ref, wt1_ref, wr1_ref, v1_ref)

    # --- final_conv = Conv2d(T, P, kernel=(1, F)) ----------------------------
    # out[n, p] = bf[p] + sum_{t,f} h[n*T+t, f] * W[p, t, 0, f]
    z2 = dot(h, wcat_ref[...]) * msel_ref[...]           # (N*T, T*P)
    y = dot(z2, rsel_ref[...])                           # (N*T, P)
    out_ref[0] = dot(gsum_ref[...], y) + bf_ref[...]     # (N,   P)


# ----------------------------------------------------------------------------
# pallas_call wrapper
# ----------------------------------------------------------------------------
def mstgcn_fused(x_slab, cbk, th0, wt0, wr0, v0, th1, wt1, wr1, v1,
                 wcat, msel, gsum, rsel, bf, *, t_in):
    B, NT, C0 = x_slab.shape
    K = cbk.shape[0]
    F = th0.shape[2]
    N = gsum.shape[0]
    TP, P = rsel.shape

    def full_spec(shape):
        if len(shape) == 2:
            return pl.BlockSpec(shape, lambda b: (0, 0))
        return pl.BlockSpec(shape, lambda b: (0, 0, 0))

    grid_spec = pltpu.PrefetchScalarGridSpec(
        num_scalar_prefetch=0,
        grid=(B,),
        in_specs=[
            pl.BlockSpec((1, NT, C0), lambda b: (b, 0, 0)),
            full_spec((K, NT, NT)),
            full_spec((K, C0, F)),
            full_spec((3, F, F)),
            full_spec((C0, F)),
            full_spec((4, F)),
            full_spec((K, F, F)),
            full_spec((3, F, F)),
            full_spec((F, F)),
            full_spec((4, F)),
            full_spec((F, TP)),
            full_spec((NT, TP)),
            full_spec((N, NT)),
            full_spec((TP, P)),
            full_spec((1, P)),
        ],
        out_specs=pl.BlockSpec((1, N, P), lambda b: (b, 0, 0)),
    )
    kernel = functools.partial(mstgcn_fused_kernel, t_in=t_in)
    return pl.pallas_call(
        kernel,
        out_shape=jax.ShapeDtypeStruct((B, N, P), jnp.float32),
        grid_spec=grid_spec,
        compiler_params=pltpu.CompilerParams(dimension_semantics=("parallel",)),
    )(x_slab, cbk, th0, wt0, wr0, v0, th1, wt1, wr1, v1,
      wcat, msel, gsum, rsel, bf)


# ----------------------------------------------------------------------------
# Host-side graph preprocessing, parameter init, operator packing (plain JAX)
# ----------------------------------------------------------------------------
def cheb_polynomials_transposed(adj, K):
    """Dense replica of the reference's graph preprocessing:
      get_laplacian(normalization=None):  L = D - A
      cheb_polynomial_torch: [I, L, 2*L*T_{k-1} - T_{k-2}, ...]  -- NOTE the
      reference code uses an ELEMENTWISE product, reproduced here verbatim
      (it deviates from the mathematical Chebyshev recurrence; if upstream is
      ever fixed, update this and the cbk packing together).
    Returns stacked T_k^T with shape (K, N, N)."""
    n = adj.shape[0]
    deg = jnp.sum(adj, axis=1)
    L = jnp.diag(deg) - adj
    polys = [jnp.eye(n, dtype=jnp.float32), L]
    for _ in range(2, K):
        polys.append(2.0 * L * polys[-1] - polys[-2])    # elementwise, as written
    return jnp.stack([p.T for p in polys[:K]], axis=0)


def init_block_params(key, c_in, f_out, K=3):
    k0, k1, k2, k3, k4 = jax.random.split(key, 5)
    theta = jax.random.normal(k0, (K, c_in, f_out), jnp.float32) / jnp.sqrt(float(c_in))
    # wt[d][i, o] corresponds to time_conv.weight[o, i, 0, d]
    wt = jax.random.normal(k1, (3, f_out, f_out), jnp.float32) / jnp.sqrt(3.0 * f_out)
    bt = 0.1 * jax.random.normal(k2, (1, f_out), jnp.float32)
    # wr[c, o] corresponds to residual_conv.weight[o, c, 0, 0]
    wr = jax.random.normal(k3, (c_in, f_out), jnp.float32) / jnp.sqrt(float(c_in))
    br = 0.1 * jax.random.normal(k4, (1, f_out), jnp.float32)
    gamma = jnp.ones((1, f_out), jnp.float32)            # LayerNorm defaults
    beta = jnp.zeros((1, f_out), jnp.float32)
    return theta, wt, bt, wr, br, gamma, beta


def init_final_params(key, t_in, f_time, p_out):
    k0, k1 = jax.random.split(key, 2)
    # wf3[t, f, p] corresponds to final_conv.weight[p, t, 0, f]
    wf3 = jax.random.normal(k0, (t_in, f_time, p_out), jnp.float32) / jnp.sqrt(float(t_in * f_time))
    bf = 0.1 * jax.random.normal(k1, (1, p_out), jnp.float32)
    return wf3, bf


def pack_params(chebT, block0, block1, wf3, bf, n_nodes, t_in,
                matmul_dtype=jnp.bfloat16):
    """Precompute the structured operators the fused kernel consumes.
    Matmul operands are stored in `matmul_dtype` (bf16 fast path / f32 for
    validation); biases and LayerNorm params stay f32."""
    K = chebT.shape[0]
    eye_t = jnp.eye(t_in, dtype=jnp.float32)
    # graph conv acting on the node-major (N*T, F) slab: kron(T_k^T, I_T)
    cbk = jnp.stack([jnp.kron(chebT[k], eye_t) for k in range(K)], axis=0)

    th0, wt0, bt0, wr0, br0, g0, be0 = block0
    th1, wt1, bt1, wr1, br1, g1, be1 = block1
    v0 = jnp.concatenate([bt0, br0, g0, be0], axis=0)    # (4, F) f32
    v1 = jnp.concatenate([bt1, br1, g1, be1], axis=0)

    f_time = th0.shape[2]
    p_out = wf3.shape[2]
    nt = n_nodes * t_in
    tp = t_in * p_out
    # final conv helpers (see kernel): f-contraction weight, time-selection
    # mask (elementwise -> f32), column-fold and node group-sum matrices.
    wcat = jnp.transpose(wf3, (1, 0, 2)).reshape(f_time, tp)
    row_t = jnp.arange(nt, dtype=jnp.int32) % t_in
    col_t = jnp.arange(tp, dtype=jnp.int32) // p_out
    msel = (row_t[:, None] == col_t[None, :]).astype(jnp.float32)
    gsum = jnp.kron(jnp.eye(n_nodes, dtype=jnp.float32),
                    jnp.ones((1, t_in), jnp.float32))
    rsel = jnp.tile(jnp.eye(p_out, dtype=jnp.float32), (t_in, 1))

    c = lambda a: a.astype(matmul_dtype)
    return (c(cbk),
            c(th0), c(wt0), c(wr0), v0,
            c(th1), c(wt1), c(wr1), v1,
            c(wcat), msel, c(gsum), c(rsel), bf)


@jax.jit
def mstgcn_forward(x, params):
    """x: (B, len_input, N_nodes, F_in) -> (B, num_for_predict, N_nodes, 1)."""
    B, T, N, C = x.shape
    # tiny (few KiB) relayout to the node-major slab the kernel uses
    x_slab = jnp.transpose(x, (0, 2, 1, 3)).reshape(B, N * T, C)
    out = mstgcn_fused(x_slab, *params, t_in=T)          # (B, N, P)
    return jnp.transpose(out, (0, 2, 1))[..., None]      # (B, P, N, 1)


# ----------------------------------------------------------------------------
# Pure-JAX transcription of the PyTorch module (used only to validate).
# einsums forced to HIGHEST precision so the ground truth is true-f32.
# ----------------------------------------------------------------------------
def reference_forward(x, chebT, block0, block1, wf3, bf):
    HI = lax.Precision.HIGHEST
    h = jnp.transpose(x, (0, 2, 3, 1))                   # (B, N, F_in, T)

    def block(xb, prm):
        theta, wt, bt, wr, br, gamma, beta = prm
        Bb, N, C, T = xb.shape
        Kk, _, F = theta.shape
        outs = []
        for t in range(T):
            gs = xb[..., t]                              # (B, N, C)
            acc = jnp.zeros((Bb, N, F), jnp.float32)
            for k in range(Kk):
                rhs = jnp.einsum('nm,bmc->bnc', chebT[k], gs, precision=HI)
                acc = acc + jnp.einsum('bnc,cf->bnf', rhs, theta[k], precision=HI)
            outs.append(acc)
        sg = jnp.maximum(jnp.stack(outs, axis=-1), 0.0)  # (B, N, F, T)
        sgp = jnp.pad(sg, ((0, 0), (0, 0), (0, 0), (1, 1)))
        tc = (jnp.einsum('bnit,io->bnot', sgp[..., 0:T], wt[0], precision=HI)
              + jnp.einsum('bnit,io->bnot', sgp[..., 1:T + 1], wt[1], precision=HI)
              + jnp.einsum('bnit,io->bnot', sgp[..., 2:T + 2], wt[2], precision=HI)
              + bt[0][None, None, :, None])
        res = jnp.einsum('bnct,co->bnot', xb, wr, precision=HI) + br[0][None, None, :, None]
        z = jnp.maximum(res + tc, 0.0)
        mu = jnp.mean(z, axis=2, keepdims=True)
        var = jnp.mean((z - mu) ** 2, axis=2, keepdims=True)
        zn = (z - mu) / jnp.sqrt(var + 1e-5)
        return zn * gamma[0][None, None, :, None] + beta[0][None, None, :, None]

    h = block(h, block0)
    h = block(h, block1)
    out = jnp.einsum('bnft,tfp->bpn', h, wf3, precision=HI) + bf[0][None, :, None]
    return out[..., None]                                # (B, P, N, 1)


# ----------------------------------------------------------------------------
if __name__ == "__main__":
    B, T_in, N_nodes, F_in = 2, 8, 16, 4   # batch, len_input, node_num, in_channels
    P_pred = 4                             # num_for_predict
    K, F_time = 3, 64                      # fixed inside MSTGCN_submodule

    key = jax.random.PRNGKey(0)
    k_x, k_adj, k_b0, k_b1, k_fin = jax.random.split(key, 5)

    # input: (B, len_input, N_nodes, F_in)  -- see layout comment at top
    x = jax.random.normal(k_x, (B, T_in, N_nodes, F_in), jnp.float32)

    # synthetic fusiongraph(): symmetric adjacency, zero diagonal, small weights
    a = jax.random.uniform(k_adj, (N_nodes, N_nodes), jnp.float32) * (2.0 / N_nodes)
    adj = 0.5 * (a + a.T) * (1.0 - jnp.eye(N_nodes, dtype=jnp.float32))
    chebT = cheb_polynomials_transposed(adj, K)

    block0 = init_block_params(k_b0, F_in, F_time, K)
    block1 = init_block_params(k_b1, F_time, F_time, K)
    wf3, bf = init_final_params(k_fin, T_in, F_time, P_pred)

    ref = reference_forward(x, chebT, block0, block1, wf3, bf)
    ref_scale = max(float(jnp.max(jnp.abs(ref))), 1.0)

    # (1) f32-operand variant: tight check to catch any operator-packing /
    #     kernel-math bug (those produce O(1) relative errors).  Bound kept at
    #     1e-2 relative (rather than 1e-4) only because the default MXU pass
    #     precision for f32 operands is not guaranteed bit-comparable between
    #     the XLA reference einsums and the Mosaic dot.
    params_f32 = pack_params(chebT, block0, block1, wf3, bf, N_nodes, T_in,
                             matmul_dtype=jnp.float32)
    out_f32 = jax.block_until_ready(mstgcn_forward(x, params_f32))
    assert out_f32.shape == (B, P_pred, N_nodes, 1), out_f32.shape
    assert bool(jnp.all(jnp.isfinite(out_f32)))
    err_f32 = float(jnp.max(jnp.abs(out_f32 - ref))) / ref_scale
    assert err_f32 < 1e-2, err_f32

    # (2) bf16-matmul-operand fast path (default): looser bound commensurate
    #     with bf16 operand rounding through two blocks + final conv.
    params_bf16 = pack_params(chebT, block0, block1, wf3, bf, N_nodes, T_in,
                              matmul_dtype=jnp.bfloat16)
    out = jax.block_until_ready(mstgcn_forward(x, params_bf16))
    assert out.shape == (B, P_pred, N_nodes, 1), out.shape
    assert bool(jnp.all(jnp.isfinite(out)))
    err_bf16 = float(jnp.max(jnp.abs(out - ref))) / ref_scale
    assert err_bf16 < 1e-1, err_bf16

    print("KERNEL_OK")
</pallas_src>

<mosaic_0001>
module attributes {stable_mosaic.version = 11 : i64} {
  func.func @mstgcn_fused_kernel(%arg0: i32, %arg1: memref<1x128x4xf32, #tpu.memory_space<vmem>>, %arg2: memref<3x128x128xf32, #tpu.memory_space<vmem>>, %arg3: memref<3x4x64xf32, #tpu.memory_space<vmem>>, %arg4: memref<3x64x64xf32, #tpu.memory_space<vmem>>, %arg5: memref<4x64xf32, #tpu.memory_space<vmem>>, %arg6: memref<4x64xf32, #tpu.memory_space<vmem>>, %arg7: memref<3x64x64xf32, #tpu.memory_space<vmem>>, %arg8: memref<3x64x64xf32, #tpu.memory_space<vmem>>, %arg9: memref<64x64xf32, #tpu.memory_space<vmem>>, %arg10: memref<4x64xf32, #tpu.memory_space<vmem>>, %arg11: memref<64x32xf32, #tpu.memory_space<vmem>>, %arg12: memref<128x32xf32, #tpu.memory_space<vmem>>, %arg13: memref<16x128xf32, #tpu.memory_space<vmem>>, %arg14: memref<32x4xf32, #tpu.memory_space<vmem>>, %arg15: memref<1x4xf32, #tpu.memory_space<vmem>>, %arg16: memref<1x16x4xf32, #tpu.memory_space<vmem>>) attributes {dimension_semantics = [#tpu.dimension_semantics<parallel>], iteration_bounds = array<i64: 2>, scalar_prefetch = 0 : i64, scratch_operands = 0 : i64, tpu.core_type = #tpu.core_type<tc>, window_params = [{transform_indices = @transform_0, window_bounds = array<i64: 1, 128, 4>}, {pipeline_mode = #tpu.pipeline_mode<synchronous>, transform_indices = @transform_1, window_bounds = array<i64: 3, 128, 128>}, {pipeline_mode = #tpu.pipeline_mode<synchronous>, transform_indices = @transform_2, window_bounds = array<i64: 3, 4, 64>}, {pipeline_mode = #tpu.pipeline_mode<synchronous>, transform_indices = @transform_3, window_bounds = array<i64: 3, 64, 64>}, {pipeline_mode = #tpu.pipeline_mode<synchronous>, transform_indices = @transform_4, window_bounds = array<i64: 4, 64>}, {pipeline_mode = #tpu.pipeline_mode<synchronous>, transform_indices = @transform_5, window_bounds = array<i64: 4, 64>}, {pipeline_mode = #tpu.pipeline_mode<synchronous>, transform_indices = @transform_6, window_bounds = array<i64: 3, 64, 64>}, {pipeline_mode = #tpu.pipeline_mode<synchronous>, transform_indices = @transform_7, window_bounds = array<i64: 3, 64, 64>}, {pipeline_mode = #tpu.pipeline_mode<synchronous>, transform_indices = @transform_8, window_bounds = array<i64: 64, 64>}, {pipeline_mode = #tpu.pipeline_mode<synchronous>, transform_indices = @transform_9, window_bounds = array<i64: 4, 64>}, {pipeline_mode = #tpu.pipeline_mode<synchronous>, transform_indices = @transform_10, window_bounds = array<i64: 64, 32>}, {pipeline_mode = #tpu.pipeline_mode<synchronous>, transform_indices = @transform_11, window_bounds = array<i64: 128, 32>}, {pipeline_mode = #tpu.pipeline_mode<synchronous>, transform_indices = @transform_12, window_bounds = array<i64: 16, 128>}, {pipeline_mode = #tpu.pipeline_mode<synchronous>, transform_indices = @transform_13, window_bounds = array<i64: 32, 4>}, {pipeline_mode = #tpu.pipeline_mode<synchronous>, transform_indices = @transform_14, window_bounds = array<i64: 1, 4>}, {transform_indices = @transform_15, window_bounds = array<i64: 1, 16, 4>}]} {
    %0 = tpu.iota {dimensions = array<i32: 0>} : vector<128x64xi32>
    %c8_i32 = arith.constant 8 : i32
    %c0_i32 = arith.constant 0 : i32
    %1 = arith.cmpi eq, %c8_i32, %c0_i32 : i32
    %c1_i32 = arith.constant 1 : i32
    %2 = arith.select %1, %c1_i32, %c8_i32 : i32
    %3 = vector.broadcast %2 : i32 to vector<128x64xi32>
    %4 = arith.remsi %0, %3 : vector<128x64xi32>
    %c0_i32_0 = arith.constant 0 : i32
    %5 = vector.broadcast %c0_i32_0 : i32 to vector<128x64xi32>
    %6 = arith.cmpi ne, %4, %5 : vector<128x64xi32>
    %c0_i32_1 = arith.constant 0 : i32
    %7 = vector.broadcast %c0_i32_1 : i32 to vector<128x64xi32>
    %8 = arith.cmpi slt, %4, %7 : vector<128x64xi32>
    %c0_i32_2 = arith.constant 0 : i32
    %9 = arith.cmpi slt, %2, %c0_i32_2 : i32
    %10 = vector.broadcast %9 : i1 to vector<128x64xi1>
    %11 = vector.broadcast %10 : vector<128x64xi1> to vector<128x64xi1>
    %12 = arith.xori %8, %11 : vector<128x64xi1>
    %13 = arith.andi %12, %6 : vector<128x64xi1>
    %14 = vector.broadcast %2 : i32 to vector<128x64xi32>
    %15 = arith.addi %4, %14 : vector<128x64xi32>
    %16 = arith.select %13, %15, %4 : vector<128x64xi1>, vector<128x64xi32>
    %c0_i32_3 = arith.constant 0 : i32
    %17 = vector.broadcast %c0_i32_3 : i32 to vector<128x64xi32>
    %18 = arith.cmpi eq, %16, %17 : vector<128x64xi32>
    %c7_i32 = arith.constant 7 : i32
    %19 = vector.broadcast %c7_i32 : i32 to vector<128x64xi32>
    %20 = arith.cmpi eq, %16, %19 : vector<128x64xi32>
    %c0 = arith.constant 0 : index
    %c0_4 = arith.constant 0 : index
    %c0_5 = arith.constant 0 : index
    %21 = vector.load %arg1[%c0, %c0_4, %c0_5] : memref<1x128x4xf32, #tpu.memory_space<vmem>>, vector<1x128x4xf32>
    %22 = vector.shape_cast %21 : vector<1x128x4xf32> to vector<128x4xf32>
    %c0_6 = arith.constant 0 : index
    %c0_7 = arith.constant 0 : index
    %c0_8 = arith.constant 0 : index
    %23 = vector.load %arg2[%c0_6, %c0_7, %c0_8] : memref<3x128x128xf32, #tpu.memory_space<vmem>>, vector<1x128x128xf32>
    %24 = vector.shape_cast %23 : vector<1x128x128xf32> to vector<128x128xf32>
    %c0_9 = arith.constant 0 : index
    %c0_10 = arith.constant 0 : index
    %c0_11 = arith.constant 0 : index
    %25 = vector.load %arg3[%c0_9, %c0_10, %c0_11] : memref<3x4x64xf32, #tpu.memory_space<vmem>>, vector<1x4x64xf32>
    %26 = vector.shape_cast %25 : vector<1x4x64xf32> to vector<4x64xf32>
    %cst = arith.constant dense<0.000000e+00> : vector<128x64xf32>
    %27 = tpu.matmul %22, %26, %cst {dimension_numbers = #tpu.dot_dimension_numbers<[1], [0], [0], [1], [0, 0, 1, 1], [], []>} : vector<128x4xf32>, vector<4x64xf32>, vector<128x64xf32> -> vector<128x64xf32>
    %cst_12 = arith.constant dense<0.000000e+00> : vector<128x64xf32>
    %28 = tpu.matmul %24, %27, %cst_12 {dimension_numbers = #tpu.dot_dimension_numbers<[1], [0], [0], [1], [0, 0, 1, 1], [], []>} : vector<128x128xf32>, vector<128x64xf32>, vector<128x64xf32> -> vector<128x64xf32>
    %c1 = arith.constant 1 : index
    %c0_13 = arith.constant 0 : index
    %c0_14 = arith.constant 0 : index
    %29 = vector.load %arg2[%c1, %c0_13, %c0_14] : memref<3x128x128xf32, #tpu.memory_space<vmem>>, vector<1x128x128xf32>
    %30 = vector.shape_cast %29 : vector<1x128x128xf32> to vector<128x128xf32>
    %c1_15 = arith.constant 1 : index
    %c0_16 = arith.constant 0 : index
    %c0_17 = arith.constant 0 : index
    %31 = vector.load %arg3[%c1_15, %c0_16, %c0_17] : memref<3x4x64xf32, #tpu.memory_space<vmem>>, vector<1x4x64xf32>
    %32 = vector.shape_cast %31 : vector<1x4x64xf32> to vector<4x64xf32>
    %cst_18 = arith.constant dense<0.000000e+00> : vector<128x64xf32>
    %33 = tpu.matmul %22, %32, %cst_18 {dimension_numbers = #tpu.dot_dimension_numbers<[1], [0], [0], [1], [0, 0, 1, 1], [], []>} : vector<128x4xf32>, vector<4x64xf32>, vector<128x64xf32> -> vector<128x64xf32>
    %cst_19 = arith.constant dense<0.000000e+00> : vector<128x64xf32>
    %34 = tpu.matmul %30, %33, %cst_19 {dimension_numbers = #tpu.dot_dimension_numbers<[1], [0], [0], [1], [0, 0, 1, 1], [], []>} : vector<128x128xf32>, vector<128x64xf32>, vector<128x64xf32> -> vector<128x64xf32>
    %35 = arith.addf %28, %34 : vector<128x64xf32>
    %c2 = arith.constant 2 : index
    %c0_20 = arith.constant 0 : index
    %c0_21 = arith.constant 0 : index
    %36 = vector.load %arg2[%c2, %c0_20, %c0_21] : memref<3x128x128xf32, #tpu.memory_space<vmem>>, vector<1x128x128xf32>
    %37 = vector.shape_cast %36 : vector<1x128x128xf32> to vector<128x128xf32>
    %c2_22 = arith.constant 2 : index
    %c0_23 = arith.constant 0 : index
    %c0_24 = arith.constant 0 : index
    %38 = vector.load %arg3[%c2_22, %c0_23, %c0_24] : memref<3x4x64xf32, #tpu.memory_space<vmem>>, vector<1x4x64xf32>
    %39 = vector.shape_cast %38 : vector<1x4x64xf32> to vector<4x64xf32>
    %cst_25 = arith.constant dense<0.000000e+00> : vector<128x64xf32>
    %40 = tpu.matmul %22, %39, %cst_25 {dimension_numbers = #tpu.dot_dimension_numbers<[1], [0], [0], [1], [0, 0, 1, 1], [], []>} : vector<128x4xf32>, vector<4x64xf32>, vector<128x64xf32> -> vector<128x64xf32>
    %cst_26 = arith.constant dense<0.000000e+00> : vector<128x64xf32>
    %41 = tpu.matmul %37, %40, %cst_26 {dimension_numbers = #tpu.dot_dimension_numbers<[1], [0], [0], [1], [0, 0, 1, 1], [], []>} : vector<128x128xf32>, vector<128x64xf32>, vector<128x64xf32> -> vector<128x64xf32>
    %42 = arith.addf %35, %41 : vector<128x64xf32>
    %cst_27 = arith.constant 0.000000e+00 : f32
    %43 = vector.broadcast %cst_27 : f32 to vector<128x64xf32>
    %44 = arith.maximumf %42, %43 : vector<128x64xf32>
    %c1_i32_28 = arith.constant 1 : i32
    %45 = tpu.dynamic_rotate %44 by %c1_i32_28 dim 0 : vector<128x64xf32>, i32 -> vector<128x64xf32>
    %cst_29 = arith.constant 0.000000e+00 : f32
    %46 = vector.broadcast %cst_29 : f32 to vector<128x64xf32>
    %47 = arith.select %18, %46, %45 : vector<128x64xi1>, vector<128x64xf32>
    %c127_i32 = arith.constant 127 : i32
    %48 = tpu.dynamic_rotate %44 by %c127_i32 dim 0 : vector<128x64xf32>, i32 -> vector<128x64xf32>
    %cst_30 = arith.constant 0.000000e+00 : f32
    %49 = vector.broadcast %cst_30 : f32 to vector<128x64xf32>
    %50 = arith.select %20, %49, %48 : vector<128x64xi1>, vector<128x64xf32>
    %c0_31 = arith.constant 0 : index
    %c0_32 = arith.constant 0 : index
    %51 = vector.load %arg6[%c0_31, %c0_32] : memref<4x64xf32, #tpu.memory_space<vmem>>, vector<1x64xf32>
    %c1_33 = arith.constant 1 : index
    %c0_34 = arith.constant 0 : index
    %52 = vector.load %arg6[%c1_33, %c0_34] : memref<4x64xf32, #tpu.memory_space<vmem>>, vector<1x64xf32>
    %c2_35 = arith.constant 2 : index
    %c0_36 = arith.constant 0 : index
    %53 = vector.load %arg6[%c2_35, %c0_36] : memref<4x64xf32, #tpu.memory_space<vmem>>, vector<1x64xf32>
    %c3 = arith.constant 3 : index
    %c0_37 = arith.constant 0 : index
    %54 = vector.load %arg6[%c3, %c0_37] : memref<4x64xf32, #tpu.memory_space<vmem>>, vector<1x64xf32>
    %c0_38 = arith.constant 0 : index
    %c0_39 = arith.constant 0 : index
    %c0_40 = arith.constant 0 : index
    %55 = vector.load %arg4[%c0_38, %c0_39, %c0_40] : memref<3x64x64xf32, #tpu.memory_space<vmem>>, vector<1x64x64xf32>
    %56 = vector.shape_cast %55 : vector<1x64x64xf32> to vector<64x64xf32>
    %cst_41 = arith.constant dense<0.000000e+00> : vector<128x64xf32>
    %57 = tpu.matmul %47, %56, %cst_41 {dimension_numbers = #tpu.dot_dimension_numbers<[1], [0], [0], [1], [0, 0, 1, 1], [], []>} : vector<128x64xf32>, vector<64x64xf32>, vector<128x64xf32> -> vector<128x64xf32>
    %c1_42 = arith.constant 1 : index
    %c0_43 = arith.constant 0 : index
    %c0_44 = arith.constant 0 : index
    %58 = vector.load %arg4[%c1_42, %c0_43, %c0_44] : memref<3x64x64xf32, #tpu.memory_space<vmem>>, vector<1x64x64xf32>
    %59 = vector.shape_cast %58 : vector<1x64x64xf32> to vector<64x64xf32>
    %cst_45 = arith.constant dense<0.000000e+00> : vector<128x64xf32>
    %60 = tpu.matmul %44, %59, %cst_45 {dimension_numbers = #tpu.dot_dimension_numbers<[1], [0], [0], [1], [0, 0, 1, 1], [], []>} : vector<128x64xf32>, vector<64x64xf32>, vector<128x64xf32> -> vector<128x64xf32>
    %61 = arith.addf %57, %60 : vector<128x64xf32>
    %c2_46 = arith.constant 2 : index
    %c0_47 = arith.constant 0 : index
    %c0_48 = arith.constant 0 : index
    %62 = vector.load %arg4[%c2_46, %c0_47, %c0_48] : memref<3x64x64xf32, #tpu.memory_space<vmem>>, vector<1x64x64xf32>
    %63 = vector.shape_cast %62 : vector<1x64x64xf32> to vector<64x64xf32>
    %cst_49 = arith.constant dense<0.000000e+00> : vector<128x64xf32>
    %64 = tpu.matmul %50, %63, %cst_49 {dimension_numbers = #tpu.dot_dimension_numbers<[1], [0], [0], [1], [0, 0, 1, 1], [], []>} : vector<128x64xf32>, vector<64x64xf32>, vector<128x64xf32> -> vector<128x64xf32>
    %65 = arith.addf %61, %64 : vector<128x64xf32>
    %66 = vector.broadcast %51 : vector<1x64xf32> to vector<128x64xf32>
    %67 = arith.addf %65, %66 : vector<128x64xf32>
    %c0_50 = arith.constant 0 : index
    %c0_51 = arith.constant 0 : index
    %68 = vector.load %arg5[%c0_50, %c0_51] : memref<4x64xf32, #tpu.memory_space<vmem>>, vector<4x64xf32>
    %cst_52 = arith.constant dense<0.000000e+00> : vector<128x64xf32>
    %69 = tpu.matmul %22, %68, %cst_52 {dimension_numbers = #tpu.dot_dimension_numbers<[1], [0], [0], [1], [0, 0, 1, 1], [], []>} : vector<128x4xf32>, vector<4x64xf32>, vector<128x64xf32> -> vector<128x64xf32>
    %70 = vector.broadcast %52 : vector<1x64xf32> to vector<128x64xf32>
    %71 = arith.addf %69, %70 : vector<128x64xf32>
    %72 = arith.addf %71, %67 : vector<128x64xf32>
    %cst_53 = arith.constant 0.000000e+00 : f32
    %73 = vector.broadcast %cst_53 : f32 to vector<128x64xf32>
    %74 = arith.maximumf %72, %73 : vector<128x64xf32>
    %cst_54 = arith.constant dense<0.000000e+00> : vector<128xf32>
    %75 = vector.multi_reduction <add>, %74, %cst_54 [1] : vector<128x64xf32> to vector<128xf32>
    %76 = vector.shape_cast %75 : vector<128xf32> to vector<128x1xf32>
    %cst_55 = arith.constant 6.400000e+01 : f32
    %77 = vector.broadcast %cst_55 : f32 to vector<128x1xf32>
    %78 = arith.divf %76, %77 : vector<128x1xf32>
    %79 = vector.broadcast %78 : vector<128x1xf32> to vector<128x64xf32>
    %80 = arith.subf %74, %79 : vector<128x64xf32>
    %81 = arith.mulf %80, %80 : vector<128x64xf32>
    %cst_56 = arith.constant dense<0.000000e+00> : vector<128xf32>
    %82 = vector.multi_reduction <add>, %81, %cst_56 [1] : vector<128x64xf32> to vector<128xf32>
    %83 = vector.shape_cast %82 : vector<128xf32> to vector<128x1xf32>
    %cst_57 = arith.constant 6.400000e+01 : f32
    %84 = vector.broadcast %cst_57 : f32 to vector<128x1xf32>
    %85 = arith.divf %83, %84 : vector<128x1xf32>
    %86 = vector.broadcast %78 : vector<128x1xf32> to vector<128x64xf32>
    %87 = arith.subf %74, %86 : vector<128x64xf32>
    %cst_58 = arith.constant 9.99999974E-6 : f32
    %88 = vector.broadcast %cst_58 : f32 to vector<128x1xf32>
    %89 = arith.addf %85, %88 : vector<128x1xf32>
    %90 = math.rsqrt %89 : vector<128x1xf32>
    %91 = vector.broadcast %90 : vector<128x1xf32> to vector<128x64xf32>
    %92 = arith.mulf %87, %91 : vector<128x64xf32>
    %93 = vector.broadcast %53 : vector<1x64xf32> to vector<128x64xf32>
    %94 = arith.mulf %92, %93 : vector<128x64xf32>
    %95 = vector.broadcast %54 : vector<1x64xf32> to vector<128x64xf32>
    %96 = arith.addf %94, %95 : vector<128x64xf32>
    %c0_59 = arith.constant 0 : index
    %c0_60 = arith.constant 0 : index
    %c0_61 = arith.constant 0 : index
    %97 = vector.load %arg2[%c0_59, %c0_60, %c0_61] : memref<3x128x128xf32, #tpu.memory_space<vmem>>, vector<1x128x128xf32>
    %98 = vector.shape_cast %97 : vector<1x128x128xf32> to vector<128x128xf32>
    %c0_62 = arith.constant 0 : index
    %c0_63 = arith.constant 0 : index
    %c0_64 = arith.constant 0 : index
    %99 = vector.load %arg7[%c0_62, %c0_63, %c0_64] : memref<3x64x64xf32, #tpu.memory_space<vmem>>, vector<1x64x64xf32>
    %100 = vector.shape_cast %99 : vector<1x64x64xf32> to vector<64x64xf32>
    %cst_65 = arith.constant dense<0.000000e+00> : vector<128x64xf32>
    %101 = tpu.matmul %96, %100, %cst_65 {dimension_numbers = #tpu.dot_dimension_numbers<[1], [0], [0], [1], [0, 0, 1, 1], [], []>} : vector<128x64xf32>, vector<64x64xf32>, vector<128x64xf32> -> vector<128x64xf32>
    %cst_66 = arith.constant dense<0.000000e+00> : vector<128x64xf32>
    %102 = tpu.matmul %98, %101, %cst_66 {dimension_numbers = #tpu.dot_dimension_numbers<[1], [0], [0], [1], [0, 0, 1, 1], [], []>} : vector<128x128xf32>, vector<128x64xf32>, vector<128x64xf32> -> vector<128x64xf32>
    %c1_67 = arith.constant 1 : index
    %c0_68 = arith.constant 0 : index
    %c0_69 = arith.constant 0 : index
    %103 = vector.load %arg2[%c1_67, %c0_68, %c0_69] : memref<3x128x128xf32, #tpu.memory_space<vmem>>, vector<1x128x128xf32>
    %104 = vector.shape_cast %103 : vector<1x128x128xf32> to vector<128x128xf32>
    %c1_70 = arith.constant 1 : index
    %c0_71 = arith.constant 0 : index
    %c0_72 = arith.constant 0 : index
    %105 = vector.load %arg7[%c1_70, %c0_71, %c0_72] : memref<3x64x64xf32, #tpu.memory_space<vmem>>, vector<1x64x64xf32>
    %106 = vector.shape_cast %105 : vector<1x64x64xf32> to vector<64x64xf32>
    %cst_73 = arith.constant dense<0.000000e+00> : vector<128x64xf32>
    %107 = tpu.matmul %96, %106, %cst_73 {dimension_numbers = #tpu.dot_dimension_numbers<[1], [0], [0], [1], [0, 0, 1, 1], [], []>} : vector<128x64xf32>, vector<64x64xf32>, vector<128x64xf32> -> vector<128x64xf32>
    %cst_74 = arith.constant dense<0.000000e+00> : vector<128x64xf32>
    %108 = tpu.matmul %104, %107, %cst_74 {dimension_numbers = #tpu.dot_dimension_numbers<[1], [0], [0], [1], [0, 0, 1, 1], [], []>} : vector<128x128xf32>, vector<128x64xf32>, vector<128x64xf32> -> vector<128x64xf32>
    %109 = arith.addf %102, %108 : vector<128x64xf32>
    %c2_75 = arith.constant 2 : index
    %c0_76 = arith.constant 0 : index
    %c0_77 = arith.constant 0 : index
    %110 = vector.load %arg2[%c2_75, %c0_76, %c0_77] : memref<3x128x128xf32, #tpu.memory_space<vmem>>, vector<1x128x128xf32>
    %111 = vector.shape_cast %110 : vector<1x128x128xf32> to vector<128x128xf32>
    %c2_78 = arith.constant 2 : index
    %c0_79 = arith.constant 0 : index
    %c0_80 = arith.constant 0 : index
    %112 = vector.load %arg7[%c2_78, %c0_79, %c0_80] : memref<3x64x64xf32, #tpu.memory_space<vmem>>, vector<1x64x64xf32>
    %113 = vector.shape_cast %112 : vector<1x64x64xf32> to vector<64x64xf32>
    %cst_81 = arith.constant dense<0.000000e+00> : vector<128x64xf32>
    %114 = tpu.matmul %96, %113, %cst_81 {dimension_numbers = #tpu.dot_dimension_numbers<[1], [0], [0], [1], [0, 0, 1, 1], [], []>} : vector<128x64xf32>, vector<64x64xf32>, vector<128x64xf32> -> vector<128x64xf32>
    %cst_82 = arith.constant dense<0.000000e+00> : vector<128x64xf32>
    %115 = tpu.matmul %111, %114, %cst_82 {dimension_numbers = #tpu.dot_dimension_numbers<[1], [0], [0], [1], [0, 0, 1, 1], [], []>} : vector<128x128xf32>, vector<128x64xf32>, vector<128x64xf32> -> vector<128x64xf32>
    %116 = arith.addf %109, %115 : vector<128x64xf32>
    %cst_83 = arith.constant 0.000000e+00 : f32
    %117 = vector.broadcast %cst_83 : f32 to vector<128x64xf32>
    %118 = arith.maximumf %116, %117 : vector<128x64xf32>
    %c1_i32_84 = arith.constant 1 : i32
    %119 = tpu.dynamic_rotate %118 by %c1_i32_84 dim 0 : vector<128x64xf32>, i32 -> vector<128x64xf32>
    %cst_85 = arith.constant 0.000000e+00 : f32
    %120 = vector.broadcast %cst_85 : f32 to vector<128x64xf32>
    %121 = arith.select %18, %120, %119 : vector<128x64xi1>, vector<128x64xf32>
    %c127_i32_86 = arith.constant 127 : i32
    %122 = tpu.dynamic_rotate %118 by %c127_i32_86 dim 0 : vector<128x64xf32>, i32 -> vector<128x64xf32>
    %cst_87 = arith.constant 0.000000e+00 : f32
    %123 = vector.broadcast %cst_87 : f32 to vector<128x64xf32>
    %124 = arith.select %20, %123, %122 : vector<128x64xi1>, vector<128x64xf32>
    %c0_88 = arith.constant 0 : index
    %c0_89 = arith.constant 0 : index
    %125 = vector.load %arg10[%c0_88, %c0_89] : memref<4x64xf32, #tpu.memory_space<vmem>>, vector<1x64xf32>
    %c1_90 = arith.constant 1 : index
    %c0_91 = arith.constant 0 : index
    %126 = vector.load %arg10[%c1_90, %c0_91] : memref<4x64xf32, #tpu.memory_space<vmem>>, vector<1x64xf32>
    %c2_92 = arith.constant 2 : index
    %c0_93 = arith.constant 0 : index
    %127 = vector.load %arg10[%c2_92, %c0_93] : memref<4x64xf32, #tpu.memory_space<vmem>>, vector<1x64xf32>
    %c3_94 = arith.constant 3 : index
    %c0_95 = arith.constant 0 : index
    %128 = vector.load %arg10[%c3_94, %c0_95] : memref<4x64xf32, #tpu.memory_space<vmem>>, vector<1x64xf32>
    %c0_96 = arith.constant 0 : index
    %c0_97 = arith.constant 0 : index
    %c0_98 = arith.constant 0 : index
    %129 = vector.load %arg8[%c0_96, %c0_97, %c0_98] : memref<3x64x64xf32, #tpu.memory_space<vmem>>, vector<1x64x64xf32>
    %130 = vector.shape_cast %129 : vector<1x64x64xf32> to vector<64x64xf32>
    %cst_99 = arith.constant dense<0.000000e+00> : vector<128x64xf32>
    %131 = tpu.matmul %121, %130, %cst_99 {dimension_numbers = #tpu.dot_dimension_numbers<[1], [0], [0], [1], [0, 0, 1, 1], [], []>} : vector<128x64xf32>, vector<64x64xf32>, vector<128x64xf32> -> vector<128x64xf32>
    %c1_100 = arith.constant 1 : index
    %c0_101 = arith.constant 0 : index
    %c0_102 = arith.constant 0 : index
    %132 = vector.load %arg8[%c1_100, %c0_101, %c0_102] : memref<3x64x64xf32, #tpu.memory_space<vmem>>, vector<1x64x64xf32>
    %133 = vector.shape_cast %132 : vector<1x64x64xf32> to vector<64x64xf32>
    %cst_103 = arith.constant dense<0.000000e+00> : vector<128x64xf32>
    %134 = tpu.matmul %118, %133, %cst_103 {dimension_numbers = #tpu.dot_dimension_numbers<[1], [0], [0], [1], [0, 0, 1, 1], [], []>} : vector<128x64xf32>, vector<64x64xf32>, vector<128x64xf32> -> vector<128x64xf32>
    %135 = arith.addf %131, %134 : vector<128x64xf32>
    %c2_104 = arith.constant 2 : index
    %c0_105 = arith.constant 0 : index
    %c0_106 = arith.constant 0 : index
    %136 = vector.load %arg8[%c2_104, %c0_105, %c0_106] : memref<3x64x64xf32, #tpu.memory_space<vmem>>, vector<1x64x64xf32>
    %137 = vector.shape_cast %136 : vector<1x64x64xf32> to vector<64x64xf32>
    %cst_107 = arith.constant dense<0.000000e+00> : vector<128x64xf32>
    %138 = tpu.matmul %124, %137, %cst_107 {dimension_numbers = #tpu.dot_dimension_numbers<[1], [0], [0], [1], [0, 0, 1, 1], [], []>} : vector<128x64xf32>, vector<64x64xf32>, vector<128x64xf32> -> vector<128x64xf32>
    %139 = arith.addf %135, %138 : vector<128x64xf32>
    %140 = vector.broadcast %125 : vector<1x64xf32> to vector<128x64xf32>
    %141 = arith.addf %139, %140 : vector<128x64xf32>
    %c0_108 = arith.constant 0 : index
    %c0_109 = arith.constant 0 : index
    %142 = vector.load %arg9[%c0_108, %c0_109] : memref<64x64xf32, #tpu.memory_space<vmem>>, vector<64x64xf32>
    %cst_110 = arith.constant dense<0.000000e+00> : vector<128x64xf32>
    %143 = tpu.matmul %96, %142, %cst_110 {dimension_numbers = #tpu.dot_dimension_numbers<[1], [0], [0], [1], [0, 0, 1, 1], [], []>} : vector<128x64xf32>, vector<64x64xf32>, vector<128x64xf32> -> vector<128x64xf32>
    %144 = vector.broadcast %126 : vector<1x64xf32> to vector<128x64xf32>
    %145 = arith.addf %143, %144 : vector<128x64xf32>
    %146 = arith.addf %145, %141 : vector<128x64xf32>
    %cst_111 = arith.constant 0.000000e+00 : f32
    %147 = vector.broadcast %cst_111 : f32 to vector<128x64xf32>
    %148 = arith.maximumf %146, %147 : vector<128x64xf32>
    %cst_112 = arith.constant dense<0.000000e+00> : vector<128xf32>
    %149 = vector.multi_reduction <add>, %148, %cst_112 [1] : vector<128x64xf32> to vector<128xf32>
    %150 = vector.shape_cast %149 : vector<128xf32> to vector<128x1xf32>
    %cst_113 = arith.constant 6.400000e+01 : f32
    %151 = vector.broadcast %cst_113 : f32 to vector<128x1xf32>
    %152 = arith.divf %150, %151 : vector<128x1xf32>
    %153 = vector.broadcast %152 : vector<128x1xf32> to vector<128x64xf32>
    %154 = arith.subf %148, %153 : vector<128x64xf32>
    %155 = arith.mulf %154, %154 : vector<128x64xf32>
    %cst_114 = arith.constant dense<0.000000e+00> : vector<128xf32>
    %156 = vector.multi_reduction <add>, %155, %cst_114 [1] : vector<128x64xf32> to vector<128xf32>
    %157 = vector.shape_cast %156 : vector<128xf32> to vector<128x1xf32>
    %cst_115 = arith.constant 6.400000e+01 : f32
    %158 = vector.broadcast %cst_115 : f32 to vector<128x1xf32>
    %159 = arith.divf %157, %158 : vector<128x1xf32>
    %160 = vector.broadcast %152 : vector<128x1xf32> to vector<128x64xf32>
    %161 = arith.subf %148, %160 : vector<128x64xf32>
    %cst_116 = arith.constant 9.99999974E-6 : f32
    %162 = vector.broadcast %cst_116 : f32 to vector<128x1xf32>
    %163 = arith.addf %159, %162 : vector<128x1xf32>
    %164 = math.rsqrt %163 : vector<128x1xf32>
    %165 = vector.broadcast %164 : vector<128x1xf32> to vector<128x64xf32>
    %166 = arith.mulf %161, %165 : vector<128x64xf32>
    %167 = vector.broadcast %127 : vector<1x64xf32> to vector<128x64xf32>
    %168 = arith.mulf %166, %167 : vector<128x64xf32>
    %169 = vector.broadcast %128 : vector<1x64xf32> to vector<128x64xf32>
    %170 = arith.addf %168, %169 : vector<128x64xf32>
    %c0_117 = arith.constant 0 : index
    %c0_118 = arith.constant 0 : index
    %171 = vector.load %arg11[%c0_117, %c0_118] : memref<64x32xf32, #tpu.memory_space<vmem>>, vector<64x32xf32>
    %cst_119 = arith.constant dense<0.000000e+00> : vector<128x32xf32>
    %172 = tpu.matmul %170, %171, %cst_119 {dimension_numbers = #tpu.dot_dimension_numbers<[1], [0], [0], [1], [0, 0, 1, 1], [], []>} : vector<128x64xf32>, vector<64x32xf32>, vector<128x32xf32> -> vector<128x32xf32>
    %c0_120 = arith.constant 0 : index
    %c0_121 = arith.constant 0 : index
    %173 = vector.load %arg12[%c0_120, %c0_121] : memref<128x32xf32, #tpu.memory_space<vmem>>, vector<128x32xf32>
    %174 = arith.mulf %172, %173 : vector<128x32xf32>
    %c0_122 = arith.constant 0 : index
    %c0_123 = arith.constant 0 : index
    %175 = vector.load %arg14[%c0_122, %c0_123] : memref<32x4xf32, #tpu.memory_space<vmem>>, vector<32x4xf32>
    %cst_124 = arith.constant dense<0.000000e+00> : vector<128x4xf32>
    %176 = tpu.matmul %174, %175, %cst_124 {dimension_numbers = #tpu.dot_dimension_numbers<[1], [0], [0], [1], [0, 0, 1, 1], [], []>} : vector<128x32xf32>, vector<32x4xf32>, vector<128x4xf32> -> vector<128x4xf32>
    %c0_125 = arith.constant 0 : index
    %c0_126 = arith.constant 0 : index
    %177 = vector.load %arg13[%c0_125, %c0_126] : memref<16x128xf32, #tpu.memory_space<vmem>>, vector<16x128xf32>
    %cst_127 = arith.constant dense<0.000000e+00> : vector<16x4xf32>
    %178 = tpu.matmul %177, %176, %cst_127 {dimension_numbers = #tpu.dot_dimension_numbers<[1], [0], [0], [1], [0, 0, 1, 1], [], []>} : vector<16x128xf32>, vector<128x4xf32>, vector<16x4xf32> -> vector<16x4xf32>
    %c0_128 = arith.constant 0 : index
    %c0_129 = arith.constant 0 : index
    %179 = vector.load %arg15[%c0_128, %c0_129] : memref<1x4xf32, #tpu.memory_space<vmem>>, vector<1x4xf32>
    %180 = vector.broadcast %179 : vector<1x4xf32> to vector<16x4xf32>
    %181 = arith.addf %178, %180 : vector<16x4xf32>
    %c0_130 = arith.constant 0 : index
    %c0_131 = arith.constant 0 : index
    %c0_132 = arith.constant 0 : index
    %182 = vector.load %arg16[%c0_130, %c0_131, %c0_132] : memref<1x16x4xf32, #tpu.memory_space<vmem>>, vector<1x16x4xf32>
    %183 = vector.shape_cast %182 : vector<1x16x4xf32> to vector<16x4xf32>
    %184 = vector.shape_cast %181 : vector<16x4xf32> to vector<1x16x4xf32>
    tpu.vector_store %arg16[%c0_130, %c0_131, %c0_132], %184 {strides = array<i32>} : memref<1x16x4xf32, #tpu.memory_space<vmem>>, vector<1x16x4xf32>,
    return
  }
  func.func @transform_0(%arg0: i32) -> (i32, i32, i32) {
    %c0_i32 = arith.constant 0 : i32
    %c0_i32_0 = arith.constant 0 : i32
    %c0_i32_1 = arith.constant 0 : i32
    return %arg0, %c0_i32, %c0_i32_0 : i32, i32, i32
  }
  func.func @transform_1(%arg0: i32) -> (i32, i32, i32) {
    %c0_i32 = arith.constant 0 : i32
    %c0_i32_0 = arith.constant 0 : i32
    %c0_i32_1 = arith.constant 0 : i32
    %c0_i32_2 = arith.constant 0 : i32
    return %c0_i32, %c0_i32_0, %c0_i32_1 : i32, i32, i32
  }
  func.func @transform_2(%arg0: i32) -> (i32, i32, i32) {
    %c0_i32 = arith.constant 0 : i32
    %c0_i32_0 = arith.constant 0 : i32
    %c0_i32_1 = arith.constant 0 : i32
    %c0_i32_2 = arith.constant 0 : i32
    return %c0_i32, %c0_i32_0, %c0_i32_1 : i32, i32, i32
  }
  func.func @transform_3(%arg0: i32) -> (i32, i32, i32) {
    %c0_i32 = arith.constant 0 : i32
    %c0_i32_0 = arith.constant 0 : i32
    %c0_i32_1 = arith.constant 0 : i32
    %c0_i32_2 = arith.constant 0 : i32
    return %c0_i32, %c0_i32_0, %c0_i32_1 : i32, i32, i32
  }
  func.func @transform_4(%arg0: i32) -> (i32, i32) {
    %c0_i32 = arith.constant 0 : i32
    %c0_i32_0 = arith.constant 0 : i32
    %c0_i32_1 = arith.constant 0 : i32
    return %c0_i32, %c0_i32_0 : i32, i32
  }
  func.func @transform_5(%arg0: i32) -> (i32, i32) {
    %c0_i32 = arith.constant 0 : i32
    %c0_i32_0 = arith.constant 0 : i32
    %c0_i32_1 = arith.constant 0 : i32
    return %c0_i32, %c0_i32_0 : i32, i32
  }
  func.func @transform_6(%arg0: i32) -> (i32, i32, i32) {
    %c0_i32 = arith.constant 0 : i32
    %c0_i32_0 = arith.constant 0 : i32
    %c0_i32_1 = arith.constant 0 : i32
    %c0_i32_2 = arith.constant 0 : i32
    return %c0_i32, %c0_i32_0, %c0_i32_1 : i32, i32, i32
  }
  func.func @transform_7(%arg0: i32) -> (i32, i32, i32) {
    %c0_i32 = arith.constant 0 : i32
    %c0_i32_0 = arith.constant 0 : i32
    %c0_i32_1 = arith.constant 0 : i32
    %c0_i32_2 = arith.constant 0 : i32
    return %c0_i32, %c0_i32_0, %c0_i32_1 : i32, i32, i32
  }
  func.func @transform_8(%arg0: i32) -> (i32, i32) {
    %c0_i32 = arith.constant 0 : i32
    %c0_i32_0 = arith.constant 0 : i32
    %c0_i32_1 = arith.constant 0 : i32
    return %c0_i32, %c0_i32_0 : i32, i32
  }
  func.func @transform_9(%arg0: i32) -> (i32, i32) {
    %c0_i32 = arith.constant 0 : i32
    %c0_i32_0 = arith.constant 0 : i32
    %c0_i32_1 = arith.constant 0 : i32
    return %c0_i32, %c0_i32_0 : i32, i32
  }
  func.func @transform_10(%arg0: i32) -> (i32, i32) {
    %c0_i32 = arith.constant 0 : i32
    %c0_i32_0 = arith.constant 0 : i32
    %c0_i32_1 = arith.constant 0 : i32
    return %c0_i32, %c0_i32_0 : i32, i32
  }
  func.func @transform_11(%arg0: i32) -> (i32, i32) {
    %c0_i32 = arith.constant 0 : i32
    %c0_i32_0 = arith.constant 0 : i32
    %c0_i32_1 = arith.constant 0 : i32
    return %c0_i32, %c0_i32_0 : i32, i32
  }
  func.func @transform_12(%arg0: i32) -> (i32, i32) {
    %c0_i32 = arith.constant 0 : i32
    %c0_i32_0 = arith.constant 0 : i32
    %c0_i32_1 = arith.constant 0 : i32
    return %c0_i32, %c0_i32_0 : i32, i32
  }
  func.func @transform_13(%arg0: i32) -> (i32, i32) {
    %c0_i32 = arith.constant 0 : i32
    %c0_i32_0 = arith.constant 0 : i32
    %c0_i32_1 = arith.constant 0 : i32
    return %c0_i32, %c0_i32_0 : i32, i32
  }
  func.func @transform_14(%arg0: i32) -> (i32, i32) {
    %c0_i32 = arith.constant 0 : i32
    %c0_i32_0 = arith.constant 0 : i32
    %c0_i32_1 = arith.constant 0 : i32
    return %c0_i32, %c0_i32_0 : i32, i32
  }
  func.func @transform_15(%arg0: i32) -> (i32, i32, i32) {
    %c0_i32 = arith.constant 0 : i32
    %c0_i32_0 = arith.constant 0 : i32
    %c0_i32_1 = arith.constant 0 : i32
    return %arg0, %c0_i32, %c0_i32_0 : i32, i32, i32
  }
}

</mosaic_0001>

<bundles_post_ra>
// kernel: mstgcn_forward.1
= control target key start
LH: loop header
LB: loop body
LE: loop exit
PB: predicated region body
PF: predicated region fallthrough
CT: control target
= control target key end

     0   :  { %s7211_s0 = inlined_call_operand.vmem [shape: f32[2,128,4], index: 0, kind: input, shape index: {}]   ;;  %s7212_s1 = inlined_call_operand.vmem [shape: f32[3,128,128], index: 1, kind: input, shape index: {}]   ;;  %s7213_s2 = inlined_call_operand.vmem [shape: f32[3,4,64], index: 2, kind: input, shape index: {}]   ;;  %s7214_s3 = inlined_call_operand.hbm [shape: f32[3,64,64], index: 3, kind: input, shape index: {}]   ;;  %s7215_s4 = inlined_call_operand.vmem [shape: f32[4,64], index: 4, kind: input, shape index: {}]   ;;  %s7216_s5 = inlined_call_operand.vmem [shape: f32[4,64], index: 5, kind: input, shape index: {}]   ;;  %s7217_s6 = inlined_call_operand.hbm [shape: f32[3,64,64], index: 6, kind: input, shape index: {}]   ;;  %s7218_s7 = inlined_call_operand.hbm [shape: f32[3,64,64], index: 7, kind: input, shape index: {}]   ;;  %s7219_s8 = inlined_call_operand.vmem [shape: f32[64,64], index: 8, kind: input, shape index: {}]   ;;  %s7220_s9 = inlined_call_operand.vmem [shape: f32[4,64], index: 9, kind: input, shape index: {}]   ;;  %s7221_s10 = inlined_call_operand.vmem [shape: f32[64,32], index: 10, kind: input, shape index: {}]   ;;  %s7222_s11 = inlined_call_operand.vmem [shape: f32[128,32], index: 11, kind: input, shape index: {}]   ;;  %s7223_s12 = inlined_call_operand.vmem [shape: f32[16,128], index: 12, kind: input, shape index: {}]   ;;  %s7224_s13 = inlined_call_operand.vmem [shape: f32[32,4], index: 13, kind: input, shape index: {}]   ;;  %s7225_s14 = inlined_call_operand.vmem [shape: f32[1,4], index: 14, kind: input, shape index: {}]   ;;  %s7226_s15 = inlined_call_operand.vmem [shape: f32[2,16,4], index: 15, kind: output, shape index: {}]  }
   0x1   :  { %7299 = sst [smem:[#allocation29_spill]] %s7217_s6 }
   0x2   :  { %20 = vsyncpa [#allocation3], 0 }
   0x3   :  { %21 = vsyncpa [#allocation5], 0  ;;  %s4900_s18 = smov 0  }
   0x4 LB: > { %s4906_s19 = sadd.s32 4294967295, %s4812_s18   ;;  %p4210_p0 = scmp.ge.s32.totalorder %s4812_s18, 1  ;;  %s4812_s18 = sphi %s4900_s18, %s27_s18  }
   0x5   : > { %p378_p1 = scmp.lt.s32.totalorder %s4812_s18, 3  ;;  %p4553_p2 = scmp.eq.s32.totalorder %s4906_s19, 0 }
   0x6   : > { %s7300_s6 = sld [smem:[#allocation29_spill]]  ;;  %s395_s26 = sshll.u32 %s7214_s3, 4  ;;  %s396_s26 = int_to_ptr.hbm [resolvable:$true] %s395_s26 }
   0x7   : > { %p4914_p3 = pnand %p4210_p0, %p378_p1  ;;  %s4814_s27 = smov [#allocation4]  }
   0x8   : > { %s417_s28 = sshll.u32 %s4814_s27, 4  ;;  %s4815_s29 = smov [#allocation2]   ;;  %s418_s28 = int_to_ptr.vmem [resolvable:$true] %s417_s28 }
   0x9   : > { %p4543_p4 = pneg %p4914_p3  ;;  %s397_s30 = sshll.u32 %s4815_s29, 4  ;;  %s398_s30 = int_to_ptr.vmem [resolvable:$true] %s397_s30 }
   0xa   : > { %s429_s20 = sshll.u32 %s7218_s7, 4  ;;  %s4816_s21 = smov 128   ;;  %s430_s20 = int_to_ptr.hbm [resolvable:$true] %s429_s20 }
   0xb   : > { %p4544_p5 = pnand %p4553_p2, %p4543_p4  ;;  %s4818_s24 = smov [#allocation6]  }
   0xc   : > { %s415_s22 = sshll.u32 %s7300_s6, 4  ;;  %s4817_s6 = smov 8   ;;  %s416_s22 = int_to_ptr.hbm [resolvable:$true] %s415_s22 }
   0xd   : > { %4549 = dma.hbm_to_vmem [thread:$0]  (!%p4544_p5), %s416_s22, 3072, %s418_s28, [#allocation5], %s4816_s21, %s4816_s21, %s4817_s6  }
   0xe   : > { %4546 = dma.hbm_to_vmem [thread:$0]  (!%p4544_p5), %s396_s26, 3072, %s398_s30, [#allocation3], %s4816_s21, %s4816_s21, %s4817_s6  }
   0xf   : > { %s431_s25 = sshll.u32 %s4818_s24, 4  ;;  %476 = sbr.rel (%p4914_p3) target bundleno = 2973 (0xb9d), region = 80  ;;  %s432_s25 = int_to_ptr.vmem [resolvable:$true] %s431_s25 }
  0x10   : > { %4552 = dma.hbm_to_vmem [thread:$0]  (!%p4544_p5), %s430_s20, 3072, %s432_s25, [#allocation5], %s4816_s21, %s4816_s21, %s4817_s6  }
  0x14   : > { %4803 = dma.done.wait (%p4553_p2), [#allocation3], 3072  }
  0x15   : > { %4805 = vsyncadd (%p4553_p2), [#allocation3], 4294964224 }
  0x16   : > { %4807 = dma.done.wait (%p4553_p2), [#allocation5], 6144  }
  0x17   : > { %4809 = vsyncadd (%p4553_p2), [#allocation5], 4294961152  ;;  %p535_p6 = scmp.lt.s32.totalorder %s4906_s19, 1  ;;  %vm868_vm0 = vcmask 1043456   ;;  %vm7239_vm1 = vcmask 31744   ;;  %vm7241_vm2 = vcmask 523264  }
  0x18   : > { %v818_v0 = vld [vmem:[%s7213_s2] sm:$0xf]  ;;  %v4256_v9 = vld [vmem:[%s7213_s2 + $0x4] sm:$0xf]  ;;  %v4290_v15 = vld [vmem:[%s7213_s2 + $0x8] sm:$0xf] }
  0x19   : > { %s7680_s19 = smov (!%p535_p6, %s4906_s19), 1  ;;  %4223 = vmatpush.msk.msra.mxu0 %vm868_vm0, %v818_v0  ;;  %4521 = vmatpush.msk.msra.mxu3 %vm868_vm0, %v818_v0 }
  0x1a   : > { %s4519_s6 = sshll.u32 %s7680_s19, 7  ;;  %4522 = vmatpush.msk.msra.mxu2 %vm868_vm0, %v4256_v9  ;;  %4257 = vmatpush.msk.msra.mxu1 %vm868_vm0, %v4256_v9  ;;  %v803_v9 = vld [vmem:[%s7212_s1 + $0x8] sm:$0xff]  ;;  %s4520_s17 = sshll.u32 %s7680_s19, 4 }
  0x1b   : > { %s4946_s26 = scalar_lea.vmem %s7211_s0, %s4519_s6  ;;  %4291 = vmatpush.msk.msrb.mxu0 %vm868_vm0, %v4290_v15  ;;  %v4244_v15 = vld [vmem:[%s7212_s1 + $0xa0] sm:$0xff]  ;;  %s544_s6 = scalar_lea.vmem %s7226_s15, %s4520_s17 }
  0x1c   : > { %v4952_v1 = vld [vmem:[%s4946_s26] sm:$0xff]  ;;  %v4957_v2 = vld [vmem:[%s4946_s26 + $0x50] sm:$0xff]  ;;  %v4964_v3 = vld [vmem:[%s4946_s26 + $0x8] sm:$0xff] }
  0x1d   : > { %4224 = vmatmul.msk.f32.vlgmr.msra.gmra.mxu0 %vm7239_vm1, %v4952_v1  ;;  %4234 = vmatmul.msk.f32.vlgmr.msra.gmra.mxu3 %vm7239_vm1, %v4957_v2  ;;  %v4967_v4 = vld [vmem:[%s4946_s26 + $0x58] sm:$0xff]  ;;  %v4974_v5 = vld [vmem:[%s4946_s26 + $0x10] sm:$0xff]  ;;  %v4977_v6 = vld [vmem:[%s4946_s26 + $0x60] sm:$0xff] }
  0x1e   : > { %v4984_v7 = vld [vmem:[%s4946_s26 + $0x18] sm:$0xff]  ;;  %v4987_v8 = vld [vmem:[%s4946_s26 + $0x68] sm:$0xff]  ;;  %4258 = vmatmul.msk.f32.vlgmr.msra.gmra.mxu1 %vm7239_vm1, %v4952_v1  ;;  %v790_v11 = vld [vmem:[%s4946_s26 + $0x20] sm:$0xff] }
  0x1f   : > { %v795_v10 = vld [vmem:[%s4946_s26 + $0x48] sm:$0xff]  ;;  %v5004_v12 = vld [vmem:[%s4946_s26 + $0x70] sm:$0xff]  ;;  %v5015_v14 = vld [vmem:[%s4946_s26 + $0x78] sm:$0xff] }
  0x20   : > { %4267 = vmatmul.msk.f32.vlgmr.msra.gmra.mxu2 %vm7239_vm1, %v795_v10  ;;  %v791_v13 = vld [vmem:[%s4946_s26 + $0x28] sm:$0xff]  ;;  %v792_v16 = vld [vmem:[%s4946_s26 + $0x30] sm:$0xff]  ;;  %v793_v17 = vld [vmem:[%s4946_s26 + $0x38] sm:$0xff] }
  0x21   : > { %v794_v18 = vld [vmem:[%s4946_s26 + $0x40] sm:$0xff] }
  0x25   : > { %4225 = vmatmul.msk.f32.gmra.mxu0 %vm7239_vm1, %v4964_v3  ;;  %4235 = vmatmul.msk.f32.gmra.mxu3 %vm7239_vm1, %v4967_v4 }
  0x26   : > { %4259 = vmatmul.msk.f32.gmra.mxu1 %vm7239_vm1, %v4964_v3 }
  0x28   : > { %4268 = vmatmul.msk.f32.gmra.mxu2 %vm7239_vm1, %v4957_v2 }
  0x2d   : > { %4226 = vmatmul.msk.f32.gmra.mxu0 %vm7239_vm1, %v4974_v5  ;;  %4236 = vmatmul.msk.f32.gmra.mxu3 %vm7239_vm1, %v4977_v6 }
  0x2e   : > { %4260 = vmatmul.msk.f32.gmra.mxu1 %vm7239_vm1, %v4974_v5 }
  0x30   : > { %4269 = vmatmul.msk.f32.gmra.mxu2 %vm7239_vm1, %v4967_v4 }
  0x35   : > { %4227 = vmatmul.msk.f32.gmra.mxu0 %vm7239_vm1, %v4984_v7  ;;  %4237 = vmatmul.msk.f32.gmra.mxu3 %vm7239_vm1, %v4987_v8 }
  0x36   : > { %4261 = vmatmul.msk.f32.gmra.mxu1 %vm7239_vm1, %v4984_v7 }
  0x38   : > { %4270 = vmatmul.msk.f32.gmra.mxu2 %vm7239_vm1, %v4977_v6 }
  0x3d   : > { %4228 = vmatmul.msk.f32.gmra.mxu0 %vm7239_vm1, %v790_v11  ;;  %4238 = vmatmul.msk.f32.gmra.mxu3 %vm7239_vm1, %v5004_v12 }
  0x3e   : > { %4262 = vmatmul.msk.f32.gmra.mxu1 %vm7239_vm1, %v790_v11 }
  0x40   : > { %4271 = vmatmul.msk.f32.gmra.mxu2 %vm7239_vm1, %v4987_v8 }
  0x45   : > { %4229 = vmatmul.msk.f32.gmra.mxu0 %vm7239_vm1, %v791_v13  ;;  %4239 = vmatmul.msk.f32.gmra.mxu3 %vm7239_vm1, %v5015_v14 }
  0x46   : > { %4263 = vmatmul.msk.f32.gmra.mxu1 %vm7239_vm1, %v791_v13 }
  0x48   : > { %4272 = vmatmul.msk.f32.gmra.mxu2 %vm7239_vm1, %v5004_v12 }
  0x4d   : > { %4230 = vmatmul.msk.f32.gmra.mxu0 %vm7239_vm1, %v792_v16 }
  0x4e   : > { %4264 = vmatmul.msk.f32.gmra.mxu1 %vm7239_vm1, %v792_v16 }
  0x50   : > { %4273 = vmatmul.msk.f32.gmra.mxu2 %vm7239_vm1, %v5015_v14 }
  0x55   : > { %4231 = vmatmul.msk.f32.gmra.mxu0 %vm7239_vm1, %v793_v17 }
  0x56   : > { %4265 = vmatmul.msk.f32.gmra.mxu1 %vm7239_vm1, %v793_v17 }
  0x5d   : > { %4232 = vmatmul.msk.f32.gmra.mxu0 %vm7239_vm1, %v794_v18 }
  0x5e   : > { %4266 = vmatmul.msk.f32.gmra.mxu1 %vm7239_vm1, %v794_v18 }
  0x65   : > { %4233 = vmatmul.msk.f32.gmra.mxu0 %vm7239_vm1, %v795_v10 }
  0x6d   : > { %4292 = vmatmul.msk.f32.vlgmr.msrb.gmra.mxu0 %vm7239_vm1, %v4952_v1 }
  0x75   : > { %4293 = vmatmul.msk.f32.gmra.mxu0 %vm7239_vm1, %v4964_v3 }
  0x7d   : > { %4294 = vmatmul.msk.f32.gmra.mxu0 %vm7239_vm1, %v4974_v5 }
  0x85   : > { %4295 = vmatmul.msk.f32.gmra.mxu0 %vm7239_vm1, %v4984_v7 }
  0x8d   : > { %4296 = vmatmul.msk.f32.gmra.mxu0 %vm7239_vm1, %v790_v11  ;;  %v4242_v11 = vld [vmem:[%s7212_s1 + $0x90] sm:$0xff] }
  0x95   : > { %4297 = vmatmul.msk.f32.gmra.mxu0 %vm7239_vm1, %v791_v13  ;;  %v4243_v13 = vld [vmem:[%s7212_s1 + $0x98] sm:$0xff] }
  0x9a   : > { %v889_v19 = vpop.f32.mrf.mxu0 }
  0x9b   : > { %v5064_v26 = vpop.f32.mrf.mxu1 }
  0x9d   : > { %4298 = vmatmul.msk.f32.gmra.mxu0 %vm7239_vm1, %v792_v16  ;;  %v806_v16 = vld [vmem:[%s7212_s1 + $0x20] sm:$0xff] }
  0xa0   : > { %v919_v20 = vpop.f32.mrf.mxu3 }
  0xa2   : > { %v892_v21 = vpop.f32.mrf.mxu0 }
  0xa3   : > { %v1003_v29 = vpop.f32.mrf.mxu2  ;;  %v979_v30 = vpop.f32.mrf.mxu1 }
  0xa5   : > { %4299 = vmatmul.msk.f32.gmra.mxu0 %vm7239_vm1, %v793_v17  ;;  %v4274_v17 = vld [vmem:[%s7212_s1 + $0x100] sm:$0xff] }
  0xa8   : > { %v922_v22 = vpop.f32.mrf.mxu3 }
  0xaa   : > { %v895_v23 = vpop.f32.mrf.mxu0 }
  0xab   : > { %v1006_v33 = vpop.f32.mrf.mxu2  ;;  %v982_v34 = vpop.f32.mrf.mxu1 }
  0xad   : > { %4300 = vmatmul.msk.f32.gmra.mxu0 %vm7239_vm1, %v794_v18  ;;  %v4245_v18 = vld [vmem:[%s7212_s1 + $0xa8] sm:$0xff] }
  0xb0   : > { %v925_v24 = vpop.f32.mrf.mxu3 }
  0xb2   : > { %v898_v25 = vpop.f32.mrf.mxu0 }
  0xb3   : > { %v1009_v37 = vpop.f32.mrf.mxu2  ;;  %v985_v38 = vpop.f32.mrf.mxu1 }
  0xb5   : > { %4301 = vmatmul.msk.f32.gmra.mxu0 %vm7239_vm1, %v795_v10 }
  0xb8   : > { %v928_v27 = vpop.f32.mrf.mxu3 }
  0xba   : > { %v901_v28 = vpop.f32.mrf.mxu0 }
  0xbb   : > { %v1012_v40 = vpop.f32.mrf.mxu2  ;;  %v988_v41 = vpop.f32.mrf.mxu1 }
  0xbd   : > { %4302 = vmatmul.msk.f32.gmra.mxu0 %vm7239_vm1, %v4957_v2  ;;  %v4240_v2 = vld [vmem:[%s7212_s1 + $0x80] sm:$0xff] }
  0xc0   : > { %v931_v31 = vpop.f32.mrf.mxu3 }
  0xc2   : > { %v904_v32 = vpop.f32.mrf.mxu0 }
  0xc3   : > { %v1015_v43 = vpop.f32.mrf.mxu2  ;;  %v991_v44 = vpop.f32.mrf.mxu1 }
  0xc5   : > { %4303 = vmatmul.msk.f32.gmra.mxu0 %vm7239_vm1, %v4967_v4  ;;  %v802_v4 = vld [vmem:[%s7212_s1] sm:$0xff] }
  0xc8   : > { %v934_v35 = vpop.f32.mrf.mxu3 }
  0xc9   : > { %1089 = vmatpush.msrb.mxu3 %v934_v35  ;;  %v4280_v35 = vld [vmem:[%s7212_s1 + $0x130] sm:$0xff] }
  0xca   : > { %v907_v36 = vpop.f32.mrf.mxu0 }
  0xcb   : > { %1090 = vmatpush.msrb.mxu3 %v931_v31  ;;  %v1018_v46 = vpop.f32.mrf.mxu2  ;;  %v994_v47 = vpop.f32.mrf.mxu1  ;;  %v811_v31 = vld [vmem:[%s7212_s1 + $0x48] sm:$0xff] }
  0xcd   : > { %4304 = vmatmul.msk.f32.gmra.mxu0 %vm7239_vm1, %v4977_v6  ;;  %1091 = vmatpush.msrb.mxu3 %v928_v27  ;;  %v4248_v27 = vld [vmem:[%s7212_s1 + $0xc0] sm:$0xff] }
  0xcf   : > { %1092 = vmatpush.msrb.mxu3 %v925_v24  ;;  %v4247_v24 = vld [vmem:[%s7212_s1 + $0xb8] sm:$0xff] }
  0xd1   : > { %1093 = vmatpush.msrb.mxu3 %v922_v22  ;;  %v808_v22 = vld [vmem:[%s7212_s1 + $0x30] sm:$0xff] }
  0xd2   : > { %v910_v39 = vpop.f32.mrf.mxu0 }
  0xd3   : > { %1094 = vmatpush.msrb.mxu3 %v919_v20  ;;  %v1021_v49 = vpop.f32.mrf.mxu2  ;;  %v997_v50 = vpop.f32.mrf.mxu1  ;;  %v4275_v20 = vld [vmem:[%s7212_s1 + $0x108] sm:$0xff] }
  0xd4   : > { %1024 = vmatpush.msrb.mxu2 %v1021_v49  ;;  %v817_v49 = vld [vmem:[%s7212_s1 + $0x78] sm:$0xff] }
  0xd5   : > { %4305 = vmatmul.msk.f32.gmra.mxu0 %vm7239_vm1, %v4987_v8  ;;  %v4241_v8 = vld [vmem:[%s7212_s1 + $0x88] sm:$0xff] }
  0xd6   : > { %1025 = vmatpush.msrb.mxu2 %v1018_v46  ;;  %v816_v46 = vld [vmem:[%s7212_s1 + $0x70] sm:$0xff] }
  0xd8   : > { %1026 = vmatpush.msrb.mxu2 %v1015_v43  ;;  %v815_v43 = vld [vmem:[%s7212_s1 + $0x68] sm:$0xff] }
  0xda   : > { %v913_v42 = vpop.f32.mrf.mxu0  ;;  %1027 = vmatpush.msrb.mxu2 %v1012_v40  ;;  %v814_v40 = vld [vmem:[%s7212_s1 + $0x60] sm:$0xff] }
  0xdb   : > { %v1000_v52 = vpop.f32.mrf.mxu1 }
  0xdc   : > { %1028 = vmatpush.msrb.mxu2 %v1009_v37  ;;  %v813_v37 = vld [vmem:[%s7212_s1 + $0x58] sm:$0xff] }
  0xdd   : > { %4306 = vmatmul.msk.f32.gmra.mxu0 %vm7239_vm1, %v5004_v12  ;;  %v804_v12 = vld [vmem:[%s7212_s1 + $0x10] sm:$0xff] }
  0xde   : > { %1029 = vmatpush.msrb.mxu2 %v1006_v33  ;;  %v4250_v33 = vld [vmem:[%s7212_s1 + $0xd0] sm:$0xff] }
  0xe0   : > { %1030 = vmatpush.msrb.mxu2 %v1003_v29  ;;  %v4278_v29 = vld [vmem:[%s7212_s1 + $0x120] sm:$0xff] }
  0xe2   : > { %v916_v45 = vpop.f32.mrf.mxu0  ;;  %1031 = vmatpush.msrb.mxu2 %v1000_v52  ;;  %v1454_v52 = vld [vmem:[#allocation2 + $0x68] sm:$0xff] }
  0xe3   : > { %1095 = vmatpush.msrb.mxu3 %v916_v45  ;;  %v4254_v45 = vld [vmem:[%s7212_s1 + $0xf0] sm:$0xff] }
  0xe4   : > { %1032 = vmatpush.msrb.mxu2 %v997_v50  ;;  %v1456_v50 = vld [vmem:[#allocation2 + $0x78] sm:$0xff] }
  0xe5   : > { %1096 = vmatpush.msrb.mxu3 %v913_v42  ;;  %4307 = vmatmul.msk.f32.gmra.mxu0 %vm7239_vm1, %v5015_v14  ;;  %v805_v14 = vld [vmem:[%s7212_s1 + $0x18] sm:$0xff]  ;;  %v4253_v42 = vld [vmem:[%s7212_s1 + $0xe8] sm:$0xff] }
  0xe6   : > { %1033 = vmatpush.msrb.mxu2 %v994_v47  ;;  %v4284_v47 = vld [vmem:[%s7212_s1 + $0x150] sm:$0xff] }
  0xe7   : > { %1097 = vmatpush.msrb.mxu3 %v910_v39  ;;  %v4252_v39 = vld [vmem:[%s7212_s1 + $0xe0] sm:$0xff] }
  0xe8   : > { %1034 = vmatpush.msrb.mxu2 %v991_v44  ;;  %v4283_v44 = vld [vmem:[%s7212_s1 + $0x148] sm:$0xff] }
  0xe9   : > { %1098 = vmatpush.msrb.mxu3 %v907_v36  ;;  %v4251_v36 = vld [vmem:[%s7212_s1 + $0xd8] sm:$0xff] }
  0xea   : > { %v5078_v48 = vpop.f32.mrf.mxu0  ;;  %1035 = vmatpush.msrb.mxu2 %v988_v41  ;;  %v4282_v41 = vld [vmem:[%s7212_s1 + $0x140] sm:$0xff] }
  0xeb   : > { %1099 = vmatpush.msrb.mxu3 %v904_v32  ;;  %v4279_v32 = vld [vmem:[%s7212_s1 + $0x128] sm:$0xff] }
  0xec   : > { %1036 = vmatpush.msrb.mxu2 %v985_v38  ;;  %v4281_v38 = vld [vmem:[%s7212_s1 + $0x138] sm:$0xff] }
  0xed   : > { %1100 = vmatpush.msrb.mxu3 %v901_v28  ;;  %v810_v28 = vld [vmem:[%s7212_s1 + $0x40] sm:$0xff] }
  0xee   : > { %1037 = vmatpush.msrb.mxu2 %v982_v34  ;;  %v812_v34 = vld [vmem:[%s7212_s1 + $0x50] sm:$0xff] }
  0xef   : > { %1101 = vmatpush.msrb.mxu3 %v898_v25  ;;  %v809_v25 = vld [vmem:[%s7212_s1 + $0x38] sm:$0xff] }
  0xf0   : > { %1038 = vmatpush.msrb.mxu2 %v979_v30  ;;  %v4249_v30 = vld [vmem:[%s7212_s1 + $0xc8] sm:$0xff] }
  0xf1   : > { %1102 = vmatpush.msrb.mxu3 %v895_v23  ;;  %v4276_v23 = vld [vmem:[%s7212_s1 + $0x110] sm:$0xff] }
  0xf2   : > { %v5080_v51 = vpop.f32.mrf.mxu0  ;;  %1039 = vmatpush.msrb.mxu2 %v5064_v26  ;;  %v4277_v26 = vld [vmem:[%s7212_s1 + $0x118] sm:$0xff] }
  0xf3   : > { %1103 = vmatpush.msrb.mxu3 %v892_v21  ;;  %1040 = vmatmul.f32.vlgmr.msrb.gmra.mxu2 %v4240_v2  ;;  %v4246_v21 = vld [vmem:[%s7212_s1 + $0xb0] sm:$0xff] }
  0xf4   : > { %1514 = vmatpush.msra.mxu2 %v1456_v50 }
  0xf5   : > { %1104 = vmatpush.msrb.mxu3 %v889_v19  ;;  %v807_v19 = vld [vmem:[%s7212_s1 + $0x28] sm:$0xff] }
  0xf6   : > { %1105 = vmatmul.f32.vlgmr.msrb.gmra.mxu3 %v802_v4 }
  0xfa   : > { %v1199_v53 = vpop.f32.mrf.mxu0 }
  0xfb   : > { %1043 = vmatmul.f32.gmra.mxu2 %v4241_v8  ;;  %v4287_v8 = vld [vmem:[%s7212_s1 + $0x168] sm:$0xff] }
  0xfe   : > { %1108 = vmatmul.f32.gmra.mxu3 %v803_v9  ;;  %v1688_v9 = vld [vmem:[#allocation2 + $0x98] sm:$0xff] }
 0x102   : > { %v1202_v54 = vpop.f32.mrf.mxu0 }
 0x103   : > { %1046 = vmatmul.f32.gmra.mxu2 %v4242_v11  ;;  %v1686_v11 = vld [vmem:[#allocation2 + $0x88] sm:$0xff] }
 0x106   : > { %1111 = vmatmul.f32.gmra.mxu3 %v804_v12 }
 0x10a   : > { %v1205_v55 = vpop.f32.mrf.mxu0 }
 0x10b   : > { %1049 = vmatmul.f32.gmra.mxu2 %v4243_v13  ;;  %v1685_v13 = vld [vmem:[#allocation2 + $0x80] sm:$0xff] }
 0x10e   : > { %1114 = vmatmul.f32.gmra.mxu3 %v805_v14  ;;  %v4288_v14 = vld [vmem:[%s7212_s1 + $0x170] sm:$0xff] }
 0x112   : > { %v1208_v56 = vpop.f32.mrf.mxu0 }
 0x113   : > { %1052 = vmatmul.f32.gmra.mxu2 %v4244_v15 }
 0x116   : > { %1117 = vmatmul.f32.gmra.mxu3 %v806_v16  ;;  %v4289_v16 = vld [vmem:[%s7212_s1 + $0x178] sm:$0xff] }
 0x11a   : > { %v1211_v57 = vpop.f32.mrf.mxu0 }
 0x11b   : > { %1055 = vmatmul.f32.gmra.mxu2 %v4245_v18 }
 0x11e   : > { %1120 = vmatmul.f32.gmra.mxu3 %v807_v19 }
 0x122   : > { %v1214_v58 = vpop.f32.mrf.mxu0 }
 0x123   : > { %1058 = vmatmul.f32.gmra.mxu2 %v4246_v21 }
 0x126   : > { %1123 = vmatmul.f32.gmra.mxu3 %v808_v22  ;;  %v545_v22 = vlaneseq }
 0x12a   : > { %v1217_v59 = vpop.f32.mrf.mxu0 }
 0x12b   : > { %1061 = vmatmul.f32.gmra.mxu2 %v4247_v24 }
 0x12e   : > { %1126 = vmatmul.f32.gmra.mxu3 %v809_v25 }
 0x132   : > { %v1220_v60 = vpop.f32.mrf.mxu0 }
 0x133   : > { %1064 = vmatmul.f32.gmra.mxu2 %v4248_v27  ;;  %v5233_v27 = vshrl.u32 %v545_v22, 7 }
 0x135   : > { %vm7240_vm4 = vcmp.lt.s32.totalorder %v5233_v27, 7  ;;  %vm7230_vm5 = vcmp.lt.s32.totalorder %v5233_v27, 1 }
 0x136   : > { %1129 = vmatmul.f32.gmra.mxu3 %v810_v28 }
 0x13a   : > { %v1223_v61 = vpop.f32.mrf.mxu0 }
 0x13b   : > { %1067 = vmatmul.f32.gmra.mxu2 %v4249_v30 }
 0x13e   : > { %1132 = vmatmul.f32.gmra.mxu3 %v811_v31 }
 0x142   : > { %v1226_v62 = vpop.f32.mrf.mxu0 }
 0x143   : > { %1070 = vmatmul.f32.gmra.mxu2 %v4250_v33 }
 0x146   : > { %1135 = vmatmul.f32.gmra.mxu3 %v812_v34 }
 0x14a   : > { %v1229_v63 = vpop.f32.mrf.mxu0 }
 0x14b   : > { %1073 = vmatmul.f32.gmra.mxu2 %v4251_v36 }
 0x14e   : > { %1138 = vmatmul.f32.gmra.mxu3 %v813_v37 }
 0x152   : > { %v1232_v0 = vpop.f32.mrf.mxu0 }
 0x153   : > { %1076 = vmatmul.f32.gmra.mxu2 %v4252_v39 }
 0x156   : > { %1141 = vmatmul.f32.gmra.mxu3 %v814_v40 }
 0x15a   : > { %v1235_v6 = vpop.f32.mrf.mxu0 }
 0x15b   : > { %1079 = vmatmul.f32.gmra.mxu2 %v4253_v42 }
 0x15e   : > { %1144 = vmatmul.f32.gmra.mxu3 %v815_v43 }
 0x162   : > { %v1238_v10 = vpop.f32.mrf.mxu0 }
 0x163   : > { %1241 = vmatpush.msrb.mxu1 %v1238_v10  ;;  %1082 = vmatmul.f32.gmra.mxu2 %v4254_v45  ;;  %v1687_v10 = vld [vmem:[#allocation2 + $0x90] sm:$0xff] }
 0x165   : > { %1242 = vmatpush.msrb.mxu1 %v1235_v6  ;;  %v1689_v6 = vld [vmem:[#allocation2 + $0xa0] sm:$0xff] }
 0x166   : > { %1147 = vmatmul.f32.gmra.mxu3 %v816_v46 }
 0x167   : > { %1243 = vmatpush.msrb.mxu1 %v1232_v0  ;;  %v1690_v0 = vld [vmem:[#allocation2 + $0xa8] sm:$0xff] }
 0x169   : > { %1244 = vmatpush.msrb.mxu1 %v1229_v63  ;;  %v1691_v63 = vld [vmem:[#allocation2 + $0xb0] sm:$0xff] }
 0x16b   : > { %1245 = vmatpush.msrb.mxu1 %v1226_v62  ;;  %v1449_v62 = vld [vmem:[#allocation2 + $0x40] sm:$0xff] }
 0x16d   : > { %1246 = vmatpush.msrb.mxu1 %v1223_v61  ;;  %v1692_v61 = vld [vmem:[#allocation2 + $0xb8] sm:$0xff] }
 0x16e   : > { %1150 = vmatmul.f32.gmra.mxu3 %v817_v49  ;;  %1749 = vmatpush.msra.mxu0 %v1692_v61 }
 0x16f   : > { %1247 = vmatpush.msrb.mxu1 %v1220_v60  ;;  %v1450_v60 = vld [vmem:[#allocation2 + $0x48] sm:$0xff] }
 0x170   : > { %1750 = vmatpush.msra.mxu0 %v1691_v63 }
 0x171   : > { %1248 = vmatpush.msrb.mxu1 %v1217_v59  ;;  %v4286_v59 = vld [vmem:[%s7212_s1 + $0x160] sm:$0xff] }
 0x172   : > { %1751 = vmatpush.msra.mxu0 %v1690_v0 }
 0x173   : > { %1249 = vmatpush.msrb.mxu1 %v1214_v58  ;;  %v1451_v58 = vld [vmem:[#allocation2 + $0x50] sm:$0xff] }
 0x174   : > { %1752 = vmatpush.msra.mxu0 %v1689_v6  ;;  %v5294_v6 = vadd.s32 24, %v5233_v27 }
 0x175   : > { %1250 = vmatpush.msrb.mxu1 %v1211_v57 }
 0x176   : > { %1753 = vmatpush.msra.mxu0 %v1688_v9 }
 0x177   : > { %1251 = vmatpush.msrb.mxu1 %v1208_v56  ;;  %v1041_v56 = vpop.f32.mrf.mxu2 }
 0x178   : > { %1754 = vmatpush.msra.mxu0 %v1687_v10 }
 0x179   : > { %1252 = vmatpush.msrb.mxu1 %v1205_v55  ;;  %v1452_v55 = vld [vmem:[#allocation2 + $0x58] sm:$0xff]  ;;  %v1106_v57 = vpop.f32.mrf.mxu3 }
 0x17a   : > { %1755 = vmatpush.msra.mxu0 %v1686_v11  ;;  %v1107_v19 = vadd.f32 %v1106_v57, %v1041_v56 }
 0x17b   : > { %1253 = vmatpush.msrb.mxu1 %v1202_v54  ;;  %v1453_v54 = vld [vmem:[#allocation2 + $0x60] sm:$0xff] }
 0x17c   : > { %1756 = vmatpush.msra.mxu0 %v1685_v13 }
 0x17d   : > { %1254 = vmatpush.msrb.mxu1 %v1199_v53  ;;  %v4285_v53 = vld [vmem:[%s7212_s1 + $0x158] sm:$0xff] }
 0x17f   : > { %1255 = vmatpush.msrb.mxu1 %v5080_v51  ;;  %v1455_v51 = vld [vmem:[#allocation2 + $0x70] sm:$0xff]  ;;  %v1044_v2 = vpop.f32.mrf.mxu2 }
 0x180   : > { %1515 = vmatpush.msra.mxu2 %v1455_v51 }
 0x181   : > { %1256 = vmatpush.msrb.mxu1 %v5078_v48  ;;  %v4255_v48 = vld [vmem:[%s7212_s1 + $0xf8] sm:$0xff]  ;;  %v1109_v4 = vpop.f32.mrf.mxu3 }
 0x182   : > { %1257 = vmatmul.f32.vlgmr.msrb.gmra.mxu1 %v4274_v17  ;;  %1085 = vmatmul.f32.gmra.mxu2 %v4255_v48 }
 0x183   : > { %1516 = vmatpush.msra.mxu2 %v1454_v52 }
 0x185   : > { %1517 = vmatpush.msra.mxu2 %v1453_v54 }
 0x187   : > { %1518 = vmatpush.msra.mxu2 %v1452_v55  ;;  %v1047_v12 = vpop.f32.mrf.mxu2 }
 0x189   : > { %1519 = vmatpush.msra.mxu2 %v1451_v58  ;;  %v1112_v15 = vpop.f32.mrf.mxu3 }
 0x18a   : > { %1260 = vmatmul.f32.gmra.mxu1 %v4275_v20 }
 0x18b   : > { %1520 = vmatpush.msra.mxu2 %v1450_v60 }
 0x18d   : > { %1521 = vmatpush.msra.mxu2 %v1449_v62 }
 0x18f   : > { %v1050_v17 = vpop.f32.mrf.mxu2 }
 0x191   : > { %v1115_v18 = vpop.f32.mrf.mxu3 }
 0x192   : > { %1263 = vmatmul.f32.gmra.mxu1 %v4276_v23  ;;  %v1116_v50 = vadd.f32 %v1115_v18, %v1050_v17 }
 0x197   : > { %v1053_v24 = vpop.f32.mrf.mxu2 }
 0x199   : > { %v1118_v25 = vpop.f32.mrf.mxu3 }
 0x19a   : > { %1266 = vmatmul.f32.gmra.mxu1 %v4277_v26  ;;  %v1110_v26 = vadd.f32 %v1109_v4, %v1044_v2  ;;  %v1119_v0 = vadd.f32 %v1118_v25, %v1053_v24 }
 0x1a1   : > { %v1121_v39 = vpop.f32.mrf.mxu3 }
 0x1a2   : > { %1269 = vmatmul.f32.gmra.mxu1 %v4278_v29  ;;  %v566_v29 = vand.u32 7, %v5233_v27 }
 0x1a4   : > { %vm5238_vm3 = vcmp.eq.s32.totalorder %v566_v29, 7 }
 0x1a9   : > { %v1124_v58 = vpop.f32.mrf.mxu3 }
 0x1aa   : > { %1272 = vmatmul.f32.gmra.mxu1 %v4279_v32  ;;  %v1113_v32 = vadd.f32 %v1112_v15, %v1047_v12  ;;  %v587_v15 = vand.u32 7, %v5294_v6  ;;  %v4654_v6 = vld [vmem:[%s4946_s26 + $0x50] sm:$0xff] }
 0x1ac   : > { %vm5307_vm8 = vcmp.eq.s32.totalorder %v587_v15, 7 }
 0x1b1   : > { %v1127_v13 = vpop.f32.mrf.mxu3 }
 0x1b2   : > { %1275 = vmatmul.f32.gmra.mxu1 %v4280_v35 }
 0x1ba   : > { %1278 = vmatmul.f32.gmra.mxu1 %v4281_v38  ;;  %v1056_v38 = vpop.f32.mrf.mxu2 }
 0x1bb   : > { %v1122_v18 = vadd.f32 %v1121_v39, %v1056_v38 }
 0x1c2   : > { %1281 = vmatmul.f32.gmra.mxu1 %v4282_v41  ;;  %v5252_v41 = vadd.s32 8, %v5233_v27  ;;  %v1059_v54 = vpop.f32.mrf.mxu2 }
 0x1c3   : > { %v1125_v38 = vadd.f32 %v1124_v58, %v1059_v54 }
 0x1ca   : > { %1284 = vmatmul.f32.gmra.mxu1 %v4283_v44  ;;  %v1062_v12 = vpop.f32.mrf.mxu2 }
 0x1d2   : > { %1287 = vmatmul.f32.gmra.mxu1 %v4284_v47  ;;  %v573_v47 = vand.u32 7, %v5252_v41 }
 0x1d4   : > { %vm5267_vm6 = vcmp.eq.s32.totalorder %v573_v47, 7 }
 0x1da   : > { %1290 = vmatmul.f32.gmra.mxu1 %v4285_v53  ;;  %v5274_v53 = vadd.s32 16, %v5233_v27 }
 0x1dc   : > { %v580_v61 = vand.u32 7, %v5274_v53  ;;  %v4653_v53 = vld [vmem:[%s4946_s26 + $0x48] sm:$0xff] }
 0x1de   : > { %vm5287_vm7 = vcmp.eq.s32.totalorder %v580_v61, 7 }
 0x1e2   : > { %1293 = vmatmul.f32.gmra.mxu1 %v4286_v59 }
 0x1ea   : > { %1296 = vmatmul.f32.gmra.mxu1 %v4287_v8 }
 0x1f2   : > { %1299 = vmatmul.f32.gmra.mxu1 %v4288_v14 }
 0x1fa   : > { %1302 = vmatmul.f32.gmra.mxu1 %v4289_v16 }
 0x1ff   : > { %v1258_v20 = vpop.f32.mrf.mxu1 }
 0x200   : > { %v1306_v21 = vadd.f32 %v1258_v20, %v1107_v19 }
 0x202   : > { %v5229_v23 = vmax.f32 %v1306_v21, 0.0  ;;  %v5314_v21 = vadd.s32 32, %v5233_v27 }
 0x204   : > { %4308 = vmatmul.msk.f32.vlgmr.msra.gmra.mxu2 %vm7241_vm2, %v5229_v23  ;;  %v1338_v34 = vrot.slane %v5229_v23, 7  ;;  %v1387_v35 = vrot.slane %v5229_v23, 1  ;;  %v7353_v23 = vmov 0 }
 0x207   : > { %v1261_v28 = vpop.f32.mrf.mxu1 }
 0x208   : > { %v1307_v30 = vadd.f32 %v1261_v28, %v1110_v26 }
 0x20a   : > { %v1323_v31 = vmax.f32 %v1307_v30, 0.0  ;;  %v594_v30 = vand.u32 7, %v5314_v21  ;;  %v4655_v21 = vld [vmem:[%s4946_s26 + $0x58] sm:$0xff] }
 0x20c   : > { %v1339_v36 = vrot.slane %v1323_v31, 7  ;;  %v1388_v37 = vrot.slane %v1323_v31, 1  ;;  %4309 = vmatmul.msk.f32.gmra.mxu2 %vm7241_vm2, %v1323_v31  ;;  %v1065_v31 = vpop.f32.mrf.mxu2  ;;  %vm5327_vm9 = vcmp.eq.s32.totalorder %v594_v30, 7 }
 0x20e   : > { %v1418_v40 = vsel %vm7240_vm4, %v1387_v35, %v1388_v37  ;;  %v5258_v42 = vsel %vm7230_vm5, %v1338_v34, %v1339_v36 }
 0x20f   : > { %v1264_v43 = vpop.f32.mrf.mxu1  ;;  %v1420_v44 = vsel %vm5238_vm3, 0.0, %v1418_v40 }
 0x210   : > { %v1308_v45 = vadd.f32 %v1264_v43, %v1113_v32  ;;  %4340 = vmatmul.msk.f32.vlgmr.msra.gmra.mxu0 %vm7241_vm2, %v1420_v44  ;;  %v1130_v32 = vpop.f32.mrf.mxu3  ;;  %v5334_v43 = vadd.s32 40, %v5233_v27 }
 0x212   : > { %v1324_v46 = vmax.f32 %v1308_v45, 0.0 }
 0x214   : > { %v1340_v48 = vrot.slane %v1324_v46, 7  ;;  %v1389_v49 = vrot.slane %v1324_v46, 1  ;;  %4310 = vmatmul.msk.f32.gmra.mxu2 %vm7241_vm2, %v1324_v46  ;;  %v1068_v58 = vpop.f32.mrf.mxu2 }
 0x216   : > { %v1417_v52 = vsel %vm7240_vm4, %v1388_v37, %v1389_v49  ;;  %v5278_v55 = vsel %vm7230_vm5, %v1339_v36, %v1340_v48 }
 0x217   : > { %v1267_v56 = vpop.f32.mrf.mxu1  ;;  %v1421_v57 = vsel %vm5267_vm6, 0.0, %v1417_v52 }
 0x218   : > { %v1309_v59 = vadd.f32 %v1267_v56, %v1116_v50  ;;  %4341 = vmatmul.msk.f32.gmra.mxu0 %vm7241_vm2, %v1421_v57  ;;  %v7238_v50 = vand.u32 7, %v5334_v43  ;;  %v1128_v56 = vadd.f32 %v1127_v13, %v1062_v12 }
 0x21a   : > { %v1325_v60 = vmax.f32 %v1309_v59, 0.0  ;;  %vm5347_vm10 = vcmp.eq.s32.totalorder %v7238_v50, 7  ;;  %v1133_v59 = vpop.f32.mrf.mxu3 }
 0x21c   : > { %v1341_v62 = vrot.slane %v1325_v60, 7  ;;  %v1390_v63 = vrot.slane %v1325_v60, 1  ;;  %4311 = vmatmul.msk.f32.gmra.mxu2 %vm7241_vm2, %v1325_v60 }
 0x21e   : > { %v1416_v4 = vsel %vm7240_vm4, %v1389_v49, %v1390_v63  ;;  %v5298_v8 = vsel %vm7230_vm5, %v1340_v48, %v1341_v62 }
 0x21f   : > { %v1270_v9 = vpop.f32.mrf.mxu1  ;;  %v1422_v10 = vsel %vm5287_vm7, 0.0, %v1416_v4 }
 0x220   : > { %v1310_v11 = vadd.f32 %v1270_v9, %v1119_v0  ;;  %4342 = vmatmul.msk.f32.gmra.mxu0 %vm7241_vm2, %v1422_v10 }
 0x222   : > { %v1326_v14 = vmax.f32 %v1310_v11, 0.0 }
 0x224   : > { %v1342_v16 = vrot.slane %v1326_v14, 7  ;;  %v1391_v17 = vrot.slane %v1326_v14, 1  ;;  %4312 = vmatmul.msk.f32.gmra.mxu2 %vm7241_vm2, %v1326_v14  ;;  %v1131_v14 = vadd.f32 %v1130_v32, %v1065_v31 }
 0x226   : > { %v1415_v20 = vsel %vm7240_vm4, %v1390_v63, %v1391_v17  ;;  %v5318_v22 = vsel %vm7230_vm5, %v1341_v62, %v1342_v16  ;;  %v5354_v62 = vadd.s32 48, %v5233_v27 }
 0x227   : > { %v1273_v24 = vpop.f32.mrf.mxu1  ;;  %v1423_v25 = vsel %vm5307_vm8, 0.0, %v1415_v20  ;;  %v1071_v20 = vpop.f32.mrf.mxu2 }
 0x228   : > { %v1311_v26 = vadd.f32 %v1273_v24, %v1122_v18  ;;  %4343 = vmatmul.msk.f32.gmra.mxu0 %vm7241_vm2, %v1423_v25  ;;  %v7235_v11 = vand.u32 7, %v5354_v62  ;;  %v5374_v18 = vadd.s32 56, %v5233_v27 }
 0x22a   : > { %v1327_v28 = vmax.f32 %v1311_v26, 0.0  ;;  %vm5367_vm11 = vcmp.eq.s32.totalorder %v7235_v11, 7 }
 0x22c   : > { %v1343_v36 = vrot.slane %v1327_v28, 7  ;;  %v1392_v37 = vrot.slane %v1327_v28, 1  ;;  %4313 = vmatmul.msk.f32.gmra.mxu2 %vm7241_vm2, %v1327_v28  ;;  %v1136_v28 = vpop.f32.mrf.mxu3 }
 0x22e   : > { %v1414_v40 = vsel %vm7240_vm4, %v1391_v17, %v1392_v37  ;;  %v5338_v44 = vsel %vm7230_vm5, %v1342_v16, %v1343_v36 }
 0x22f   : > { %v1276_v45 = vpop.f32.mrf.mxu1  ;;  %v1424_v46 = vsel %vm5327_vm9, 0.0, %v1414_v40  ;;  %v1134_v40 = vadd.f32 %v1133_v59, %v1068_v58  ;;  %v1074_v59 = vpop.f32.mrf.mxu2 }
 0x230   : > { %v1312_v48 = vadd.f32 %v1276_v45, %v1125_v38  ;;  %4344 = vmatmul.msk.f32.gmra.mxu0 %vm7241_vm2, %v1424_v46  ;;  %v1447_v46 = vld [vmem:[#allocation2 + $0x38] sm:$0xff] }
 0x231   : > { %1627 = vmatpush.msra.mxu3 %v1447_v46  ;;  %v1446_v46 = vld [vmem:[#allocation2 + $0x30] sm:$0xff] }
 0x232   : > { %v1328_v49 = vmax.f32 %v1312_v48, 0.0 }
 0x233   : > { %1628 = vmatpush.msra.mxu3 %v1446_v46 }
 0x234   : > { %v1344_v52 = vrot.slane %v1328_v49, 7  ;;  %v1393_v54 = vrot.slane %v1328_v49, 1  ;;  %4314 = vmatmul.msk.f32.gmra.mxu2 %vm7241_vm2, %v1328_v49  ;;  %v5394_v49 = vadd.s32 64, %v5233_v27 }
 0x236   : > { %v1413_v60 = vsel %vm7240_vm4, %v1392_v37, %v1393_v54  ;;  %v5358_v63 = vsel %vm7230_vm5, %v1343_v36, %v1344_v52  ;;  %v7234_v36 = vand.u32 7, %v5374_v18 }
 0x237   : > { %v1279_v0 = vpop.f32.mrf.mxu1  ;;  %v1425_v4 = vsel %vm5347_vm10, 0.0, %v1413_v60  ;;  %v1139_v60 = vpop.f32.mrf.mxu3 }
 0x238   : > { %v1313_v9 = vadd.f32 %v1279_v0, %v1128_v56  ;;  %4345 = vmatmul.msk.f32.gmra.mxu0 %vm7241_vm2, %v1425_v4  ;;  %vm5387_vm12 = vcmp.eq.s32.totalorder %v7234_v36, 7  ;;  %v7233_v4 = vand.u32 7, %v5394_v49 }
 0x23a   : > { %v1329_v10 = vmax.f32 %v1313_v9, 0.0  ;;  %vm5407_vm13 = vcmp.eq.s32.totalorder %v7233_v4, 7 }
 0x23c   : > { %v1345_v12 = vrot.slane %v1329_v10, 7  ;;  %v1394_v13 = vrot.slane %v1329_v10, 1  ;;  %4315 = vmatmul.msk.f32.gmra.mxu2 %vm7241_vm2, %v1329_v10 }
 0x23e   : > { %v1412_v17 = vsel %vm7240_vm4, %v1393_v54, %v1394_v13  ;;  %v5378_v24 = vsel %vm7230_vm5, %v1344_v52, %v1345_v12 }
 0x23f   : > { %v1282_v25 = vpop.f32.mrf.mxu1  ;;  %v1426_v26 = vsel %vm5367_vm11, 0.0, %v1412_v17 }
 0x240   : > { %v1314_v31 = vadd.f32 %v1282_v25, %v1131_v14  ;;  %4346 = vmatmul.msk.f32.gmra.mxu0 %vm7241_vm2, %v1426_v26  ;;  %v1839_v14 = vld [vmem:[%s7215_s4] sm:$0xf]  ;;  %v5418_v25 = vadd.s32 72, %v5233_v27 }
 0x241   : > { %4356 = vmatpush.msk.msra.mxu1 %vm868_vm0, %v1839_v14  ;;  %v1444_v14 = vld [vmem:[#allocation2 + $0x20] sm:$0xff] }
 0x242   : > { %v1330_v32 = vmax.f32 %v1314_v31, 0.0  ;;  %4357 = vmatmul.msk.f32.vlgmr.msra.gmra.mxu1 %vm7239_vm1, %v4952_v1 }
 0x244   : > { %v1346_v37 = vrot.slane %v1330_v32, 7  ;;  %v1395_v38 = vrot.slane %v1330_v32, 1  ;;  %4316 = vmatmul.msk.f32.gmra.mxu2 %vm7241_vm2, %v1330_v32 }
 0x246   : > { %v1411_v48 = vsel %vm7240_vm4, %v1394_v13, %v1395_v38  ;;  %v5398_v52 = vsel %vm7230_vm5, %v1345_v12, %v1346_v37  ;;  %v1137_v13 = vadd.f32 %v1136_v28, %v1071_v20 }
 0x247   : > { %v1285_v54 = vpop.f32.mrf.mxu1  ;;  %v1427_v56 = vsel %vm5387_vm12, 0.0, %v1411_v48  ;;  %v1142_v48 = vpop.f32.mrf.mxu3 }
 0x248   : > { %v1315_v58 = vadd.f32 %v1285_v54, %v1134_v40  ;;  %4347 = vmatmul.msk.f32.gmra.mxu0 %vm7241_vm2, %v1427_v56  ;;  %v1077_v40 = vpop.f32.mrf.mxu2  ;;  %v7320_v56 = vmov 0 }
 0x24a   : > { %v1331_v0 = vmax.f32 %v1315_v58, 0.0  ;;  %v1445_v58 = vld [vmem:[#allocation2 + $0x28] sm:$0xff]  ;;  %4358 = vmatmul.msk.f32.gmra.mxu1 %vm7239_vm1, %v4964_v3 }
 0x24b   : > { %1629 = vmatpush.msra.mxu3 %v1445_v58  ;;  %v7322_v58 = vmov 0 }
 0x24c   : > { %v1347_v9 = vrot.slane %v1331_v0, 7  ;;  %v1396_v10 = vrot.slane %v1331_v0, 1  ;;  %4317 = vmatmul.msk.f32.gmra.mxu2 %vm7241_vm2, %v1331_v0 }
 0x24d   : > { %1630 = vmatpush.msra.mxu3 %v1444_v14  ;;  %v1440_v14 = vld [vmem:[#allocation2] sm:$0xff] }
 0x24e   : > { %v1410_v17 = vsel %vm7240_vm4, %v1395_v38, %v1396_v10  ;;  %v5424_v20 = vsel %vm7230_vm5, %v1346_v37, %v1347_v9  ;;  %v7229_v38 = vand.u32 7, %v5418_v25  ;;  %v1140_v37 = vadd.f32 %v1139_v60, %v1074_v59 }
 0x24f   : > { %v1288_v26 = vpop.f32.mrf.mxu1  ;;  %v1428_v28 = vsel %vm5407_vm13, 0.0, %v1410_v17 }
 0x250   : > { %v1316_v31 = vadd.f32 %v1288_v26, %v1137_v13  ;;  %4348 = vmatmul.msk.f32.gmra.mxu0 %vm7241_vm2, %v1428_v28  ;;  %vm5433_vm14 = vcmp.eq.s32.totalorder %v7229_v38, 7  ;;  %v5440_v13 = vadd.s32 80, %v5233_v27 }
 0x251   : > { %v7321_v56 = vsel %vm5433_vm14, 4294967295, %v7320_v56 }
 0x252   : > { %v1332_v32 = vmax.f32 %v1316_v31, 0.0  ;;  %v7227_v31 = vand.u32 7, %v5440_v13  ;;  %4359 = vmatmul.msk.f32.gmra.mxu1 %vm7239_vm1, %v4974_v5 }
 0x254   : > { %v1348_v54 = vrot.slane %v1332_v32, 7  ;;  %v1397_v1 = vrot.slane %v1332_v32, 1  ;;  %4318 = vmatmul.msk.f32.gmra.mxu2 %vm7241_vm2, %v1332_v32  ;;  %v1442_v32 = vld [vmem:[#allocation2 + $0x10] sm:$0xff]  ;;  %vm5455_vm15 = vcmp.eq.s32.totalorder %v7227_v31, 7 }
 0x255   : > { %v7323_v58 = vsel %vm5455_vm15, 4294967295, %v7322_v58 }
 0x256   : > { %v1409_v0 = vsel %vm7240_vm4, %v1396_v10, %v1397_v1  ;;  %v5446_v59 = vsel %vm7230_vm5, %v1347_v9, %v1348_v54  ;;  %v1443_v10 = vld [vmem:[#allocation2 + $0x18] sm:$0xff]  ;;  %v1143_v9 = vadd.f32 %v1142_v48, %v1077_v40 }
 0x257   : > { %v1291_v60 = vpop.f32.mrf.mxu1  ;;  %v1429_v17 = vsel %vm5433_vm14, 0.0, %v1409_v0  ;;  %1631 = vmatpush.msra.mxu3 %v1443_v10  ;;  %v1441_v0 = vld [vmem:[#allocation2 + $0x8] sm:$0xff]  ;;  %vm7343_vm14 = vcmask 523264  }
 0x258   : > { %v1317_v26 = vadd.f32 %v1291_v60, %v1140_v37  ;;  %4349 = vmatmul.msk.f32.gmra.mxu0 %vm7241_vm2, %v1429_v17  ;;  %v1080_v37 = vpop.f32.mrf.mxu2  ;;  %v1145_v60 = vpop.f32.mrf.mxu3 }
 0x259   : > { %1632 = vmatpush.msra.mxu3 %v1442_v32  ;;  %v1146_v5 = vadd.f32 %v1145_v60, %v1080_v37 }
 0x25a   : > { %v1333_v28 = vmax.f32 %v1317_v26, 0.0  ;;  %v5462_v26 = vadd.s32 88, %v5233_v27  ;;  %4360 = vmatmul.msk.f32.gmra.mxu1 %vm7239_vm1, %v4984_v7 }
 0x25b   : > { %1633 = vmatpush.msra.mxu3 %v1441_v0 }
 0x25c   : > { %v1349_v3 = vrot.slane %v1333_v28, 7  ;;  %v1398_v46 = vrot.slane %v1333_v28, 1  ;;  %4319 = vmatmul.msk.f32.gmra.mxu2 %vm7241_vm2, %v1333_v28 }
 0x25d   : > { %1634 = vmatpush.msra.mxu3 %v1440_v14 }
 0x25e   : > { %v1408_v17 = vsel %vm7240_vm4, %v1397_v1, %v1398_v46  ;;  %v5468_v40 = vsel %vm7230_vm5, %v1348_v54, %v1349_v3  ;;  %v7228_v1 = vand.u32 7, %v5462_v26  ;;  %v7324_v54 = vmov 0 }
 0x25f   : > { %v1294_v48 = vpop.f32.mrf.mxu1  ;;  %v1430_v10 = vsel %vm5455_vm15, 0.0, %v1408_v17  ;;  %v5484_v17 = vadd.s32 96, %v5233_v27 }
 0x260   : > { %v1318_v28 = vadd.f32 %v1294_v48, %v1143_v9  ;;  %4350 = vmatmul.msk.f32.gmra.mxu0 %vm7241_vm2, %v1430_v10  ;;  %vm5477_vm0 = vcmp.eq.s32.totalorder %v7228_v1, 7  ;;  %v1083_v9 = vpop.f32.mrf.mxu2  ;;  %v1148_v10 = vpop.f32.mrf.mxu3 }
 0x261   : > { %v7325_v54 = vsel %vm5477_vm0, 4294967295, %v7324_v54  ;;  %v1149_v7 = vadd.f32 %v1148_v10, %v1083_v9 }
 0x262   : > { %v1334_v32 = vmax.f32 %v1318_v28, 0.0 }
 0x264   : > { %v1350_v0 = vrot.slane %v1334_v32, 7  ;;  %v1399_v31 = vrot.slane %v1334_v32, 1  ;;  %4320 = vmatmul.msk.f32.gmra.mxu2 %vm7241_vm2, %v1334_v32  ;;  %v7232_v32 = vand.u32 7, %v5484_v17 }
 0x266   : > { %v1407_v14 = vsel %vm7240_vm4, %v1398_v46, %v1399_v31  ;;  %v5490_v37 = vsel %vm7230_vm5, %v1349_v3, %v1350_v0  ;;  %vm5499_vm5 = vcmp.eq.s32.totalorder %v7232_v32, 7  ;;  %v7326_v3 = vmov 0 }
 0x267   : > { %v1297_v60 = vpop.f32.mrf.mxu1  ;;  %v1431_v48 = vsel %vm5477_vm0, 0.0, %v1407_v14  ;;  %v7327_v3 = vsel %vm5499_vm5, 4294967295, %v7326_v3  ;;  %vm7328_vm0 = vcmp.lt.s32.totalorder %v5233_v27, 1 }
 0x268   : > { %v1319_v28 = vadd.f32 %v1297_v60, %v1146_v5  ;;  %4351 = vmatmul.msk.f32.gmra.mxu0 %vm7241_vm2, %v1431_v48  ;;  %v5506_v5 = vadd.s32 104, %v5233_v27  ;;  %v4648_v60 = vld [vmem:[%s4946_s26 + $0x20] sm:$0xff] }
 0x269   : > { %4361 = vmatmul.msk.f32.gmra.mxu1 %vm7239_vm1, %v4648_v60 }
 0x26a   : > { %v1335_v46 = vmax.f32 %v1319_v28, 0.0  ;;  %v7237_v4 = vand.u32 7, %v5506_v5 }
 0x26c   : > { %v1351_v1 = vrot.slane %v1335_v46, 7  ;;  %v1400_v38 = vrot.slane %v1335_v46, 1  ;;  %4321 = vmatmul.msk.f32.gmra.mxu2 %vm7241_vm2, %v1335_v46  ;;  %v1086_v46 = vpop.f32.mrf.mxu2 }
 0x26e   : > { %v1406_v14 = vsel %vm7240_vm4, %v1399_v31, %v1400_v38  ;;  %v5512_v48 = vsel %vm7328_vm0, %v1350_v0, %v1351_v1  ;;  %v1151_v31 = vpop.f32.mrf.mxu3  ;;  %vm5521_vm0 = vcmp.eq.s32.totalorder %v7237_v4, 7  ;;  %v7329_v0 = vmov 0 }
 0x26f   : > { %v1300_v9 = vpop.f32.mrf.mxu1  ;;  %v1432_v10 = vsel %vm5499_vm5, 0.0, %v1406_v14  ;;  %v1152_v60 = vadd.f32 %v1151_v31, %v1086_v46  ;;  %v7330_v0 = vsel %vm5521_vm0, 4294967295, %v7329_v0  ;;  %v5528_v14 = vadd.s32 112, %v5233_v27 }
 0x270   : > { %v1320_v28 = vadd.f32 %v1300_v9, %v1149_v7  ;;  %4352 = vmatmul.msk.f32.gmra.mxu0 %vm7241_vm2, %v1432_v10  ;;  %7331 = vst [vmem:[#allocation9_spill] sm:$0xff] %v7330_v0  ;;  %v4649_v9 = vld [vmem:[%s4946_s26 + $0x28] sm:$0xff]  ;;  %vm7332_vm5 = vcmp.lt.s32.totalorder %v5233_v27, 1  ;;  %v5541_v4 = vadd.s32 120, %v5233_v27 }
 0x271   : > { %4362 = vmatmul.msk.f32.gmra.mxu1 %vm7239_vm1, %v4649_v9 }
 0x272   : > { %v1336_v32 = vmax.f32 %v1320_v28, 0.0 }
 0x274   : > { %v1352_v36 = vrot.slane %v1336_v32, 7  ;;  %v1401_v11 = vrot.slane %v1336_v32, 1  ;;  %4322 = vmatmul.msk.f32.gmra.mxu2 %vm7241_vm2, %v1336_v32 }
 0x276   : > { %v1405_v7 = vsel %vm7240_vm4, %v1400_v38, %v1401_v11  ;;  %v5534_v32 = vsel %vm7332_vm5, %v1351_v1, %v1352_v36  ;;  %v664_v38 = vand.u32 7, %v5528_v14  ;;  %vm5546_vm5 = vcmp.eq.s32.totalorder %v566_v29, 0 }
 0x277   : > { %v1303_v10 = vpop.f32.mrf.mxu1  ;;  %v1433_v28 = vsel %vm5521_vm0, 0.0, %v1405_v7  ;;  %v7333_v1 = vmov 0  ;;  %vm7339_vm4 = vcmp.lt.s32.totalorder %v5233_v27, 1  ;;  %vm7341_vm0 = vcmask 31744  }
 0x278   : > { %v1321_v46 = vadd.f32 %v1303_v10, %v1152_v60  ;;  %4353 = vmatmul.msk.f32.gmra.mxu0 %vm7241_vm2, %v1433_v28  ;;  %v7334_v1 = vsel %vm5546_vm5, 4294967295, %v7333_v1  ;;  %vm5552_vm1 = vcmp.eq.s32.totalorder %v664_v38, 7  ;;  %v7336_v60 = vmov 0  ;;  %v4650_v28 = vld [vmem:[%s4946_s26 + $0x30] sm:$0xff]  ;;  %vm7342_vm15 = vmmov %vm7339_vm4 }
 0x279   : > { %7335 = vst [vmem:[#allocation10_spill] sm:$0xff] %v7334_v1  ;;  %v7337_v60 = vsel %vm5552_vm1, 4294967295, %v7336_v60  ;;  %4363 = vmatmul.msk.f32.gmra.mxu1 %vm7341_vm0, %v4650_v28  ;;  %v7375_v28 = vmov 0 }
 0x27a   : > { %v1337_v31 = vmax.f32 %v1321_v46, 0.0  ;;  %7338 = vst [vmem:[#allocation11_spill] sm:$0xff] %v7337_v60 }
 0x27c   : > { %v1353_v50 = vrot.slane %v1337_v31, 7  ;;  %v1402_v9 = vrot.slane %v1337_v31, 1  ;;  %4323 = vmatmul.msk.f32.gmra.mxu2 %vm7241_vm2, %v1337_v31  ;;  %vm7340_vm2 = vcmp.lt.s32.totalorder %v5233_v27, 7 }
 0x27e   : > { %v1370_v7 = vsel %vm7339_vm4, %v1353_v50, %v1338_v34  ;;  %v1404_v10 = vsel %vm7340_vm2, %v1401_v11, %v1402_v9  ;;  %v5566_v29 = vsel %vm7342_vm15, %v1352_v36, %v1353_v50  ;;  %vm7344_vm4 = vmmov %vm7343_vm14  ;;  %v671_v34 = vand.u32 7, %v5541_v4 }
 0x27f   : > { %v1371_v46 = vsel %vm5546_vm5, 0.0, %v1370_v7  ;;  %v1434_v31 = vsel %vm5552_vm1, 0.0, %v1404_v10  ;;  %vm5577_vm2 = vcmp.eq.s32.totalorder %v573_v47, 0  ;;  %v7345_v11 = vmov 0  ;;  %v4651_v7 = vld [vmem:[%s4946_s26 + $0x38] sm:$0xff]  ;;  %vm7352_vm1 = vmmov %vm7344_vm4 }
 0x280   : > { %4324 = vmatmul.msk.f32.vlgmr.msra.gmra.mxu3 %vm7343_vm14, %v1371_v46  ;;  %4354 = vmatmul.msk.f32.gmra.mxu0 %vm7344_vm4, %v1434_v31  ;;  %v7346_v11 = vsel %vm5577_vm2, 4294967295, %v7345_v11  ;;  %vm5583_vm15 = vcmp.eq.s32.totalorder %v671_v34, 7  ;;  %v7348_v50 = vmov 0  ;;  %vm7351_vm14 = vcmp.lt.s32.totalorder %v5233_v27, 7 }
 0x281   : > { %7347 = vst [vmem:[#allocation12_spill] sm:$0xff] %v7346_v11  ;;  %v7349_v50 = vsel %vm5583_vm15, 4294967295, %v7348_v50  ;;  %v1419_v36 = vsel %vm7351_vm14, %v1402_v9, %v1387_v35  ;;  %4364 = vmatmul.msk.f32.gmra.mxu1 %vm7341_vm0, %v4651_v7  ;;  %v1372_v41 = vsel %vm5577_vm2, 0.0, %v5258_v42  ;;  %vm5602_vm5 = vcmp.eq.s32.totalorder %v580_v61, 0  ;;  %v4652_v35 = vld [vmem:[%s4946_s26 + $0x40] sm:$0xff]  ;;  %vm7356_vm14 = vmmov %vm7341_vm0 }
 0x282   : > { %7350 = vst [vmem:[#allocation13_spill] sm:$0xff] %v7349_v50  ;;  %v1435_v47 = vsel %vm5583_vm15, 0.0, %v1419_v36  ;;  %v7354_v23 = vsel %vm5602_vm5, 4294967295, %v7353_v23  ;;  %v1373_v42 = vsel %vm5602_vm5, 0.0, %v5278_v55  ;;  %vm7357_vm0 = vmmov %vm7352_vm1  ;;  %v7358_v9 = vmov 0 }
 0x283   : > { %7355 = vst [vmem:[#allocation14_spill] sm:$0xff] %v7354_v23  ;;  %vm5626_vm5 = vcmp.eq.s32.totalorder %v594_v30, 0  ;;  %v7363_v55 = vmov 0  ;;  %v7369_v10 = vmov 0  ;;  %v7381_v31 = vmov 0 }
 0x284   : > { %v7364_v55 = vsel %vm5626_vm5, 4294967295, %v7363_v55  ;;  %v7386_v7 = vand.u32 7, %v5394_v49  ;;  %v4659_v49 = vld [vmem:[%s4946_s26 + $0x78] sm:$0xff] }
 0x285   : > { %7365 = vst [vmem:[#allocation16_spill] sm:$0xff] %v7364_v55 }
 0x288   : > { %4325 = vmatmul.msk.f32.gmra.mxu3 %vm7344_vm4, %v1372_v41  ;;  %4355 = vmatmul.msk.f32.gmra.mxu0 %vm7352_vm1, %v1435_v47  ;;  %vm5614_vm4 = vcmp.eq.s32.totalorder %v587_v15, 0  ;;  %vm7361_vm1 = vmmov %vm7356_vm14  ;;  %v1375_v15 = vsel %vm5626_vm5, 0.0, %v5318_v22  ;;  %v7374_v22 = vand.u32 7, %v5354_v62  ;;  %v4657_v62 = vld [vmem:[%s4946_s26 + $0x68] sm:$0xff]  ;;  %v7392_v47 = vand.u32 7, %v5418_v25 }
 0x289   : > { %4365 = vmatmul.msk.f32.gmra.mxu1 %vm7356_vm14, %v4652_v35  ;;  %v7359_v9 = vsel %vm5614_vm4, 4294967295, %v7358_v9  ;;  %v1374_v61 = vsel %vm5614_vm4, 0.0, %v5298_v8  ;;  %vm7362_vm14 = vmmov %vm7357_vm0  ;;  %v7368_v8 = vand.u32 7, %v5334_v43  ;;  %v4656_v43 = vld [vmem:[%s4946_s26 + $0x60] sm:$0xff] }
 0x28a   : > { %7360 = vst [vmem:[#allocation15_spill] sm:$0xff] %v7359_v9  ;;  %vm5650_vm5 = vcmp.eq.s32.totalorder %v7374_v22, 0 }
 0x28b   : > { %vm5638_vm4 = vcmp.eq.s32.totalorder %v7368_v8, 0  ;;  %v7376_v28 = vsel %vm5650_vm5, 4294967295, %v7375_v28  ;;  %v1377_v46 = vsel %vm5650_vm5, 0.0, %v5358_v63  ;;  %vm5674_vm5 = vcmp.eq.s32.totalorder %v7386_v7, 0 }
 0x28c   : > { %v7370_v10 = vsel %vm5638_vm4, 4294967295, %v7369_v10  ;;  %v1376_v30 = vsel %vm5638_vm4, 0.0, %v5338_v44  ;;  %7377 = vst [vmem:[#allocation18_spill] sm:$0xff] %v7376_v28  ;;  %v7380_v44 = vand.u32 7, %v5374_v18  ;;  %v7387_v63 = vmov 0  ;;  %v4658_v18 = vld [vmem:[%s4946_s26 + $0x70] sm:$0xff] }
 0x28d   : > { %7371 = vst [vmem:[#allocation17_spill] sm:$0xff] %v7370_v10  ;;  %v7388_v63 = vsel %vm5674_vm5, 4294967295, %v7387_v63  ;;  %v1379_v41 = vsel %vm5674_vm5, 0.0, %v5398_v52  ;;  %v7399_v52 = vmov 0  ;;  %v1758_v8 = vpop.f32.mrf.mxu0 }
 0x28e   : > { %vm5662_vm4 = vcmp.eq.s32.totalorder %v7380_v44, 0  ;;  %7389 = vst [vmem:[#allocation20_spill] sm:$0xff] %v7388_v63 }
 0x28f   : > { %v7382_v31 = vsel %vm5662_vm4, 4294967295, %v7381_v31  ;;  %v1378_v36 = vsel %vm5662_vm4, 0.0, %v5378_v24  ;;  %vm5686_vm4 = vcmp.eq.s32.totalorder %v7392_v47, 0  ;;  %v7393_v24 = vmov 0 }
 0x290   : > { %4326 = vmatmul.msk.f32.gmra.mxu3 %vm7357_vm0, %v1373_v42  ;;  %vm7366_vm0 = vmmov %vm7361_vm1  ;;  %7383 = vst [vmem:[#allocation19_spill] sm:$0xff] %v7382_v31  ;;  %v7394_v24 = vsel %vm5686_vm4, 4294967295, %v7393_v24  ;;  %v1380_v35 = vsel %vm5686_vm4, 0.0, %v5424_v20  ;;  %v7398_v42 = vand.u32 7, %v5440_v13  ;;  %v7407_v13 = vand.u32 7, %v5484_v17 }
 0x291   : > { %4366 = vmatmul.msk.f32.gmra.mxu1 %vm7361_vm1, %v4653_v53  ;;  %vm7367_vm1 = vmmov %vm7362_vm14  ;;  %7395 = vst [vmem:[#allocation21_spill] sm:$0xff] %v7394_v24  ;;  %v7402_v53 = vand.u32 7, %v5462_v26  ;;  %v7411_v26 = vand.u32 7, %v5506_v5  ;;  %v7416_v17 = vmov 0  ;;  %v7419_v5 = vmov 0 }
 0x292   : > { %vm5698_vm5 = vcmp.eq.s32.totalorder %v7398_v42, 0  ;;  %vm5718_vm4 = vcmp.eq.s32.totalorder %v7407_v13, 0 }
 0x293   : > { %v7400_v52 = vsel %vm5698_vm5, 4294967295, %v7399_v52  ;;  %v1381_v25 = vsel %vm5698_vm5, 0.0, %v5446_v59  ;;  %v1383_v59 = vsel %vm5718_vm4, 0.0, %v5490_v37  ;;  %vm5728_vm5 = vcmp.eq.s32.totalorder %v7411_v26, 0 }
 0x294   : > { %7401 = vst [vmem:[#allocation22_spill] sm:$0xff] %v7400_v52 }
 0x295   : > { %v1761_v4 = vpop.f32.mrf.mxu0 }
 0x298   : > { %4327 = vmatmul.msk.f32.gmra.mxu3 %vm7362_vm14, %v1374_v61  ;;  %vm7372_vm14 = vmmov %vm7366_vm0  ;;  %v7403_v61 = vmov 0 }
 0x299   : > { %4367 = vmatmul.msk.f32.gmra.mxu1 %vm7366_vm0, %v4654_v6  ;;  %vm7373_vm0 = vmmov %vm7367_vm1  ;;  %v7408_v6 = vmov 0 }
 0x29a   : > { %v7409_v6 = vsel %vm5718_vm4, 4294967295, %v7408_v6  ;;  %vm5748_vm4 = vcmp.eq.s32.totalorder %v671_v34, 0 }
 0x29b   : > { %7410 = vst [vmem:[#allocation24_spill] sm:$0xff] %v7409_v6  ;;  %v7420_v5 = vsel %vm5748_vm4, 4294967295, %v7419_v5  ;;  %v1386_v14 = vsel %vm5748_vm4, 0.0, %v5566_v29 }
 0x29c   : > { %7421 = vst [vmem:[#allocation27_spill] sm:$0xff] %v7420_v5 }
 0x2a0   : > { %4328 = vmatmul.msk.f32.gmra.mxu3 %vm7367_vm1, %v1375_v15  ;;  %vm7378_vm1 = vmmov %vm7372_vm14  ;;  %v7412_v15 = vmov 0 }
 0x2a1   : > { %4368 = vmatmul.msk.f32.gmra.mxu1 %vm7372_vm14, %v4655_v21  ;;  %vm7379_vm14 = vmmov %vm7373_vm0  ;;  %v7413_v15 = vsel %vm5728_vm5, 4294967295, %v7412_v15 }
 0x2a2   : > { %7414 = vst [vmem:[#allocation25_spill] sm:$0xff] %v7413_v15 }
 0x2a8   : > { %4329 = vmatmul.msk.f32.gmra.mxu3 %vm7373_vm0, %v1376_v30  ;;  %vm7384_vm0 = vmmov %vm7378_vm1 }
 0x2a9   : > { %4369 = vmatmul.msk.f32.gmra.mxu1 %vm7378_vm1, %v4656_v43  ;;  %vm7385_vm1 = vmmov %vm7379_vm14  ;;  %v5764_v43 = vld [vmem:[%s7216_s5] ss:$0 sm:$0xff] }
 0x2b0   : > { %4330 = vmatmul.msk.f32.gmra.mxu3 %vm7379_vm14, %v1377_v46  ;;  %vm7390_vm14 = vmmov %vm7384_vm0 }
 0x2b1   : > { %4370 = vmatmul.msk.f32.gmra.mxu1 %vm7384_vm0, %v4657_v62  ;;  %vm7391_vm0 = vmmov %vm7385_vm1 }
 0x2b2   : > { %vm7439_vm4 = vmmov %vm7391_vm0 }
 0x2b8   : > { %4331 = vmatmul.msk.f32.gmra.mxu3 %vm7385_vm1, %v1378_v36  ;;  %vm7396_vm1 = vmmov %vm7390_vm14 }
 0x2b9   : > { %4371 = vmatmul.msk.f32.gmra.mxu1 %vm7390_vm14, %v4658_v18  ;;  %vm7397_vm14 = vmmov %vm7391_vm0 }
 0x2c0   : > { %4332 = vmatmul.msk.f32.gmra.mxu3 %vm7391_vm0, %v1379_v41 }
 0x2c1   : > { %4372 = vmatmul.msk.f32.gmra.mxu1 %vm7396_vm1, %v4659_v49  ;;  %vm5708_vm1 = vcmp.eq.s32.totalorder %v7402_v53, 0  ;;  %v1764_v49 = vpop.f32.mrf.mxu0 }
 0x2c2   : > { %v7404_v61 = vsel %vm5708_vm1, 4294967295, %v7403_v61  ;;  %v1382_v20 = vsel %vm5708_vm1, 0.0, %v5468_v40  ;;  %v1384_v40 = vsel %vm5728_vm5, 0.0, %v5512_v48  ;;  %vm5738_vm1 = vcmp.eq.s32.totalorder %v664_v38, 0  ;;  %v1523_v48 = vpop.f32.mrf.mxu2  ;;  %v1861_v38 = vpop.f32.mrf.mxu1 }
 0x2c3   : > { %7405 = vst [vmem:[#allocation23_spill] sm:$0xff] %v7404_v61  ;;  %v7417_v17 = vsel %vm5738_vm1, 4294967295, %v7416_v17  ;;  %v1385_v37 = vsel %vm5738_vm1, 0.0, %v5534_v32  ;;  %v5759_v32 = vld [vmem:[%s7216_s5 + $0x1] ss:$0 sm:$0xff]  ;;  %vm7443_vm1 = vcmask 523264  }
 0x2c4   : > { %7418 = vst [vmem:[#allocation26_spill] sm:$0xff] %v7417_v17  ;;  %v1862_v46 = vadd.f32 %v5759_v32, %v1861_v38  ;;  %vm7444_vm5 = vmmov %vm7443_vm1 }
 0x2c8   : > { %4333 = vmatmul.msk.f32.gmra.mxu3 %vm7397_vm14, %v1380_v35  ;;  %vm7406_vm14 = vmmov %vm7391_vm0 }
 0x2ca   : > { %v1526_v21 = vpop.f32.mrf.mxu2  ;;  %v1864_v30 = vpop.f32.mrf.mxu1 }
 0x2cb   : > { %v1865_v42 = vadd.f32 %v5759_v32, %v1864_v30 }
 0x2d0   : > { %4334 = vmatmul.msk.f32.gmra.mxu3 %vm7391_vm0, %v1381_v25 }
 0x2d2   : > { %v1529_v62 = vpop.f32.mrf.mxu2  ;;  %v1867_v18 = vpop.f32.mrf.mxu1 }
 0x2d8   : > { %4335 = vmatmul.msk.f32.gmra.mxu3 %vm7406_vm14, %v1382_v20  ;;  %vm7415_vm14 = vmmov %vm7391_vm0 }
 0x2e0   : > { %4336 = vmatmul.msk.f32.gmra.mxu3 %vm7391_vm0, %v1383_v59  ;;  %v1532_v59 = vpop.f32.mrf.mxu2 }
 0x2e8   : > { %4337 = vmatmul.msk.f32.gmra.mxu3 %vm7415_vm14, %v1384_v40  ;;  %vm7422_vm14 = vmmov %vm7391_vm0 }
 0x2f0   : > { %4338 = vmatmul.msk.f32.gmra.mxu3 %vm7391_vm0, %v1385_v37  ;;  %v1870_v37 = vpop.f32.mrf.mxu1 }
 0x2f8   : > { %4339 = vmatmul.msk.f32.gmra.mxu3 %vm7422_vm14, %v1386_v14  ;;  %v1868_v14 = vadd.f32 %v5759_v32, %v1867_v18  ;;  %vm7423_vm14 = vmmov %vm7391_vm0 }
 0x303   : > { %v1636_v34 = vpop.f32.mrf.mxu3 }
 0x304   : > { %v1637_v22 = vadd.f32 %v1636_v34, %v1523_v48 }
 0x306   : > { %v1806_v29 = vadd.f32 %v1758_v8, %v1637_v22  ;;  %v1767_v8 = vpop.f32.mrf.mxu0 }
 0x308   : > { %v1823_v44 = vadd.f32 %v5764_v43, %v1806_v29  ;;  %v1535_v29 = vpop.f32.mrf.mxu2 }
 0x30a   : > { %v5768_v36 = vadd.f32 %v1862_v46, %v1823_v44  ;;  %v1871_v44 = vadd.f32 %v5759_v32, %v1870_v37 }
 0x30b   : > { %v1639_v7 = vpop.f32.mrf.mxu3 }
 0x30c   : > { %v1640_v41 = vadd.f32 %v1639_v7, %v1526_v21  ;;  %v1925_v47 = vmax.f32 %v5768_v36, 0.0  ;;  %v1873_v7 = vpop.f32.mrf.mxu1 }
 0x30e   : > { %v1807_v35 = vadd.f32 %v1761_v4, %v1640_v41  ;;  %v1941_v25 = vsel %vm7391_vm0, %v1925_v47, 0.0  ;;  %v1770_v41 = vpop.f32.mrf.mxu0 }
 0x30f   : > { %1942 = vadd.xlane.f32.xlu0 %v1941_v25 }
 0x310   : > { %v1824_v53 = vadd.f32 %v5764_v43, %v1807_v35 }
 0x312   : > { %v5776_v20 = vadd.f32 %v1865_v42, %v1824_v53 }
 0x313   : > { %v1642_v13 = vpop.f32.mrf.mxu3 }
 0x314   : > { %v1643_v26 = vadd.f32 %v1642_v13, %v1529_v62  ;;  %v7263_v40 = vmax.f32 %v5776_v20, 0.0  ;;  %v1874_v13 = vadd.f32 %v5759_v32, %v1873_v7 }
 0x316   : > { %v1808_v48 = vadd.f32 %v1764_v49, %v1643_v26  ;;  %v1944_v38 = vsel %vm7423_vm14, %v7263_v40, 0.0  ;;  %vm7424_vm14 = vmmov %vm7391_vm0  ;;  %v1538_v26 = vpop.f32.mrf.mxu2 }
 0x317   : > { %1945 = vadd.xlane.f32.xlu0 %v1944_v38  ;;  %v1773_v38 = vpop.f32.mrf.mxu0 }
 0x318   : > { %v1825_v21 = vadd.f32 %v5764_v43, %v1808_v48  ;;  %v1876_v48 = vpop.f32.mrf.mxu1 }
 0x31a   : > { %v5784_v30 = vadd.f32 %v1868_v14, %v1825_v21 }
 0x31b   : > { %v1645_v4 = vpop.f32.mrf.mxu3 }
 0x31c   : > { %v1646_v34 = vadd.f32 %v1645_v4, %v1532_v59  ;;  %v7262_v22 = vmax.f32 %v5784_v30, 0.0 }
 0x31e   : > { %v1809_v46 = vadd.f32 %v1767_v8, %v1646_v34  ;;  %v1947_v62 = vsel %vm7391_vm0, %v7262_v22, 0.0 }
 0x31f   : > { %1948 = vadd.xlane.f32.xlu1 %v1947_v62  ;;  %v1541_v62 = vpop.f32.mrf.mxu2 }
 0x320   : > { %v1826_v18 = vadd.f32 %v5764_v43, %v1809_v46 }
 0x322   : > { %v5792_v49 = vadd.f32 %v1871_v44, %v1826_v18 }
 0x323   : > { %v1648_v35 = vpop.f32.mrf.mxu3 }
 0x324   : > { %v1649_v42 = vadd.f32 %v1648_v35, %v1535_v29  ;;  %v7261_v25 = vmax.f32 %v5792_v49, 0.0  ;;  %v1877_v29 = vadd.f32 %v5759_v32, %v1876_v48 }
 0x326   : > { %v1810_v53 = vadd.f32 %v1770_v41, %v1649_v42  ;;  %v1950_v59 = vsel %vm7424_vm14, %v7261_v25, 0.0  ;;  %v1879_v41 = vpop.f32.mrf.mxu1  ;;  %vm7425_vm14 = vmmov %vm7391_vm0 }
 0x327   : > { %1951 = vadd.xlane.f32.xlu1 %v1950_v59  ;;  %v1880_v59 = vadd.f32 %v5759_v32, %v1879_v41 }
 0x328   : > { %v1827_v37 = vadd.f32 %v5764_v43, %v1810_v53  ;;  %v1776_v53 = vpop.f32.mrf.mxu0 }
 0x32a   : > { %v5800_v14 = vadd.f32 %v1874_v13, %v1827_v37 }
 0x32b   : > { %v1651_v8 = vpop.f32.mrf.mxu3 }
 0x32c   : > { %v1652_v21 = vadd.f32 %v1651_v8, %v1538_v26  ;;  %v7259_v4 = vmax.f32 %v5800_v14, 0.0 }
 0x32e   : > { %v1811_v34 = vadd.f32 %v1773_v38, %v1652_v21  ;;  %v1953_v46 = vsel %vm7391_vm0, %v7259_v4, 0.0  ;;  %v4819_v21 = vmov 64.0   ;;  %v1882_v41 = vpop.f32.mrf.mxu1 }
 0x32f   : > { %1954 = vadd.xlane.f32.xlu2 %v1953_v46  ;;  %4582 = vrcp.f32 %v4819_v21  ;;  %v1544_v46 = vpop.f32.mrf.mxu2  ;;  %v1883_v40 = vadd.f32 %v5759_v32, %v1882_v41 }
 0x330   : > { %v1828_v44 = vadd.f32 %v5764_v43, %v1811_v34 }
 0x332   : > { %v5808_v7 = vadd.f32 %v1877_v29, %v1828_v44 }
 0x333   : > { %v1654_v18 = vpop.f32.mrf.mxu3 }
 0x334   : > { %v1655_v35 = vadd.f32 %v1654_v18, %v1541_v62  ;;  %v7258_v42 = vmax.f32 %v5808_v7, 0.0  ;;  %v1779_v62 = vpop.f32.mrf.mxu0 }
 0x335   : > { %v4583_v34 = vpop.eup %4582 }
 0x336   : > { %v1812_v13 = vadd.f32 %v1776_v53, %v1655_v35  ;;  %v1956_v26 = vsel %vm7425_vm14, %v7258_v42, 0.0  ;;  %v1990_v44 = vmul.f32 64.0, %v4583_v34  ;;  %vm1994_vm14 = vweird.f32 %v4583_v34  ;;  %v1885_v42 = vpop.f32.mrf.mxu1 }
 0x337   : > { %1957 = vadd.xlane.f32.xlu2 %v1956_v26  ;;  %v1886_v36 = vadd.f32 %v5759_v32, %v1885_v42 }
 0x338   : > { %v1829_v37 = vadd.f32 %v5764_v43, %v1812_v13  ;;  %v1991_v18 = vsub.f32 1.0, %v1990_v44  ;;  %v1547_v13 = vpop.f32.mrf.mxu2 }
 0x33a   : > { %v5816_v48 = vadd.f32 %v1880_v59, %v1829_v37  ;;  %v1992_v53 = vmul.f32 %v4583_v34, %v1991_v18 }
 0x33b   : > { %v1657_v29 = vpop.f32.mrf.mxu3 }
 0x33c   : > { %v7260_v38 = vmax.f32 %v5816_v48, 0.0  ;;  %v1993_v59 = vadd.f32 %v4583_v34, %v1992_v53  ;;  %v1658_v26 = vadd.f32 %v1657_v29, %v1544_v46  ;;  %v1782_v37 = vpop.f32.mrf.mxu0 }
 0x33e   : > { %v1959_v8 = vsel %vm7391_vm0, %v7260_v38, 0.0  ;;  %v5822_v4 = vsel %vm1994_vm14, %v4583_v34, %v1993_v59  ;;  %vm7428_vm14 = vmmov %vm7391_vm0 }
 0x33f   : > { %1960 = vadd.xlane.f32.xlu1 %v1959_v8  ;;  %7426 = vst [vmem:[#allocation28_spill] sm:$0xff] %v5822_v4  ;;  %v1813_v8 = vadd.f32 %v1779_v62, %v1658_v26  ;;  %v1888_v26 = vpop.f32.mrf.mxu1 }
 0x340   : > { %v1550_v22 = vpop.f32.mrf.mxu2 }
 0x341   : > { %v1830_v29 = vadd.f32 %v5764_v43, %v1813_v8 }
 0x343   : > { %v1660_v35 = vpop.f32.mrf.mxu3  ;;  %v5834_v59 = vadd.f32 %v1883_v40, %v1830_v29 }
 0x344   : > { %v1661_v44 = vadd.f32 %v1660_v35, %v1547_v13  ;;  %v1785_v34 = vpop.f32.mrf.mxu0  ;;  %v7427_v35 = vmax.f32 %v5776_v20, 0.0 }
 0x345   : > { %v7264_v8 = vmax.f32 %v5834_v59, 0.0 }
 0x346   : > { %v1814_v53 = vadd.f32 %v1782_v37, %v1661_v44 }
 0x348   : > { %v1831_v37 = vadd.f32 %v5764_v43, %v1814_v53  ;;  %v1553_v44 = vpop.f32.mrf.mxu2  ;;  %v1889_v53 = vadd.f32 %v5759_v32, %v1888_v26 }
 0x34b   : > { %v1663_v38 = vpop.f32.mrf.mxu3 }
 0x34c   : > { %v1788_v20 = vpop.f32.mrf.mxu0 }
 0x382   : > { %v1943_v21 = vpop.xlane.xlu0 %1942 }
 0x383   : > { %v1996_v25 = vmul.f32 %v5822_v4, %v1943_v21 }
 0x385   : > { %v5828_v18 = vsub.f32 %v1925_v47, %v1996_v25  ;;  %v1666_v47 = vpop.f32.mrf.mxu3  ;;  %v1664_v25 = vadd.f32 %v1663_v38, %v1550_v22  ;;  %v5850_v22 = vadd.f32 %v1886_v36, %v1831_v37 }
 0x387   : > { %v2028_v46 = vmul.f32 %v5828_v18, %v5828_v18  ;;  %v1815_v29 = vadd.f32 %v1785_v34, %v1664_v25  ;;  %v7429_v34 = vmax.f32 %v5784_v30, 0.0 }
 0x389   : > { %v2044_v62 = vsel %vm7391_vm0, %v2028_v46, 0.0  ;;  %v1962_v46 = vsel %vm7428_vm14, %v7264_v8, 0.0  ;;  %vm7430_vm14 = vmmov %vm7391_vm0  ;;  %v7431_v8 = vmax.f32 %v5792_v49, 0.0 }
 0x38a   : > { %2045 = vadd.xlane.f32.xlu0 %v2044_v62  ;;  %v1946_v21 = vpop.xlane.xlu0 %1945 }
 0x38b   : > { %v1997_v41 = vmul.f32 %v5822_v4, %v1946_v21  ;;  %v1891_v21 = vpop.f32.mrf.mxu1 }
 0x38d   : > { %v5840_v13 = vsub.f32 %v7427_v35, %v1997_v41  ;;  %v1667_v41 = vadd.f32 %v1666_v47, %v1553_v44  ;;  %v7265_v35 = vmax.f32 %v5850_v22, 0.0  ;;  %v1669_v36 = vpop.f32.mrf.mxu3 }
 0x38f   : > { %v2029_v40 = vmul.f32 %v5840_v13, %v5840_v13  ;;  %v1965_v26 = vsel %vm7391_vm0, %v7265_v35, 0.0 }
 0x391   : > { %v2047_v42 = vsel %vm7391_vm0, %v2029_v40, 0.0  ;;  %v1832_v40 = vadd.f32 %v5764_v43, %v1815_v29  ;;  %v1791_v29 = vpop.f32.mrf.mxu0 }
 0x392   : > { %v1949_v38 = vpop.xlane.xlu1 %1948  ;;  %1963 = vadd.xlane.f32.xlu0 %v1962_v46  ;;  %2048 = vadd.xlane.f32.xlu2 %v2047_v42  ;;  %v1556_v46 = vpop.f32.mrf.mxu2  ;;  %v1816_v42 = vadd.f32 %v1788_v20, %v1667_v41 }
 0x393   : > { %v1998_v62 = vmul.f32 %v5822_v4, %v1949_v38  ;;  %v5866_v47 = vadd.f32 %v1889_v53, %v1832_v40  ;;  %v1894_v35 = vpop.f32.mrf.mxu1 }
 0x395   : > { %v5856_v25 = vsub.f32 %v7429_v34, %v1998_v62  ;;  %v1892_v62 = vadd.f32 %v5759_v32, %v1891_v21  ;;  %v1670_v34 = vadd.f32 %v1669_v36, %v1556_v46  ;;  %v7266_v41 = vmax.f32 %v5866_v47, 0.0  ;;  %v1672_v40 = vpop.f32.mrf.mxu3 }
 0x397   : > { %v2030_v37 = vmul.f32 %v5856_v25, %v5856_v25 }
 0x399   : > { %v2050_v38 = vsel %vm7430_vm14, %v2030_v37, 0.0  ;;  %v1833_v37 = vadd.f32 %v5764_v43, %v1816_v42  ;;  %vm7432_vm14 = vmmov %vm7391_vm0  ;;  %v1895_v42 = vadd.f32 %v5759_v32, %v1894_v35 }
 0x39a   : > { %2051 = vadd.xlane.f32.xlu1 %v2050_v38  ;;  %v1952_v30 = vpop.xlane.xlu1 %1951  ;;  %1966 = vadd.xlane.f32.xlu2 %v1965_v26  ;;  %v1817_v38 = vadd.f32 %v1791_v29, %v1670_v34  ;;  %v1968_v26 = vsel %vm7432_vm14, %v7266_v41, 0.0  ;;  %v1559_v49 = vpop.f32.mrf.mxu2  ;;  %vm7434_vm14 = vmmov %vm7391_vm0 }
 0x39b   : > { %v1999_v44 = vmul.f32 %v5822_v4, %v1952_v30  ;;  %v5882_v36 = vadd.f32 %v1892_v62, %v1833_v37  ;;  %v1673_v30 = vadd.f32 %v1672_v40, %v1559_v49  ;;  %v1897_v37 = vpop.f32.mrf.mxu1 }
 0x39c   : > { %v1834_v41 = vadd.f32 %v5764_v43, %v1817_v38 }
 0x39d   : > { %v5872_v20 = vsub.f32 %v7431_v8, %v1999_v44  ;;  %v7433_v44 = vmax.f32 %v5800_v14, 0.0  ;;  %v7267_v34 = vmax.f32 %v5882_v36, 0.0  ;;  %v1675_v14 = vpop.f32.mrf.mxu3 }
 0x39e   : > { %v5898_v40 = vadd.f32 %v1895_v42, %v1834_v41 }
 0x39f   : > { %v2031_v53 = vmul.f32 %v5872_v20, %v5872_v20 }
 0x3a1   : > { %v2053_v21 = vsel %vm7391_vm0, %v2031_v53, 0.0  ;;  %v1794_v53 = vpop.f32.mrf.mxu0 }
 0x3a2   : > { %v1955_v8 = vpop.xlane.xlu2 %1954  ;;  %1969 = vadd.xlane.f32.xlu1 %v1968_v26  ;;  %2054 = vadd.xlane.f32.xlu0 %v2053_v21  ;;  %v1818_v26 = vadd.f32 %v1794_v53, %v1673_v30  ;;  %v1971_v21 = vsel %vm7434_vm14, %v7267_v34, 0.0  ;;  %v7435_v30 = vmax.f32 %v5808_v7, 0.0  ;;  %v7271_v34 = vmax.f32 %v5898_v40, 0.0  ;;  %vm7436_vm14 = vmmov %vm7391_vm0 }
 0x3a3   : > { %v2000_v46 = vmul.f32 %v5822_v4, %v1955_v8  ;;  %v1562_v8 = vpop.f32.mrf.mxu2  ;;  %v1900_v7 = vpop.f32.mrf.mxu1 }
 0x3a5   : > { %v5888_v29 = vsub.f32 %v7433_v44, %v2000_v46  ;;  %v1898_v46 = vadd.f32 %v5759_v32, %v1897_v37  ;;  %v1676_v44 = vadd.f32 %v1675_v14, %v1562_v8  ;;  %v1974_v37 = vsel %vm7391_vm0, %v7271_v34, 0.0 }
 0x3a6   : > { %v7437_v8 = vmax.f32 %v5816_v48, 0.0 }
 0x3a7   : > { %v2032_v62 = vmul.f32 %v5888_v29, %v5888_v29 }
 0x3a9   : > { %v2056_v35 = vsel %vm7391_vm0, %v2032_v62, 0.0  ;;  %v1835_v62 = vadd.f32 %v5764_v43, %v1818_v26  ;;  %v1797_v42 = vpop.f32.mrf.mxu0  ;;  %v1901_v26 = vadd.f32 %v5759_v32, %v1900_v7  ;;  %v2463_v7 = vld [vmem:[#allocation4 + $0x78] sm:$0xff] }
 0x3aa   : > { %v1958_v49 = vpop.xlane.xlu2 %1957  ;;  %1972 = vadd.xlane.f32.xlu0 %v1971_v21  ;;  %2057 = vadd.xlane.f32.xlu2 %v2056_v35  ;;  %v1819_v21 = vadd.f32 %v1797_v42, %v1676_v44 }
 0x3ab   : > { %v2001_v38 = vmul.f32 %v5822_v4, %v1958_v49  ;;  %v5914_v14 = vadd.f32 %v1898_v46, %v1835_v62  ;;  %2472 = vmatpush.msrb.mxu3 %v2463_v7  ;;  %v2457_v7 = vld [vmem:[#allocation4 + $0x48] sm:$0xff]  ;;  %v1903_v34 = vpop.f32.mrf.mxu1 }
 0x3ad   : > { %v5904_v53 = vsub.f32 %v7435_v30, %v2001_v38  ;;  %v7270_v44 = vmax.f32 %v5914_v14, 0.0 }
 0x3af   : > { %v2033_v41 = vmul.f32 %v5904_v53, %v5904_v53 }
 0x3b1   : > { %v2059_v35 = vsel %vm7436_vm14, %v2033_v41, 0.0  ;;  %v1836_v41 = vadd.f32 %v5764_v43, %v1819_v21  ;;  %vm7438_vm14 = vmmov %vm7391_vm0  ;;  %v2341_v21 = vld [vmem:[#allocation4 + $0x38] sm:$0xff] }
 0x3b2   : > { %2060 = vadd.xlane.f32.xlu1 %v2059_v35  ;;  %v1961_v49 = vpop.xlane.xlu1 %1960  ;;  %1975 = vadd.xlane.f32.xlu2 %v1974_v37  ;;  %v1977_v62 = vsel %vm7438_vm14, %v7270_v44, 0.0 }
 0x3b3   : > { %v2002_v38 = vmul.f32 %v5822_v4, %v1961_v49  ;;  %v5930_v35 = vadd.f32 %v1901_v26, %v1836_v41  ;;  %2398 = vmatpush.msrb.mxu2 %v2341_v21  ;;  %v2340_v49 = vld [vmem:[#allocation4 + $0x30] sm:$0xff]  ;;  %v2461_v26 = vld [vmem:[#allocation4 + $0x68] sm:$0xff]  ;;  %v2338_v41 = vld [vmem:[#allocation4 + $0x20] sm:$0xff]  ;;  %v1906_v52 = vpop.f32.mrf.mxu1 }
 0x3b4   : > { %v2335_v21 = vld [vmem:[#allocation4 + $0x8] sm:$0xff] }
 0x3b5   : > { %v5920_v30 = vsub.f32 %v7437_v8, %v2002_v38  ;;  %v7269_v48 = vmax.f32 %v5930_v35, 0.0  ;;  %v2462_v38 = vld [vmem:[#allocation4 + $0x70] sm:$0xff]  ;;  %2399 = vmatpush.msrb.mxu2 %v2340_v49  ;;  %v2339_v8 = vld [vmem:[#allocation4 + $0x28] sm:$0xff]  ;;  %v2334_v49 = vld [vmem:[#allocation4] sm:$0xff] }
 0x3b6   : > { %2473 = vmatpush.msrb.mxu3 %v2462_v38  ;;  %v2456_v38 = vld [vmem:[#allocation4 + $0x40] sm:$0xff] }
 0x3b7   : > { %v2034_v46 = vmul.f32 %v5920_v30, %v5920_v30  ;;  %v1980_v37 = vsel %vm7439_vm4, %v7269_v48, 0.0  ;;  %2400 = vmatpush.msrb.mxu2 %v2339_v8  ;;  %v2458_v48 = vld [vmem:[#allocation4 + $0x50] sm:$0xff]  ;;  %v1678_v8 = vpop.f32.mrf.mxu3  ;;  %vm7441_vm4 = vmmov %vm7391_vm0 }
 0x3b8   : > { %2474 = vmatpush.msrb.mxu3 %v2461_v26  ;;  %v1565_v26 = vpop.f32.mrf.mxu2 }
 0x3b9   : > { %v2062_v42 = vsel %vm7391_vm0, %v2034_v46, 0.0  ;;  %v2460_v46 = vld [vmem:[#allocation4 + $0x60] sm:$0xff]  ;;  %2401 = vmatpush.msrb.mxu2 %v2338_v41  ;;  %v1679_v44 = vadd.f32 %v1678_v8, %v1565_v26  ;;  %v7440_v8 = vmax.f32 %v5834_v59, 0.0 }
 0x3ba   : > { %1978 = vadd.xlane.f32.xlu1 %v1977_v62  ;;  %2063 = vadd.xlane.f32.xlu0 %v2062_v42  ;;  %v2337_v62 = vld [vmem:[#allocation4 + $0x18] sm:$0xff] }
 0x3bb   : > { %2475 = vmatpush.msrb.mxu3 %v2460_v46  ;;  %v2459_v42 = vld [vmem:[#allocation4 + $0x58] sm:$0xff]  ;;  %2402 = vmatpush.msrb.mxu2 %v2337_v62 }
 0x3bd   : > { %2476 = vmatpush.msrb.mxu3 %v2459_v42  ;;  %v1800_v42 = vpop.f32.mrf.mxu0 }
 0x3bf   : > { %2477 = vmatpush.msrb.mxu3 %v2458_v48  ;;  %v1681_v48 = vpop.f32.mrf.mxu3 }
 0x3c1   : > { %2478 = vmatpush.msrb.mxu3 %v2457_v7 }
 0x3c2   : > { %1981 = vadd.xlane.f32.xlu0 %v1980_v37  ;;  %v2336_v37 = vld [vmem:[#allocation4 + $0x10] sm:$0xff] }
 0x3c3   : > { %2403 = vmatpush.msrb.mxu2 %v2336_v37  ;;  %2479 = vmatpush.msrb.mxu3 %v2456_v38  ;;  %v1820_v37 = vadd.f32 %v1800_v42, %v1679_v44  ;;  %v1904_v38 = vadd.f32 %v5759_v32, %v1903_v34 }
 0x3c5   : > { %2404 = vmatpush.msrb.mxu2 %v2335_v21 }
 0x3c7   : > { %2405 = vmatpush.msrb.mxu2 %v2334_v49  ;;  %v1568_v49 = vpop.f32.mrf.mxu2 }
 0x3c8   : > { %v1682_v6 = vadd.f32 %v1681_v48, %v1568_v49  ;;  %v1907_v49 = vadd.f32 %v5759_v32, %v1906_v52  ;;  %v5964_v52 = vld [vmem:[%s7216_s5 + $0x2] ss:$0 sm:$0xff] }
 0x3fd   : > { %v2046_v41 = vpop.xlane.xlu0 %2045 }
 0x3fe   : > { %v2092_v46 = vmul.f32 %v2046_v41, %v5822_v4  ;;  %v1837_v41 = vadd.f32 %v5764_v43, %v1820_v37 }
 0x400   : > { %v2108_v62 = vadd.f32 1e-05, %v2092_v46  ;;  %v5948_v24 = vadd.f32 %v1904_v38, %v1837_v41 }
 0x402   : > { %4584 = vrsqrt.f32 %v2108_v62  ;;  %v7285_v38 = vmax.f32 %v5948_v24, 0.0  ;;  %vm2130_vm0 = vweird.f32 %v2108_v62 }
 0x405   : > { %v2049_v5 = vpop.xlane.xlu2 %2048  ;;  %v1964_v17 = vpop.xlane.xlu0 %1963 }
 0x406   : > { %v2093_v21 = vmul.f32 %v2049_v5, %v5822_v4  ;;  %v2003_v7 = vmul.f32 %v5822_v4, %v1964_v17  ;;  %v1803_v5 = vpop.f32.mrf.mxu0 }
 0x407   : > { %v1821_v17 = vadd.f32 %v1803_v5, %v1682_v6  ;;  %v7442_v6 = vmax.f32 %v5850_v22, 0.0 }
 0x408   : > { %v4585_v15 = vpop.eup %4584  ;;  %v2109_v61 = vadd.f32 1e-05, %v2093_v21  ;;  %v5942_v26 = vsub.f32 %v7440_v8, %v2003_v7 }
 0x409   : > { %v2125_v44 = vmul.f32 %v4585_v15, %v2108_v62  ;;  %vm2131_vm14 = vweird.f32 %v4585_v15  ;;  %v1838_v41 = vadd.f32 %v5764_v43, %v1821_v17  ;;  %v5972_v43 = vld [vmem:[%s7216_s5 + $0x3] ss:$0 sm:$0xff] }
 0x40a   : > { %4586 = vrsqrt.f32 %v2109_v61  ;;  %v2035_v46 = vmul.f32 %v5942_v26, %v5942_v26 }
 0x40b   : > { %v2126_v42 = vmul.f32 %v4585_v15, %v2125_v44 }
 0x40c   : > { %v2065_v34 = vsel %vm7441_vm4, %v2035_v46, 0.0  ;;  %vm2132_vm4 = vmor %vm2130_vm0, %vm2131_vm14  ;;  %vm7446_vm0 = vcmask 523264  }
 0x40d   : > { %v2127_v48 = vmul.f32 0.5, %v2126_v42  ;;  %v2052_v21 = vpop.xlane.xlu1 %2051  ;;  %v1967_v59 = vpop.xlane.xlu2 %1966  ;;  %2066 = vadd.xlane.f32.xlu2 %v2065_v34  ;;  %vm7448_vm15 = vmmov %vm7446_vm0 }
 0x40e   : > { %v2094_v7 = vmul.f32 %v2052_v21, %v5822_v4  ;;  %v2004_v37 = vmul.f32 %v5822_v4, %v1967_v59  ;;  %v5979_v21 = vadd.f32 %v1907_v49, %v1838_v41  ;;  %v7445_v49 = vmax.f32 %v5866_v47, 0.0  ;;  %vm7449_vm2 = vmmov %vm7446_vm0 }
 0x40f   : > { %v2128_v8 = vsub.f32 1.5, %v2127_v48  ;;  %v1983_v48 = vsel %vm7444_vm5, %v7285_v38, 0.0  ;;  %vm2140_vm5 = vweird.f32 %v2109_v61 }
 0x410   : > { %v4587_v63 = vpop.eup %4586  ;;  %v5953_v44 = vadd.f32 1e-05, %v2094_v7  ;;  %v5957_v46 = vsub.f32 %v7442_v6, %v2004_v37 }
 0x411   : > { %v2129_v5 = vmul.f32 %v4585_v15, %v2128_v8  ;;  %v2135_v42 = vmul.f32 %v4587_v63, %v2109_v61  ;;  %vm2141_vm14 = vweird.f32 %v4587_v63 }
 0x412   : > { %4588 = vrsqrt.f32 %v5953_v44  ;;  %v2036_v32 = vmul.f32 %v5957_v46, %v5957_v46 }
 0x413   : > { %v2133_v22 = vsel %vm2132_vm4, %v4585_v15, %v2129_v5  ;;  %v2136_v34 = vmul.f32 %v4587_v63, %v2135_v42  ;;  %vm7447_vm4 = vmmov %vm7446_vm0 }
 0x414   : > { %v2284_v62 = vmul.f32 %v2133_v22, %v5828_v18  ;;  %v2068_v17 = vsel %vm7443_vm1, %v2036_v32, 0.0  ;;  %v7284_v22 = vmax.f32 %v5979_v21, 0.0  ;;  %vm2142_vm1 = vmor %vm2140_vm5, %vm2141_vm14 }
 0x415   : > { %v2137_v59 = vmul.f32 0.5, %v2136_v34  ;;  %v1970_v7 = vpop.xlane.xlu1 %1969  ;;  %2069 = vadd.xlane.f32.xlu1 %v2068_v17  ;;  %1984 = vadd.xlane.f32.xlu2 %v1983_v48  ;;  %v2055_v15 = vpop.xlane.xlu0 %2054  ;;  %vm7451_vm5 = vmmov %vm7446_vm0 }
 0x416   : > { %v2301_v37 = vmul.f32 %v5964_v52, %v2284_v62  ;;  %v2005_v8 = vmul.f32 %v5822_v4, %v1970_v7  ;;  %v2095_v6 = vmul.f32 %v2055_v15, %v5822_v4  ;;  %v1986_v61 = vsel %vm7449_vm2, %v7284_v22, 0.0 }
 0x417   : > { %v2138_v18 = vsub.f32 1.5, %v2137_v59  ;;  %vm2150_vm2 = vweird.f32 %v5953_v44 }
 0x418   : > { %v4589_v5 = vpop.eup %4588  ;;  %v5985_v42 = vadd.f32 %v5972_v43, %v2301_v37  ;;  %v5989_v41 = vsub.f32 %v7445_v49, %v2005_v8  ;;  %v2111_v32 = vadd.f32 1e-05, %v2095_v6 }
 0x419   : > { %v2139_v34 = vmul.f32 %v4587_v63, %v2138_v18  ;;  %v2145_v62 = vmul.f32 %v4589_v5, %v5953_v44  ;;  %vm2151_vm14 = vweird.f32 %v4589_v5 }
 0x41a   : > { %4590 = vrsqrt.f32 %v2111_v32  ;;  %4373 = vmatmul.msk.f32.vlgmr.msrb.gmra.mxu2 %vm7446_vm0, %v5985_v42  ;;  %4389 = vmatmul.msk.f32.vlgmr.msrb.gmra.mxu3 %vm7447_vm4, %v5985_v42  ;;  %v2037_v47 = vmul.f32 %v5989_v41, %v5989_v41 }
 0x41b   : > { %v2143_v17 = vsel %vm2142_vm1, %v4587_v63, %v2139_v34  ;;  %v2146_v48 = vmul.f32 %v4589_v5, %v2145_v62  ;;  %v7450_v62 = vmax.f32 %v5882_v36, 0.0  ;;  %vm7452_vm1 = vmmov %vm7446_vm0 }
 0x41c   : > { %v2285_v59 = vmul.f32 %v2143_v17, %v5840_v13  ;;  %v2071_v7 = vsel %vm7448_vm15, %v2037_v47, 0.0  ;;  %vm2152_vm15 = vmor %vm2150_vm2, %vm2151_vm14  ;;  %vm2160_vm14 = vweird.f32 %v2111_v32 }
 0x41d   : > { %v2147_v15 = vmul.f32 0.5, %v2146_v48  ;;  %2072 = vadd.xlane.f32.xlu0 %v2071_v7  ;;  %1987 = vadd.xlane.f32.xlu1 %v1986_v61  ;;  %v2058_v37 = vpop.xlane.xlu2 %2057  ;;  %v1973_v8 = vpop.xlane.xlu0 %1972 }
 0x41e   : > { %v2096_v6 = vmul.f32 %v2058_v37, %v5822_v4  ;;  %v2006_v18 = vmul.f32 %v5822_v4, %v1973_v8  ;;  %v2302_v63 = vmul.f32 %v5964_v52, %v2285_v59 }
 0x41f   : > { %v2148_v49 = vsub.f32 1.5, %v2147_v15 }
 0x420   : > { %v4591_v13 = vpop.eup %4590  ;;  %v2112_v34 = vadd.f32 1e-05, %v2096_v6  ;;  %v6009_v47 = vsub.f32 %v7450_v62, %v2006_v18  ;;  %v6012_v17 = vadd.f32 %v5972_v43, %v2302_v63 }
 0x421   : > { %v2149_v48 = vmul.f32 %v4589_v5, %v2148_v49  ;;  %v2155_v7 = vmul.f32 %v4591_v13, %v2111_v32  ;;  %vm2161_vm4 = vweird.f32 %v4591_v13 }
 0x422   : > { %4592 = vrsqrt.f32 %v2112_v34  ;;  %4374 = vmatmul.msk.f32.gmra.mxu2 %vm7451_vm5, %v6012_v17  ;;  %4390 = vmatmul.msk.f32.gmra.mxu3 %vm7452_vm1, %v6012_v17  ;;  %v2038_v36 = vmul.f32 %v6009_v47, %v6009_v47  ;;  %vm2162_vm2 = vmor %vm2160_vm14, %vm2161_vm4  ;;  %vm2170_vm4 = vweird.f32 %v2112_v34 }
 0x423   : > { %v2153_v59 = vsel %vm2152_vm15, %v4589_v5, %v2149_v48  ;;  %v2156_v61 = vmul.f32 %v4591_v13, %v2155_v7  ;;  %v7453_v5 = vmax.f32 %v5898_v40, 0.0  ;;  %vm7454_vm15 = vmmov %vm7446_vm0 }
 0x424   : > { %v2286_v15 = vmul.f32 %v2153_v59, %v5856_v25  ;;  %v2074_v37 = vsel %vm7446_vm0, %v2038_v36, 0.0  ;;  %vm7455_vm5 = vmmov %vm7446_vm0 }
 0x425   : > { %v2157_v8 = vmul.f32 0.5, %v2156_v61  ;;  %v2061_v44 = vpop.xlane.xlu1 %2060  ;;  %v1976_v6 = vpop.xlane.xlu2 %1975  ;;  %2075 = vadd.xlane.f32.xlu2 %v2074_v37  ;;  %vm7456_vm1 = vmmov %vm7446_vm0 }
 0x426   : > { %v2097_v18 = vmul.f32 %v2061_v44, %v5822_v4  ;;  %v2007_v63 = vmul.f32 %v5822_v4, %v1976_v6  ;;  %v2303_v49 = vmul.f32 %v5964_v52, %v2286_v15 }
 0x427   : > { %v2158_v62 = vsub.f32 1.5, %v2157_v8 }
 0x428   : > { %v4593_v22 = vpop.eup %4592  ;;  %v2113_v38 = vadd.f32 1e-05, %v2097_v18  ;;  %v6028_v48 = vsub.f32 %v7453_v5, %v2007_v63  ;;  %v6031_v25 = vadd.f32 %v5972_v43, %v2303_v49 }
 0x429   : > { %v2159_v7 = vmul.f32 %v4591_v13, %v2158_v62  ;;  %v2165_v36 = vmul.f32 %v4593_v22, %v2112_v34  ;;  %vm2171_vm0 = vweird.f32 %v4593_v22 }
 0x42a   : > { %4594 = vrsqrt.f32 %v2113_v38  ;;  %4375 = vmatmul.msk.f32.gmra.mxu2 %vm7454_vm15, %v6031_v25  ;;  %4391 = vmatmul.msk.f32.gmra.mxu3 %vm7455_vm5, %v6031_v25  ;;  %v2039_v59 = vmul.f32 %v6028_v48, %v6028_v48  ;;  %vm2172_vm14 = vmor %vm2170_vm4, %vm2171_vm0  ;;  %vm2180_vm0 = vweird.f32 %v2113_v38 }
 0x42b   : > { %v2163_v40 = vsel %vm2162_vm2, %v4591_v13, %v2159_v7  ;;  %v2166_v61 = vmul.f32 %v4593_v22, %v2165_v36  ;;  %v7457_v13 = vmax.f32 %v5914_v14, 0.0  ;;  %vm7458_vm2 = vmmov %vm7456_vm1 }
 0x42c   : > { %v2287_v15 = vmul.f32 %v2163_v40, %v5872_v20  ;;  %v2077_v37 = vsel %vm7456_vm1, %v2039_v59, 0.0  ;;  %vm7459_vm15 = vmmov %vm7456_vm1 }
 0x42d   : > { %v2167_v8 = vmul.f32 0.5, %v2166_v61  ;;  %v1979_v32 = vpop.xlane.xlu1 %1978  ;;  %2078 = vadd.xlane.f32.xlu0 %v2077_v37  ;;  %v2064_v44 = vpop.xlane.xlu0 %2063  ;;  %vm7460_vm5 = vmmov %vm7456_vm1 }
 0x42e   : > { %v2008_v6 = vmul.f32 %v5822_v4, %v1979_v32  ;;  %v2098_v18 = vmul.f32 %v2064_v44, %v5822_v4  ;;  %v2304_v63 = vmul.f32 %v5964_v52, %v2287_v15 }
 0x42f   : > { %v2168_v49 = vsub.f32 1.5, %v2167_v8 }
 0x430   : > { %v4595_v62 = vpop.eup %4594  ;;  %v6046_v5 = vsub.f32 %v7457_v13, %v2008_v6  ;;  %v2114_v20 = vadd.f32 1e-05, %v2098_v18  ;;  %v6049_v7 = vadd.f32 %v5972_v43, %v2304_v63  ;;  %v7461_v63 = vmax.f32 %v5930_v35, 0.0 }
 0x431   : > { %v2169_v36 = vmul.f32 %v4593_v22, %v2168_v49  ;;  %v2175_v59 = vmul.f32 %v4595_v62, %v2113_v38  ;;  %vm2181_vm1 = vweird.f32 %v4595_v62 }
 0x432   : > { %4596 = vrsqrt.f32 %v2114_v20  ;;  %4376 = vmatmul.msk.f32.gmra.mxu2 %vm7458_vm2, %v6049_v7  ;;  %4392 = vmatmul.msk.f32.gmra.mxu3 %vm7459_vm15, %v6049_v7  ;;  %v2040_v14 = vmul.f32 %v6046_v5, %v6046_v5  ;;  %vm2182_vm4 = vmor %vm2180_vm0, %vm2181_vm1  ;;  %vm2190_vm1 = vweird.f32 %v2114_v20 }
 0x433   : > { %v2173_v40 = vsel %vm2172_vm14, %v4593_v22, %v2169_v36  ;;  %v2176_v61 = vmul.f32 %v4595_v62, %v2175_v59  ;;  %vm7462_vm14 = vmmov %vm7458_vm2 }
 0x434   : > { %v2288_v15 = vmul.f32 %v2173_v40, %v5888_v29  ;;  %v2080_v37 = vsel %vm7460_vm5, %v2040_v14, 0.0  ;;  %vm7463_vm15 = vmmov %vm7458_vm2 }
 0x435   : > { %v2177_v8 = vmul.f32 0.5, %v2176_v61  ;;  %2081 = vadd.xlane.f32.xlu1 %v2080_v37  ;;  %v1982_v34 = vpop.xlane.xlu0 %1981 }
 0x436   : > { %v2009_v32 = vmul.f32 %v5822_v4, %v1982_v34  ;;  %v2305_v44 = vmul.f32 %v5964_v52, %v2288_v15 }
 0x437   : > { %v2178_v6 = vsub.f32 1.5, %v2177_v8 }
 0x438   : > { %v4597_v18 = vpop.eup %4596  ;;  %v6063_v49 = vsub.f32 %v7461_v63, %v2009_v32  ;;  %v6066_v22 = vadd.f32 %v5972_v43, %v2305_v44 }
 0x439   : > { %v2179_v29 = vmul.f32 %v4595_v62, %v2178_v6  ;;  %v2185_v13 = vmul.f32 %v4597_v18, %v2114_v20  ;;  %vm2191_vm5 = vweird.f32 %v4597_v18 }
 0x43a   : > { %4377 = vmatmul.msk.f32.gmra.mxu2 %vm7462_vm14, %v6066_v22  ;;  %4393 = vmatmul.msk.f32.gmra.mxu3 %vm7458_vm2, %v6066_v22  ;;  %v2041_v36 = vmul.f32 %v6063_v49, %v6063_v49  ;;  %vm2192_vm0 = vmor %vm2190_vm1, %vm2191_vm5 }
 0x43b   : > { %v2183_v59 = vsel %vm2182_vm4, %v4595_v62, %v2179_v29  ;;  %v2186_v35 = vmul.f32 %v4597_v18, %v2185_v13  ;;  %vm7464_vm14 = vmmov %vm7458_vm2 }
 0x43c   : > { %v2289_v14 = vmul.f32 %v2183_v59, %v5904_v53  ;;  %v2083_v40 = vsel %vm7463_vm15, %v2041_v36, 0.0  ;;  %vm7465_vm4 = vmmov %vm7458_vm2  ;;  %v7467_v59 = vmax.f32 %v5948_v24, 0.0 }
 0x43d   : > { %v2187_v61 = vmul.f32 0.5, %v2186_v35  ;;  %2084 = vadd.xlane.f32.xlu2 %v2083_v40  ;;  %vm7466_vm15 = vmmov %vm7458_vm2 }
 0x43e   : > { %v2306_v38 = vmul.f32 %v5964_v52, %v2289_v14  ;;  %vm7468_vm5 = vmmov %vm7458_vm2 }
 0x43f   : > { %v2188_v15 = vsub.f32 1.5, %v2187_v61 }
 0x440   : > { %v6078_v37 = vadd.f32 %v5972_v43, %v2306_v38 }
 0x441   : > { %v2189_v8 = vmul.f32 %v4597_v18, %v2188_v15 }
 0x442   : > { %4378 = vmatmul.msk.f32.gmra.mxu2 %vm7464_vm14, %v6078_v37  ;;  %4394 = vmatmul.msk.f32.gmra.mxu3 %vm7465_vm4, %v6078_v37  ;;  %vm7470_vm4 = vmmov %vm7458_vm2 }
 0x443   : > { %v2193_v53 = vsel %vm2192_vm0, %v4597_v18, %v2189_v8 }
 0x444   : > { %v2290_v62 = vmul.f32 %v2193_v53, %v5920_v30 }
 0x446   : > { %v2307_v34 = vmul.f32 %v5964_v52, %v2290_v62 }
 0x448   : > { %v6087_v32 = vadd.f32 %v5972_v43, %v2307_v34 }
 0x44a   : > { %4379 = vmatmul.msk.f32.gmra.mxu2 %vm7458_vm2, %v6087_v32  ;;  %4395 = vmatmul.msk.f32.gmra.mxu3 %vm7466_vm15, %v6087_v32 }
 0x480   : > { %v2067_v20 = vpop.xlane.xlu2 %2066 }
 0x481   : > { %v2099_v44 = vmul.f32 %v2067_v20, %v5822_v4 }
 0x483   : > { %v2115_v6 = vadd.f32 1e-05, %v2099_v44  ;;  %v7469_v44 = vmax.f32 %v5979_v21, 0.0 }
 0x485   : > { %4598 = vrsqrt.f32 %v2115_v6  ;;  %vm2200_vm0 = vweird.f32 %v2115_v6 }
 0x488   : > { %v2070_v63 = vpop.xlane.xlu1 %2069  ;;  %v1985_v18 = vpop.xlane.xlu2 %1984 }
 0x489   : > { %v2100_v30 = vmul.f32 %v2070_v63, %v5822_v4  ;;  %v2010_v29 = vmul.f32 %v5822_v4, %v1985_v18 }
 0x48b   : > { %v4599_v13 = vpop.eup %4598  ;;  %v2116_v36 = vadd.f32 1e-05, %v2100_v30  ;;  %v6098_v35 = vsub.f32 %v7467_v59, %v2010_v29 }
 0x48c   : > { %v2195_v14 = vmul.f32 %v4599_v13, %v2115_v6  ;;  %vm2201_vm1 = vweird.f32 %v4599_v13 }
 0x48d   : > { %4600 = vrsqrt.f32 %v2116_v36  ;;  %v2042_v40 = vmul.f32 %v6098_v35, %v6098_v35  ;;  %vm2202_vm14 = vmor %vm2200_vm0, %vm2201_vm1  ;;  %vm2210_vm15 = vweird.f32 %v2116_v36 }
 0x48e   : > { %v2196_v61 = vmul.f32 %v4599_v13, %v2195_v14  ;;  %vm7471_vm1 = vmmov %vm7470_vm4 }
 0x48f   : > { %v2086_v38 = vsel %vm7468_vm5, %v2042_v40, 0.0  ;;  %vm7472_vm0 = vmmov %vm7471_vm1 }
 0x490   : > { %v2197_v15 = vmul.f32 0.5, %v2196_v61  ;;  %v1988_v8 = vpop.xlane.xlu1 %1987  ;;  %2087 = vadd.xlane.f32.xlu0 %v2086_v38  ;;  %v2073_v53 = vpop.xlane.xlu0 %2072 }
 0x491   : > { %v2011_v62 = vmul.f32 %v5822_v4, %v1988_v8  ;;  %v2101_v34 = vmul.f32 %v2073_v53, %v5822_v4 }
 0x492   : > { %v2198_v20 = vsub.f32 1.5, %v2197_v15 }
 0x493   : > { %v4601_v24 = vpop.eup %4600  ;;  %v6107_v63 = vsub.f32 %v7469_v44, %v2011_v62  ;;  %v2117_v18 = vadd.f32 1e-05, %v2101_v34 }
 0x494   : > { %v2199_v30 = vmul.f32 %v4599_v13, %v2198_v20  ;;  %v2205_v29 = vmul.f32 %v4601_v24, %v2116_v36  ;;  %vm2211_vm2 = vweird.f32 %v4601_v24 }
 0x495   : > { %4602 = vrsqrt.f32 %v2117_v18  ;;  %v2043_v59 = vmul.f32 %v6107_v63, %v6107_v63  ;;  %vm2212_vm5 = vmor %vm2210_vm15, %vm2211_vm2 }
 0x496   : > { %v2203_v14 = vsel %vm2202_vm14, %v4599_v13, %v2199_v30  ;;  %v2206_v40 = vmul.f32 %v4601_v24, %v2205_v29  ;;  %vm7473_vm15 = vmmov %vm7472_vm0 }
 0x497   : > { %v2291_v61 = vmul.f32 %v2203_v14, %v5942_v26  ;;  %v2089_v38 = vsel %vm7470_vm4, %v2043_v59, 0.0  ;;  %vm2220_vm4 = vweird.f32 %v2117_v18 }
 0x498   : > { %v2207_v15 = vmul.f32 0.5, %v2206_v40  ;;  %2090 = vadd.xlane.f32.xlu1 %v2089_v38  ;;  %v2076_v21 = vpop.xlane.xlu2 %2075 }
 0x499   : > { %v2102_v8 = vmul.f32 %v2076_v21, %v5822_v4  ;;  %v2308_v53 = vmul.f32 %v5964_v52, %v2291_v61 }
 0x49a   : > { %v2208_v6 = vsub.f32 1.5, %v2207_v15 }
 0x49b   : > { %v4603_v62 = vpop.eup %4602  ;;  %v2118_v34 = vadd.f32 1e-05, %v2102_v8  ;;  %v6116_v20 = vadd.f32 %v5972_v43, %v2308_v53 }
 0x49c   : > { %v2209_v13 = vmul.f32 %v4601_v24, %v2208_v6  ;;  %v2215_v44 = vmul.f32 %v4603_v62, %v2117_v18  ;;  %vm2221_vm14 = vweird.f32 %v4603_v62 }
 0x49d   : > { %4604 = vrsqrt.f32 %v2118_v34  ;;  %4380 = vmatmul.msk.f32.gmra.mxu2 %vm7471_vm1, %v6116_v20  ;;  %4396 = vmatmul.msk.f32.gmra.mxu3 %vm7472_vm0, %v6116_v20  ;;  %vm2222_vm2 = vmor %vm2220_vm4, %vm2221_vm14 }
 0x49e   : > { %v2213_v26 = vsel %vm2212_vm5, %v4601_v24, %v2209_v13  ;;  %v2216_v30 = vmul.f32 %v4603_v62, %v2215_v44  ;;  %vm7474_vm5 = vmmov %vm7472_vm0  ;;  %vm2230_vm0 = vweird.f32 %v2118_v34 }
 0x49f   : > { %v2292_v29 = vmul.f32 %v2213_v26, %v5957_v46  ;;  %vm7475_vm4 = vmmov %vm7474_vm5 }
 0x4a0   : > { %v2217_v59 = vmul.f32 0.5, %v2216_v30  ;;  %v2079_v14 = vpop.xlane.xlu0 %2078 }
 0x4a1   : > { %v2103_v40 = vmul.f32 %v2079_v14, %v5822_v4  ;;  %v2309_v61 = vmul.f32 %v5964_v52, %v2292_v29 }
 0x4a2   : > { %v2218_v36 = vsub.f32 1.5, %v2217_v59 }
 0x4a3   : > { %v4605_v38 = vpop.eup %4604  ;;  %v2119_v15 = vadd.f32 1e-05, %v2103_v40  ;;  %v6126_v21 = vadd.f32 %v5972_v43, %v2309_v61 }
 0x4a4   : > { %v2219_v8 = vmul.f32 %v4603_v62, %v2218_v36  ;;  %v2225_v53 = vmul.f32 %v4605_v38, %v2118_v34  ;;  %vm2231_vm1 = vweird.f32 %v4605_v38 }
 0x4a5   : > { %4606 = vrsqrt.f32 %v2119_v15  ;;  %4381 = vmatmul.msk.f32.gmra.mxu2 %vm7473_vm15, %v6126_v21  ;;  %4397 = vmatmul.msk.f32.gmra.mxu3 %vm7474_vm5, %v6126_v21  ;;  %vm2232_vm14 = vmor %vm2230_vm0, %vm2231_vm1  ;;  %vm2240_vm5 = vweird.f32 %v2119_v15 }
 0x4a6   : > { %v2223_v46 = vsel %vm2222_vm2, %v4603_v62, %v2219_v8  ;;  %v2226_v24 = vmul.f32 %v4605_v38, %v2225_v53  ;;  %vm7476_vm2 = vmmov %vm7475_vm4 }
 0x4a7   : > { %v2293_v6 = vmul.f32 %v2223_v46, %v5989_v41  ;;  %vm7477_vm0 = vmmov %vm7476_vm2 }
 0x4a8   : > { %v2227_v13 = vmul.f32 0.5, %v2226_v24  ;;  %v2082_v44 = vpop.xlane.xlu1 %2081 }
 0x4a9   : > { %v2104_v26 = vmul.f32 %v2082_v44, %v5822_v4  ;;  %v2310_v30 = vmul.f32 %v5964_v52, %v2293_v6 }
 0x4aa   : > { %v2228_v18 = vsub.f32 1.5, %v2227_v13 }
 0x4ab   : > { %v4607_v29 = vpop.eup %4606  ;;  %v2120_v59 = vadd.f32 1e-05, %v2104_v26  ;;  %v6136_v14 = vadd.f32 %v5972_v43, %v2310_v30 }
 0x4ac   : > { %v2229_v40 = vmul.f32 %v4605_v38, %v2228_v18  ;;  %v2235_v61 = vmul.f32 %v4607_v29, %v2119_v15  ;;  %vm2241_vm15 = vweird.f32 %v4607_v29 }
 0x4ad   : > { %4608 = vrsqrt.f32 %v2120_v59  ;;  %4382 = vmatmul.msk.f32.gmra.mxu2 %vm7475_vm4, %v6136_v14  ;;  %4398 = vmatmul.msk.f32.gmra.mxu3 %vm7476_vm2, %v6136_v14  ;;  %vm2242_vm1 = vmor %vm2240_vm5, %vm2241_vm15  ;;  %vm2250_vm2 = vweird.f32 %v2120_v59 }
 0x4ae   : > { %v2233_v41 = vsel %vm2232_vm14, %v4605_v38, %v2229_v40  ;;  %v2236_v62 = vmul.f32 %v4607_v29, %v2235_v61  ;;  %vm7478_vm14 = vmmov %vm7477_vm0 }
 0x4af   : > { %v2294_v36 = vmul.f32 %v2233_v41, %v6009_v47  ;;  %vm7479_vm5 = vmmov %vm7477_vm0 }
 0x4b0   : > { %v2237_v8 = vmul.f32 0.5, %v2236_v62  ;;  %v2085_v53 = vpop.xlane.xlu2 %2084 }
 0x4b1   : > { %v2105_v46 = vmul.f32 %v2085_v53, %v5822_v4  ;;  %v2311_v24 = vmul.f32 %v5964_v52, %v2294_v36 }
 0x4b2   : > { %v2238_v34 = vsub.f32 1.5, %v2237_v8 }
 0x4b3   : > { %v4609_v6 = vpop.eup %4608  ;;  %v2121_v13 = vadd.f32 1e-05, %v2105_v46  ;;  %v6146_v44 = vadd.f32 %v5972_v43, %v2311_v24 }
 0x4b4   : > { %v2239_v26 = vmul.f32 %v4607_v29, %v2238_v34  ;;  %v2245_v30 = vmul.f32 %v4609_v6, %v2120_v59  ;;  %vm2251_vm4 = vweird.f32 %v4609_v6 }
 0x4b5   : > { %4610 = vrsqrt.f32 %v2121_v13  ;;  %4383 = vmatmul.msk.f32.gmra.mxu2 %vm7477_vm0, %v6146_v44  ;;  %4399 = vmatmul.msk.f32.gmra.mxu3 %vm7478_vm14, %v6146_v44  ;;  %vm2252_vm15 = vmor %vm2250_vm2, %vm2251_vm4  ;;  %vm2260_vm14 = vweird.f32 %v2121_v13 }
 0x4b6   : > { %v2243_v47 = vsel %vm2242_vm1, %v4607_v29, %v2239_v26  ;;  %v2246_v38 = vmul.f32 %v4609_v6, %v2245_v30  ;;  %vm7480_vm1 = vmmov %vm7477_vm0 }
 0x4b7   : > { %v2295_v18 = vmul.f32 %v2243_v47, %v6028_v48  ;;  %vm7481_vm2 = vmmov %vm7480_vm1 }
 0x4b8   : > { %v2247_v40 = vmul.f32 0.5, %v2246_v38  ;;  %v2666_v38 = vld [vmem:[#allocation4 + $0xb0] sm:$0xff] }
 0x4b9   : > { %v2312_v61 = vmul.f32 %v5964_v52, %v2295_v18  ;;  %v2665_v18 = vld [vmem:[#allocation4 + $0xa8] sm:$0xff] }
 0x4ba   : > { %v2248_v41 = vsub.f32 1.5, %v2247_v40 }
 0x4bb   : > { %v4611_v62 = vpop.eup %4610  ;;  %v6155_v15 = vadd.f32 %v5972_v43, %v2312_v61 }
 0x4bc   : > { %v2249_v36 = vmul.f32 %v4609_v6, %v2248_v41  ;;  %v2255_v8 = vmul.f32 %v4611_v62, %v2121_v13  ;;  %vm2261_vm0 = vweird.f32 %v4611_v62  ;;  %v2667_v13 = vld [vmem:[#allocation4 + $0xb8] sm:$0xff] }
 0x4bd   : > { %4384 = vmatmul.msk.f32.gmra.mxu2 %vm7479_vm5, %v6155_v15  ;;  %4400 = vmatmul.msk.f32.gmra.mxu3 %vm7480_vm1, %v6155_v15  ;;  %vm2262_vm4 = vmor %vm2260_vm14, %vm2261_vm0 }
 0x4be   : > { %v2253_v48 = vsel %vm2252_vm15, %v4609_v6, %v2249_v36  ;;  %v2256_v29 = vmul.f32 %v4611_v62, %v2255_v8  ;;  %vm7482_vm5 = vmmov %vm7480_vm1  ;;  %2676 = vmatpush.msra.mxu2 %v2667_v13  ;;  %v2662_v36 = vld [vmem:[#allocation4 + $0x90] sm:$0xff]  ;;  %v2661_v8 = vld [vmem:[#allocation4 + $0x88] sm:$0xff] }
 0x4bf   : > { %v2296_v53 = vmul.f32 %v2253_v48, %v6046_v5  ;;  %vm7483_vm15 = vmmov %vm7480_vm1 }
 0x4c0   : > { %v2257_v46 = vmul.f32 0.5, %v2256_v29  ;;  %2677 = vmatpush.msra.mxu2 %v2666_v38 }
 0x4c1   : > { %v2313_v24 = vmul.f32 %v5964_v52, %v2296_v53  ;;  %v2660_v53 = vld [vmem:[#allocation4 + $0x80] sm:$0xff] }
 0x4c2   : > { %v2258_v34 = vsub.f32 1.5, %v2257_v46  ;;  %2678 = vmatpush.msra.mxu2 %v2665_v18 }
 0x4c3   : > { %v6164_v26 = vadd.f32 %v5972_v43, %v2313_v24 }
 0x4c4   : > { %v2259_v59 = vmul.f32 %v4611_v62, %v2258_v34 }
 0x4c5   : > { %4385 = vmatmul.msk.f32.gmra.mxu2 %vm7481_vm2, %v6164_v26  ;;  %4401 = vmatmul.msk.f32.gmra.mxu3 %vm7482_vm5, %v6164_v26 }
 0x4c6   : > { %v2263_v6 = vsel %vm2262_vm4, %v4611_v62, %v2259_v59  ;;  %v2663_v62 = vld [vmem:[#allocation4 + $0x98] sm:$0xff] }
 0x4c7   : > { %v2297_v5 = vmul.f32 %v2263_v6, %v6063_v49  ;;  %v2664_v49 = vld [vmem:[#allocation4 + $0xa0] sm:$0xff] }
 0x4c8   : > { %2679 = vmatpush.msra.mxu2 %v2664_v49  ;;  %v6182_v49 = vpop.f32.mrf.mxu2 }
 0x4c9   : > { %v2314_v30 = vmul.f32 %v5964_v52, %v2297_v5 }
 0x4ca   : > { %2680 = vmatpush.msra.mxu2 %v2663_v62  ;;  %v6184_v62 = vpop.f32.mrf.mxu3 }
 0x4cb   : > { %v6173_v47 = vadd.f32 %v5972_v43, %v2314_v30 }
 0x4cc   : > { %2681 = vmatpush.msra.mxu2 %v2662_v36 }
 0x4cd   : > { %4386 = vmatmul.msk.f32.gmra.mxu2 %vm7483_vm15, %v6173_v47  ;;  %4402 = vmatmul.msk.f32.gmra.mxu3 %vm7480_vm1, %v6173_v47 }
 0x4ce   : > { %2682 = vmatpush.msra.mxu2 %v2661_v8 }
 0x4d0   : > { %2683 = vmatpush.msra.mxu2 %v2660_v53 }
 0x503   : > { %v2088_v40 = vpop.xlane.xlu0 %2087 }
 0x504   : > { %v2106_v61 = vmul.f32 %v2088_v40, %v5822_v4 }
 0x506   : > { %v2122_v41 = vadd.f32 1e-05, %v2106_v61 }
 0x508   : > { %4612 = vrsqrt.f32 %v2122_v41  ;;  %vm2270_vm14 = vweird.f32 %v2122_v41 }
 0x50b   : > { %v2091_v48 = vpop.xlane.xlu1 %2090 }
 0x50c   : > { %v2107_v29 = vmul.f32 %v2091_v48, %v5822_v4 }
 0x50e   : > { %v4613_v46 = vpop.eup %4612  ;;  %v2123_v24 = vadd.f32 1e-05, %v2107_v29 }
 0x50f   : > { %v2265_v34 = vmul.f32 %v4613_v46, %v2122_v41  ;;  %vm2271_vm0 = vweird.f32 %v4613_v46 }
 0x510   : > { %4614 = vrsqrt.f32 %v2123_v24  ;;  %vm2272_vm4 = vmor %vm2270_vm14, %vm2271_vm0  ;;  %vm2280_vm5 = vweird.f32 %v2123_v24 }
 0x511   : > { %v2266_v59 = vmul.f32 %v4613_v46, %v2265_v34  ;;  %vm7484_vm0 = vmmov %vm7480_vm1  ;;  %v6196_v34 = vpop.f32.mrf.mxu2 }
 0x512   : > { %vm7485_vm14 = vmmov %vm7484_vm0 }
 0x513   : > { %v2267_v6 = vmul.f32 0.5, %v2266_v59  ;;  %v6198_v59 = vpop.f32.mrf.mxu3 }
 0x515   : > { %v2268_v5 = vsub.f32 1.5, %v2267_v6 }
 0x516   : > { %v4615_v30 = vpop.eup %4614 }
 0x517   : > { %v2269_v13 = vmul.f32 %v4613_v46, %v2268_v5  ;;  %v2275_v38 = vmul.f32 %v4615_v30, %v2123_v24  ;;  %vm2281_vm2 = vweird.f32 %v4615_v30 }
 0x518   : > { %vm2282_vm15 = vmor %vm2280_vm5, %vm2281_vm2 }
 0x519   : > { %v2273_v18 = vsel %vm2272_vm4, %v4613_v46, %v2269_v13  ;;  %v2276_v40 = vmul.f32 %v4615_v30, %v2275_v38  ;;  %vm7486_vm4 = vmmov %vm7484_vm0  ;;  %v6207_v24 = vpop.f32.mrf.mxu2 }
 0x51a   : > { %v2298_v61 = vmul.f32 %v2273_v18, %v6098_v35  ;;  %vm7487_vm2 = vmmov %vm7484_vm0 }
 0x51b   : > { %v2277_v36 = vmul.f32 0.5, %v2276_v40  ;;  %v6209_v5 = vpop.f32.mrf.mxu3  ;;  %vm7488_vm5 = vmmov %vm7484_vm0 }
 0x51c   : > { %v2315_v8 = vmul.f32 %v5964_v52, %v2298_v61 }
 0x51d   : > { %v2278_v48 = vsub.f32 1.5, %v2277_v36 }
 0x51e   : > { %v6188_v29 = vadd.f32 %v5972_v43, %v2315_v8 }
 0x51f   : > { %v2279_v53 = vmul.f32 %v4615_v30, %v2278_v48 }
 0x520   : > { %4387 = vmatmul.msk.f32.gmra.mxu2 %vm7480_vm1, %v6188_v29  ;;  %4403 = vmatmul.msk.f32.gmra.mxu3 %vm7484_vm0, %v6188_v29  ;;  %vm7490_vm1 = vmmov %vm7484_vm0 }
 0x521   : > { %v2283_v35 = vsel %vm2282_vm15, %v4615_v30, %v2279_v53  ;;  %vm7489_vm15 = vmmov %vm7484_vm0 }
 0x522   : > { %v2299_v41 = vmul.f32 %v2283_v35, %v6107_v63 }
 0x524   : > { %v2316_v46 = vmul.f32 %v5964_v52, %v2299_v41  ;;  %v6215_v52 = vpop.f32.mrf.mxu2 }
 0x526   : > { %v6201_v6 = vadd.f32 %v5972_v43, %v2316_v46  ;;  %v6217_v43 = vpop.f32.mrf.mxu3 }
 0x528   : > { %4388 = vmatmul.msk.f32.gmra.mxu2 %vm7485_vm14, %v6201_v6  ;;  %4404 = vmatmul.msk.f32.gmra.mxu3 %vm7486_vm4, %v6201_v6  ;;  %vm7491_vm14 = vmmov %vm7484_vm0 }
 0x529   : > { %vm7492_vm4 = vmmov %vm7484_vm0 }
 0x52c   : > { %v2419_v63 = vpop.f32.mrf.mxu2 }
 0x52e   : > { %v2493_v30 = vpop.f32.mrf.mxu3 }
 0x530   : > { %4405 = vmatmul.msk.f32.vlgmr.msra.gmra.mxu2 %vm7487_vm2, %v5985_v42  ;;  %vm7493_vm2 = vmmov %vm7484_vm0 }
 0x534   : > { %v2422_v13 = vpop.f32.mrf.mxu2 }
 0x536   : > { %v2496_v38 = vpop.f32.mrf.mxu3 }
 0x538   : > { %4406 = vmatmul.msk.f32.gmra.mxu2 %vm7488_vm5, %v6012_v17  ;;  %vm7494_vm5 = vmmov %vm7484_vm0 }
 0x53c   : > { %v2425_v18 = vpop.f32.mrf.mxu2 }
 0x53e   : > { %v2499_v40 = vpop.f32.mrf.mxu3 }
 0x540   : > { %4407 = vmatmul.msk.f32.gmra.mxu2 %vm7489_vm15, %v6031_v25  ;;  %vm7495_vm15 = vmmov %vm7484_vm0 }
 0x544   : > { %v2428_v61 = vpop.f32.mrf.mxu2 }
 0x546   : > { %v2502_v36 = vpop.f32.mrf.mxu3 }
 0x548   : > { %4408 = vmatmul.msk.f32.gmra.mxu2 %vm7490_vm1, %v6049_v7  ;;  %vm7496_vm1 = vmmov %vm7484_vm0 }
 0x54c   : > { %v2431_v8 = vpop.f32.mrf.mxu2 }
 0x54e   : > { %v2505_v48 = vpop.f32.mrf.mxu3 }
 0x550   : > { %4409 = vmatmul.msk.f32.gmra.mxu2 %vm7484_vm0, %v6066_v22 }
 0x554   : > { %v2434_v53 = vpop.f32.mrf.mxu2 }
 0x556   : > { %v2508_v35 = vpop.f32.mrf.mxu3 }
 0x558   : > { %4410 = vmatmul.msk.f32.gmra.mxu2 %vm7491_vm14, %v6078_v37  ;;  %vm7497_vm14 = vmmov %vm7484_vm0 }
 0x55c   : > { %v2437_v41 = vpop.f32.mrf.mxu2 }
 0x55e   : > { %v2511_v46 = vpop.f32.mrf.mxu3 }
 0x560   : > { %4411 = vmatmul.msk.f32.gmra.mxu2 %vm7492_vm4, %v6087_v32  ;;  %vm7498_vm4 = vmmov %vm7484_vm0 }
 0x564   : > { %v2440_v4 = vpop.f32.mrf.mxu2 }
 0x566   : > { %v2514_v31 = vpop.f32.mrf.mxu3 }
 0x568   : > { %4412 = vmatmul.msk.f32.gmra.mxu2 %vm7493_vm2, %v6116_v20  ;;  %vm7499_vm2 = vmmov %vm7484_vm0 }
 0x56c   : > { %v2443_v28 = vpop.f32.mrf.mxu2 }
 0x56e   : > { %v2517_v10 = vpop.f32.mrf.mxu3 }
 0x570   : > { %4413 = vmatmul.msk.f32.gmra.mxu2 %vm7494_vm5, %v6126_v21  ;;  %vm7500_vm5 = vmmov %vm7484_vm0 }
 0x574   : > { %v2446_v55 = vpop.f32.mrf.mxu2 }
 0x576   : > { %v2520_v9 = vpop.f32.mrf.mxu3 }
 0x578   : > { %4414 = vmatmul.msk.f32.gmra.mxu2 %vm7495_vm15, %v6136_v14  ;;  %vm7501_vm15 = vmmov %vm7484_vm0 }
 0x580   : > { %4415 = vmatmul.msk.f32.gmra.mxu2 %vm7496_vm1, %v6146_v44  ;;  %vm7502_vm1 = vmmov %vm7484_vm0 }
 0x588   : > { %4416 = vmatmul.msk.f32.gmra.mxu2 %vm7484_vm0, %v6155_v15 }
 0x590   : > { %4417 = vmatmul.msk.f32.gmra.mxu2 %vm7497_vm14, %v6164_v26  ;;  %vm7503_vm14 = vmmov %vm7484_vm0 }
 0x598   : > { %4418 = vmatmul.msk.f32.gmra.mxu2 %vm7498_vm4, %v6173_v47  ;;  %vm7504_vm4 = vmmov %vm7484_vm0 }
 0x5a0   : > { %4419 = vmatmul.msk.f32.gmra.mxu2 %vm7499_vm2, %v6188_v29  ;;  %vm7505_vm2 = vcmp.lt.s32.totalorder %v5233_v27, 7 }
 0x5a3   : > { %v2449_v23 = vpop.f32.mrf.mxu2  ;;  %v2523_v50 = vpop.f32.mrf.mxu3 }
 0x5a8   : > { %4420 = vmatmul.msk.f32.gmra.mxu2 %vm7500_vm5, %v6201_v6  ;;  %vm7506_vm5 = vcmp.lt.s32.totalorder %v5233_v27, 1  ;;  %v7593_v27 = vld [vmem:[#allocation15_spill] sm:$0xff] }
 0x5ab   : > { %v2452_v11 = vpop.f32.mrf.mxu2  ;;  %v2526_v60 = vpop.f32.mrf.mxu3 }
 0x5ac   : > { %2529 = vmatpush.msrb.mxu0 %v2526_v60  ;;  %2594 = vmatpush.msrb.mxu1 %v2452_v11 }
 0x5ae   : > { %2530 = vmatpush.msrb.mxu0 %v2523_v50  ;;  %2595 = vmatpush.msrb.mxu1 %v2449_v23  ;;  %v4660_v50 = vld [vmem:[%s7212_s1 + $0x80] sm:$0xff] }
 0x5af   : > { %v4661_v23 = vld [vmem:[%s7212_s1] sm:$0xff] }
 0x5b0   : > { %2531 = vmatpush.msrb.mxu0 %v2520_v9  ;;  %2596 = vmatpush.msrb.mxu1 %v2446_v55  ;;  %v4662_v55 = vld [vmem:[%s7212_s1 + $0x88] sm:$0xff] }
 0x5b2   : > { %2532 = vmatpush.msrb.mxu0 %v2517_v10  ;;  %2597 = vmatpush.msrb.mxu1 %v2443_v28  ;;  %v4663_v10 = vld [vmem:[%s7212_s1 + $0x8] sm:$0xff] }
 0x5b3   : > { %v6247_v1 = vpop.f32.mrf.mxu2 }
 0x5b4   : > { %2533 = vmatpush.msrb.mxu0 %v2514_v31  ;;  %2598 = vmatpush.msrb.mxu1 %v2440_v4  ;;  %v4664_v31 = vld [vmem:[%s7212_s1 + $0x90] sm:$0xff] }
 0x5b5   : > { %v4665_v4 = vld [vmem:[%s7212_s1 + $0x10] sm:$0xff] }
 0x5b6   : > { %2534 = vmatpush.msrb.mxu0 %v2511_v46  ;;  %2599 = vmatpush.msrb.mxu1 %v2437_v41  ;;  %v4679_v41 = vld [vmem:[%s7212_s1 + $0x48] sm:$0xff] }
 0x5b8   : > { %2535 = vmatpush.msrb.mxu0 %v2508_v35  ;;  %2600 = vmatpush.msrb.mxu1 %v2434_v53  ;;  %v4678_v35 = vld [vmem:[%s7212_s1 + $0xc8] sm:$0xff] }
 0x5ba   : > { %2536 = vmatpush.msrb.mxu0 %v2505_v48  ;;  %2601 = vmatpush.msrb.mxu1 %v2431_v8  ;;  %v4676_v8 = vld [vmem:[%s7212_s1 + $0xc0] sm:$0xff] }
 0x5bb   : > { %v6249_v0 = vpop.f32.mrf.mxu2  ;;  %v4677_v48 = vld [vmem:[%s7212_s1 + $0x40] sm:$0xff] }
 0x5bc   : > { %2537 = vmatpush.msrb.mxu0 %v2502_v36  ;;  %2602 = vmatpush.msrb.mxu1 %v2428_v61  ;;  %v4675_v61 = vld [vmem:[%s7212_s1 + $0x38] sm:$0xff] }
 0x5be   : > { %2538 = vmatpush.msrb.mxu0 %v2499_v40  ;;  %2603 = vmatpush.msrb.mxu1 %v2425_v18  ;;  %v4674_v40 = vld [vmem:[%s7212_s1 + $0xb8] sm:$0xff] }
 0x5c0   : > { %2539 = vmatpush.msrb.mxu0 %v2496_v38  ;;  %2604 = vmatpush.msrb.mxu1 %v2422_v13  ;;  %v4672_v13 = vld [vmem:[%s7212_s1 + $0xb0] sm:$0xff] }
 0x5c1   : > { %v4673_v38 = vld [vmem:[%s7212_s1 + $0x30] sm:$0xff] }
 0x5c2   : > { %2540 = vmatpush.msrb.mxu0 %v2493_v30  ;;  %2605 = vmatpush.msrb.mxu1 %v2419_v63  ;;  %v4671_v63 = vld [vmem:[%s7212_s1 + $0x28] sm:$0xff] }
 0x5c3   : > { %v6251_v60 = vpop.f32.mrf.mxu2 }
 0x5c4   : > { %2541 = vmatpush.msrb.mxu0 %v6217_v43  ;;  %2606 = vmatpush.msrb.mxu1 %v6215_v52  ;;  %v4670_v43 = vld [vmem:[%s7212_s1 + $0xa8] sm:$0xff] }
 0x5c6   : > { %2542 = vmatpush.msrb.mxu0 %v6209_v5  ;;  %2607 = vmatpush.msrb.mxu1 %v6207_v24  ;;  %v4668_v24 = vld [vmem:[%s7212_s1 + $0xa0] sm:$0xff] }
 0x5c7   : > { %v4669_v5 = vld [vmem:[%s7212_s1 + $0x20] sm:$0xff] }
 0x5c8   : > { %2543 = vmatpush.msrb.mxu0 %v6198_v59  ;;  %2608 = vmatpush.msrb.mxu1 %v6196_v34  ;;  %v4667_v34 = vld [vmem:[%s7212_s1 + $0x18] sm:$0xff] }
 0x5ca   : > { %2544 = vmatpush.msrb.mxu0 %v6184_v62  ;;  %2609 = vmatpush.msrb.mxu1 %v6182_v49  ;;  %v4666_v62 = vld [vmem:[%s7212_s1 + $0x98] sm:$0xff] }
 0x5cb   : > { %v6261_v11 = vpop.f32.mrf.mxu2  ;;  %2545 = vmatmul.f32.vlgmr.msrb.gmra.mxu0 %v4660_v50  ;;  %2610 = vmatmul.f32.vlgmr.msrb.gmra.mxu1 %v4661_v23  ;;  %v4680_v50 = vld [vmem:[%s7212_s1 + $0xd0] sm:$0xff] }
 0x5cc   : > { %v4681_v23 = vld [vmem:[%s7212_s1 + $0x50] sm:$0xff] }
 0x5d3   : > { %v6269_v9 = vpop.f32.mrf.mxu2  ;;  %2548 = vmatmul.f32.gmra.mxu0 %v4662_v55  ;;  %2613 = vmatmul.f32.gmra.mxu1 %v4663_v10  ;;  %v4682_v10 = vld [vmem:[%s7212_s1 + $0xd8] sm:$0xff] }
 0x5db   : > { %v6277_v28 = vpop.f32.mrf.mxu2  ;;  %2551 = vmatmul.f32.gmra.mxu0 %v4664_v31  ;;  %2616 = vmatmul.f32.gmra.mxu1 %v4665_v4  ;;  %v4683_v31 = vld [vmem:[%s7212_s1 + $0x58] sm:$0xff] }
 0x5e3   : > { %v6285_v49 = vpop.f32.mrf.mxu2  ;;  %2554 = vmatmul.f32.gmra.mxu0 %v4666_v62  ;;  %2619 = vmatmul.f32.gmra.mxu1 %v4667_v34  ;;  %v4684_v62 = vld [vmem:[%s7212_s1 + $0xe0] sm:$0xff] }
 0x5e4   : > { %v4685_v34 = vld [vmem:[%s7212_s1 + $0x60] sm:$0xff] }
 0x5eb   : > { %v2706_v59 = vpop.f32.mrf.mxu2  ;;  %2557 = vmatmul.f32.gmra.mxu0 %v4668_v24  ;;  %2622 = vmatmul.f32.gmra.mxu1 %v4669_v5  ;;  %v4686_v24 = vld [vmem:[%s7212_s1 + $0xe8] sm:$0xff] }
 0x5ec   : > { %v4687_v5 = vld [vmem:[%s7212_s1 + $0x68] sm:$0xff] }
 0x5f3   : > { %v2709_v52 = vpop.f32.mrf.mxu2  ;;  %2560 = vmatmul.f32.gmra.mxu0 %v4670_v43  ;;  %2625 = vmatmul.f32.gmra.mxu1 %v4671_v63  ;;  %v4688_v43 = vld [vmem:[%s7212_s1 + $0xf0] sm:$0xff] }
 0x5f4   : > { %v4689_v63 = vld [vmem:[%s7212_s1 + $0x70] sm:$0xff] }
 0x5fb   : > { %v2712_v30 = vpop.f32.mrf.mxu2  ;;  %2563 = vmatmul.f32.gmra.mxu0 %v4672_v13  ;;  %2628 = vmatmul.f32.gmra.mxu1 %v4673_v38  ;;  %v4700_v13 = vld [vmem:[%s7212_s1 + $0x140] sm:$0xff]  ;;  %v4701_v38 = vld [vmem:[%s7212_s1 + $0x148] sm:$0xff] }
 0x603   : > { %v2715_v18 = vpop.f32.mrf.mxu2  ;;  %2566 = vmatmul.f32.gmra.mxu0 %v4674_v40  ;;  %2631 = vmatmul.f32.gmra.mxu1 %v4675_v61  ;;  %v3335_v40 = vld [vmem:[%s7219_s8 + $0x38] sm:$0xff]  ;;  %v3334_v61 = vld [vmem:[%s7219_s8 + $0x30] sm:$0xff] }
 0x60b   : > { %v2718_v36 = vpop.f32.mrf.mxu2  ;;  %2569 = vmatmul.f32.gmra.mxu0 %v4676_v8  ;;  %2634 = vmatmul.f32.gmra.mxu1 %v4677_v48  ;;  %v3332_v8 = vld [vmem:[%s7219_s8 + $0x20] sm:$0xff]  ;;  %v4703_v48 = vld [vmem:[%s7212_s1 + $0x158] sm:$0xff] }
 0x613   : > { %v2721_v53 = vpop.f32.mrf.mxu2  ;;  %2572 = vmatmul.f32.gmra.mxu0 %v4678_v35  ;;  %2637 = vmatmul.f32.gmra.mxu1 %v4679_v41  ;;  %v3331_v35 = vld [vmem:[%s7219_s8 + $0x18] sm:$0xff]  ;;  %v2945_v41 = vld [vmem:[#allocation6 + $0x70] sm:$0xff] }
 0x61b   : > { %v2724_v46 = vpop.f32.mrf.mxu2  ;;  %2575 = vmatmul.f32.gmra.mxu0 %v4680_v50  ;;  %2640 = vmatmul.f32.gmra.mxu1 %v4681_v23  ;;  %v2944_v50 = vld [vmem:[#allocation6 + $0x68] sm:$0xff] }
 0x61c   : > { %v3329_v23 = vld [vmem:[%s7219_s8 + $0x8] sm:$0xff] }
 0x623   : > { %v2727_v55 = vpop.f32.mrf.mxu2  ;;  %2578 = vmatmul.f32.gmra.mxu0 %v4682_v10  ;;  %2643 = vmatmul.f32.gmra.mxu1 %v4683_v31  ;;  %v3328_v10 = vld [vmem:[%s7219_s8] sm:$0xff] }
 0x624   : > { %v4704_v31 = vld [vmem:[%s7212_s1 + $0x160] sm:$0xff] }
 0x62b   : > { %v2730_v4 = vpop.f32.mrf.mxu2  ;;  %2581 = vmatmul.f32.gmra.mxu0 %v4684_v62  ;;  %2646 = vmatmul.f32.gmra.mxu1 %v4685_v34  ;;  %v2942_v34 = vld [vmem:[#allocation6 + $0x58] sm:$0xff] }
 0x62c   : > { %2733 = vmatpush.msra.mxu3 %v2730_v4 }
 0x62e   : > { %2734 = vmatpush.msra.mxu3 %v2727_v55  ;;  %v2943_v55 = vld [vmem:[#allocation6 + $0x60] sm:$0xff] }
 0x630   : > { %2735 = vmatpush.msra.mxu3 %v2724_v46  ;;  %v3330_v46 = vld [vmem:[%s7219_s8 + $0x10] sm:$0xff] }
 0x632   : > { %2736 = vmatpush.msra.mxu3 %v2721_v53  ;;  %v2946_v53 = vld [vmem:[#allocation6 + $0x78] sm:$0xff] }
 0x633   : > { %2584 = vmatmul.f32.gmra.mxu0 %v4686_v24  ;;  %2649 = vmatmul.f32.gmra.mxu1 %v4687_v5  ;;  %v2941_v24 = vld [vmem:[#allocation6 + $0x50] sm:$0xff]  ;;  %v2940_v5 = vld [vmem:[#allocation6 + $0x48] sm:$0xff] }
 0x634   : > { %2737 = vmatpush.msra.mxu3 %v2718_v36  ;;  %v3333_v36 = vld [vmem:[%s7219_s8 + $0x28] sm:$0xff]  ;;  %3003 = vmatpush.msra.mxu0 %v2946_v53 }
 0x636   : > { %2738 = vmatpush.msra.mxu3 %v2715_v18  ;;  %v4702_v18 = vld [vmem:[%s7212_s1 + $0x150] sm:$0xff]  ;;  %3004 = vmatpush.msra.mxu0 %v2945_v41 }
 0x638   : > { %2739 = vmatpush.msra.mxu3 %v2712_v30  ;;  %v4691_v30 = vld [vmem:[%s7212_s1 + $0x78] sm:$0xff]  ;;  %3005 = vmatpush.msra.mxu0 %v2944_v50 }
 0x63a   : > { %2740 = vmatpush.msra.mxu3 %v2709_v52  ;;  %v4690_v52 = vld [vmem:[%s7212_s1 + $0xf8] sm:$0xff]  ;;  %3006 = vmatpush.msra.mxu0 %v2943_v55 }
 0x63b   : > { %2587 = vmatmul.f32.gmra.mxu0 %v4688_v43  ;;  %2652 = vmatmul.f32.gmra.mxu1 %v4689_v63  ;;  %v3181_v43 = vld [vmem:[#allocation6 + $0xb8] sm:$0xff]  ;;  %v2939_v63 = vld [vmem:[#allocation6 + $0x40] sm:$0xff] }
 0x63c   : > { %2741 = vmatpush.msra.mxu3 %v2706_v59  ;;  %v4699_v59 = vld [vmem:[%s7212_s1 + $0x138] sm:$0xff]  ;;  %3007 = vmatpush.msra.mxu0 %v2942_v34 }
 0x63d   : > { %3238 = vmatpush.msrb.mxu2 %v3181_v43 }
 0x63e   : > { %2742 = vmatpush.msra.mxu3 %v6285_v49  ;;  %v4698_v49 = vld [vmem:[%s7212_s1 + $0x130] sm:$0xff]  ;;  %3008 = vmatpush.msra.mxu0 %v2941_v24 }
 0x640   : > { %2743 = vmatpush.msra.mxu3 %v6277_v28  ;;  %v4693_v28 = vld [vmem:[%s7212_s1 + $0x108] sm:$0xff]  ;;  %3009 = vmatpush.msra.mxu0 %v2940_v5 }
 0x642   : > { %2744 = vmatpush.msra.mxu3 %v6269_v9  ;;  %v4692_v9 = vld [vmem:[%s7212_s1 + $0x100] sm:$0xff]  ;;  %3010 = vmatpush.msra.mxu0 %v2939_v63 }
 0x643   : > { %2590 = vmatmul.f32.gmra.mxu0 %v4690_v52  ;;  %2655 = vmatmul.f32.gmra.mxu1 %v4691_v30  ;;  %v3180_v52 = vld [vmem:[#allocation6 + $0xb0] sm:$0xff]  ;;  %v4705_v30 = vld [vmem:[%s7212_s1 + $0x168] sm:$0xff] }
 0x644   : > { %2745 = vmatpush.msra.mxu3 %v6261_v11  ;;  %v4694_v11 = vld [vmem:[%s7212_s1 + $0x110] sm:$0xff]  ;;  %3239 = vmatpush.msrb.mxu2 %v3180_v52 }
 0x646   : > { %2746 = vmatpush.msra.mxu3 %v6251_v60  ;;  %v4697_v60 = vld [vmem:[%s7212_s1 + $0x128] sm:$0xff] }
 0x648   : > { %2747 = vmatpush.msra.mxu3 %v6249_v0  ;;  %v4695_v0 = vld [vmem:[%s7212_s1 + $0x118] sm:$0xff]  ;;  %v2546_v4 = vpop.f32.mrf.mxu0  ;;  %v2611_v62 = vpop.f32.mrf.mxu1 }
 0x64a   : > { %2748 = vmatpush.msra.mxu3 %v6247_v1  ;;  %v4696_v1 = vld [vmem:[%s7212_s1 + $0x120] sm:$0xff] }
 0x64b   : > { %2749 = vmatmul.f32.vlgmr.msra.gmra.mxu3 %v4692_v9 }
 0x64c   : > { %3345 = vmatpush.msrb.mxu3 %v3335_v40  ;;  %v4707_v40 = vld [vmem:[%s7212_s1 + $0x178] sm:$0xff] }
 0x64e   : > { %3346 = vmatpush.msrb.mxu3 %v3334_v61 }
 0x650   : > { %3347 = vmatpush.msrb.mxu3 %v3333_v36  ;;  %v2549_v9 = vpop.f32.mrf.mxu0 }
 0x652   : > { %3348 = vmatpush.msrb.mxu3 %v3332_v8  ;;  %v2612_v8 = vadd.f32 %v2611_v62, %v2546_v4 }
 0x653   : > { %2752 = vmatmul.f32.gmra.mxu3 %v4693_v28  ;;  %v3179_v28 = vld [vmem:[#allocation6 + $0xa8] sm:$0xff] }
 0x654   : > { %3349 = vmatpush.msrb.mxu3 %v3331_v35  ;;  %3240 = vmatpush.msrb.mxu2 %v3179_v28 }
 0x656   : > { %3350 = vmatpush.msrb.mxu3 %v3330_v46 }
 0x658   : > { %3351 = vmatpush.msrb.mxu3 %v3329_v23 }
 0x65a   : > { %3352 = vmatpush.msrb.mxu3 %v3328_v10 }
 0x65b   : > { %2755 = vmatmul.f32.gmra.mxu3 %v4694_v11  ;;  %v2614_v11 = vpop.f32.mrf.mxu1 }
 0x65c   : > { %v2615_v50 = vadd.f32 %v2614_v11, %v2549_v9 }
 0x663   : > { %2758 = vmatmul.f32.gmra.mxu3 %v4695_v0  ;;  %v3178_v0 = vld [vmem:[#allocation6 + $0xa0] sm:$0xff] }
 0x664   : > { %3241 = vmatpush.msrb.mxu2 %v3178_v0 }
 0x66b   : > { %2761 = vmatmul.f32.gmra.mxu3 %v4696_v1  ;;  %v3177_v1 = vld [vmem:[#allocation6 + $0x98] sm:$0xff] }
 0x66c   : > { %3242 = vmatpush.msrb.mxu2 %v3177_v1 }
 0x673   : > { %2764 = vmatmul.f32.gmra.mxu3 %v4697_v60  ;;  %v3176_v60 = vld [vmem:[#allocation6 + $0x90] sm:$0xff] }
 0x674   : > { %3243 = vmatpush.msrb.mxu2 %v3176_v60 }
 0x67b   : > { %2767 = vmatmul.f32.gmra.mxu3 %v4698_v49  ;;  %v4706_v49 = vld [vmem:[%s7212_s1 + $0x170] sm:$0xff] }
 0x683   : > { %2770 = vmatmul.f32.gmra.mxu3 %v4699_v59  ;;  %v3175_v59 = vld [vmem:[#allocation6 + $0x88] sm:$0xff] }
 0x684   : > { %3244 = vmatpush.msrb.mxu2 %v3175_v59 }
 0x68b   : > { %2773 = vmatmul.f32.gmra.mxu3 %v4700_v13  ;;  %v2552_v13 = vpop.f32.mrf.mxu0 }
 0x693   : > { %2776 = vmatmul.f32.gmra.mxu3 %v4701_v38  ;;  %v3174_v38 = vld [vmem:[#allocation6 + $0x80] sm:$0xff]  ;;  %v2555_v61 = vpop.f32.mrf.mxu0 }
 0x694   : > { %3245 = vmatpush.msrb.mxu2 %v3174_v38 }
 0x69b   : > { %2779 = vmatmul.f32.gmra.mxu3 %v4702_v18  ;;  %v2617_v18 = vpop.f32.mrf.mxu1  ;;  %v2558_v41 = vpop.f32.mrf.mxu0 }
 0x6a3   : > { %2782 = vmatmul.f32.gmra.mxu3 %v4703_v48  ;;  %v2620_v36 = vpop.f32.mrf.mxu1  ;;  %v2561_v24 = vpop.f32.mrf.mxu0 }
 0x6a4   : > { %v2621_v11 = vadd.f32 %v2620_v36, %v2555_v61 }
 0x6ab   : > { %2785 = vmatmul.f32.gmra.mxu3 %v4704_v31  ;;  %v2623_v46 = vpop.f32.mrf.mxu1  ;;  %v2618_v31 = vadd.f32 %v2617_v18, %v2552_v13  ;;  %v2564_v1 = vpop.f32.mrf.mxu0 }
 0x6b3   : > { %2788 = vmatmul.f32.gmra.mxu3 %v4705_v30  ;;  %v2626_v5 = vpop.f32.mrf.mxu1 }
 0x6bb   : > { %2791 = vmatmul.f32.gmra.mxu3 %v4706_v49  ;;  %v2629_v59 = vpop.f32.mrf.mxu1 }
 0x6c3   : > { %2794 = vmatmul.f32.gmra.mxu3 %v4707_v40  ;;  %v2624_v40 = vadd.f32 %v2623_v46, %v2558_v41  ;;  %v2627_v41 = vadd.f32 %v2626_v5, %v2561_v24  ;;  %v2630_v24 = vadd.f32 %v2629_v59, %v2564_v1 }
 0x6cb   : > { %4469 = vmatmul.msk.f32.vlgmr.msrb.gmra.mxu3 %vm7501_vm15, %v5985_v42  ;;  %vm7507_vm15 = vmmov %vm7484_vm0 }
 0x6ce   : > { %v2750_v48 = vpop.f32.mrf.mxu3 }
 0x6cf   : > { %v2798_v53 = vadd.f32 %v2750_v48, %v2612_v8 }
 0x6d1   : > { %v6446_v35 = vmax.f32 %v2798_v53, 0.0  ;;  %v2567_v53 = vpop.f32.mrf.mxu0 }
 0x6d3   : > { %4421 = vmatmul.msk.f32.vlgmr.msra.gmra.mxu0 %vm7502_vm1, %v6446_v35  ;;  %4470 = vmatmul.msk.f32.gmra.mxu3 %vm7484_vm0, %v6012_v17  ;;  %v2830_v42 = vrot.slane %v6446_v35, 7  ;;  %v2878_v4 = vrot.slane %v6446_v35, 1  ;;  %vm7508_vm1 = vmmov %vm7484_vm0 }
 0x6d6   : > { %v2753_v23 = vpop.f32.mrf.mxu3 }
 0x6d7   : > { %v2799_v55 = vadd.f32 %v2753_v23, %v2615_v50  ;;  %v2632_v50 = vpop.f32.mrf.mxu1 }
 0x6d9   : > { %v2815_v10 = vmax.f32 %v2799_v55, 0.0 }
 0x6db   : > { %v2831_v62 = vrot.slane %v2815_v10, 7  ;;  %v2879_v34 = vrot.slane %v2815_v10, 1  ;;  %4422 = vmatmul.msk.f32.gmra.mxu0 %vm7503_vm14, %v2815_v10  ;;  %4471 = vmatmul.msk.f32.gmra.mxu3 %vm7504_vm4, %v6031_v25  ;;  %vm7509_vm14 = vmmov %vm7505_vm2 }
 0x6dc   : > { %vm7510_vm4 = vmmov %vm7506_vm5 }
 0x6dd   : > { %v2908_v17 = vsel %vm7505_vm2, %v2878_v4, %v2879_v34  ;;  %v6465_v43 = vsel %vm7506_vm5, %v2830_v42, %v2831_v62  ;;  %vm7512_vm2 = vmmov %vm7484_vm0 }
 0x6de   : > { %v2756_v63 = vpop.f32.mrf.mxu3  ;;  %v2910_v52 = vsel %vm5238_vm3, 0.0, %v2908_v17  ;;  %vm7511_vm3 = vmmov %vm7484_vm0  ;;  %v2570_v17 = vpop.f32.mrf.mxu0 }
 0x6df   : > { %v2800_v30 = vadd.f32 %v2756_v63, %v2618_v31  ;;  %4453 = vmatmul.msk.f32.vlgmr.msrb.gmra.mxu2 %vm7507_vm15, %v2910_v52  ;;  %vm7513_vm5 = vmmov %vm7484_vm0  ;;  %v2635_v63 = vpop.f32.mrf.mxu1 }
 0x6e0   : > { %vm7514_vm15 = vmmov %vm7509_vm14 }
 0x6e1   : > { %v2816_v25 = vmax.f32 %v2800_v30, 0.0 }
 0x6e3   : > { %v2832_v9 = vrot.slane %v2816_v25, 7  ;;  %v2880_v28 = vrot.slane %v2816_v25, 1  ;;  %4423 = vmatmul.msk.f32.gmra.mxu0 %vm7508_vm1, %v2816_v25  ;;  %4472 = vmatmul.msk.f32.gmra.mxu3 %vm7484_vm0, %v6049_v7  ;;  %vm7515_vm1 = vmmov %vm7510_vm4 }
 0x6e5   : > { %v2907_v0 = vsel %vm7509_vm14, %v2879_v34, %v2880_v28  ;;  %v6477_v33 = vsel %vm7510_vm4, %v2831_v62, %v2832_v9  ;;  %vm7517_vm14 = vmmov %vm7484_vm0 }
 0x6e6   : > { %v2759_v60 = vpop.f32.mrf.mxu3  ;;  %v2911_v49 = vsel %vm5267_vm6, 0.0, %v2907_v0  ;;  %vm7516_vm6 = vmmov %vm7484_vm0  ;;  %v2573_v1 = vpop.f32.mrf.mxu0 }
 0x6e7   : > { %v2801_v13 = vadd.f32 %v2759_v60, %v2621_v11  ;;  %4454 = vmatmul.msk.f32.gmra.mxu2 %vm7511_vm3, %v2911_v49  ;;  %vm7518_vm4 = vmmov %vm7514_vm15  ;;  %v2638_v60 = vpop.f32.mrf.mxu1 }
 0x6e8   : > { %vm7519_vm3 = vmmov %vm7515_vm1 }
 0x6e9   : > { %v2817_v38 = vmax.f32 %v2801_v13, 0.0 }
 0x6eb   : > { %v2833_v18 = vrot.slane %v2817_v38, 7  ;;  %v2881_v7 = vrot.slane %v2817_v38, 1  ;;  %4424 = vmatmul.msk.f32.gmra.mxu0 %vm7512_vm2, %v2817_v38  ;;  %4473 = vmatmul.msk.f32.gmra.mxu3 %vm7513_vm5, %v6066_v22  ;;  %vm7521_vm2 = vmmov %vm7484_vm0 }
 0x6ec   : > { %vm7522_vm5 = vmmov %vm7484_vm0 }
 0x6ed   : > { %v2906_v61 = vsel %vm7514_vm15, %v2880_v28, %v2881_v7  ;;  %v6489_v51 = vsel %vm7515_vm1, %v2832_v9, %v2833_v18  ;;  %vm7523_vm15 = vmmov %vm7518_vm4 }
 0x6ee   : > { %v2762_v36 = vpop.f32.mrf.mxu3  ;;  %v2912_v8 = vsel %vm5287_vm7, 0.0, %v2906_v61  ;;  %vm7520_vm7 = vmmov %vm7484_vm0 }
 0x6ef   : > { %v2802_v48 = vadd.f32 %v2762_v36, %v2624_v40  ;;  %4455 = vmatmul.msk.f32.gmra.mxu2 %vm7516_vm6, %v2912_v8  ;;  %vm7525_vm6 = vmmov %vm7484_vm0  ;;  %v2636_v40 = vadd.f32 %v2635_v63, %v2570_v17  ;;  %v2576_v36 = vpop.f32.mrf.mxu0 }
 0x6f1   : > { %v2818_v23 = vmax.f32 %v2802_v48, 0.0 }
 0x6f3   : > { %v2834_v55 = vrot.slane %v2818_v23, 7  ;;  %v2882_v22 = vrot.slane %v2818_v23, 1  ;;  %4425 = vmatmul.msk.f32.gmra.mxu0 %vm7484_vm0, %v2818_v23  ;;  %4474 = vmatmul.msk.f32.gmra.mxu3 %vm7517_vm14, %v6078_v37  ;;  %vm7526_vm14 = vmmov %vm7518_vm4 }
 0x6f5   : > { %v2905_v46 = vsel %vm7518_vm4, %v2881_v7, %v2882_v22  ;;  %v6501_v2 = vsel %vm7519_vm3, %v2833_v18, %v2834_v55  ;;  %vm7527_vm4 = vmmov %vm7515_vm1 }
 0x6f6   : > { %v2765_v10 = vpop.f32.mrf.mxu3  ;;  %v2913_v31 = vsel %vm5307_vm8, 0.0, %v2905_v46  ;;  %vm7524_vm8 = vmmov %vm7484_vm0 }
 0x6f7   : > { %v2803_v62 = vadd.f32 %v2765_v10, %v2627_v41  ;;  %4456 = vmatmul.msk.f32.gmra.mxu2 %vm7520_vm7, %v2913_v31  ;;  %vm7529_vm3 = vmmov %vm7484_vm0  ;;  %v2937_v41 = vld [vmem:[#allocation6 + $0x38] sm:$0xff] }
 0x6f8   : > { %vm7530_vm7 = vmmov %vm7484_vm0  ;;  %3116 = vmatpush.msra.mxu1 %v2937_v41 }
 0x6f9   : > { %v2819_v34 = vmax.f32 %v2803_v62, 0.0 }
 0x6fb   : > { %v2835_v52 = vrot.slane %v2819_v34, 7  ;;  %v2883_v37 = vrot.slane %v2819_v34, 1  ;;  %4426 = vmatmul.msk.f32.gmra.mxu0 %vm7521_vm2, %v2819_v34  ;;  %4475 = vmatmul.msk.f32.gmra.mxu3 %vm7522_vm5, %v6087_v32  ;;  %v2633_v32 = vadd.f32 %v2632_v50, %v2567_v53  ;;  %vm7531_vm2 = vmmov %vm7526_vm14  ;;  %v2641_v53 = vpop.f32.mrf.mxu1  ;;  %v2579_v34 = vpop.f32.mrf.mxu0 }
 0x6fc   : > { %vm7532_vm5 = vmmov %vm7515_vm1 }
 0x6fd   : > { %v2904_v5 = vsel %vm7523_vm15, %v2882_v22, %v2883_v37  ;;  %v6513_v19 = vsel %vm7515_vm1, %v2834_v55, %v2835_v52  ;;  %vm7534_vm15 = vmmov %vm7484_vm0  ;;  %v2639_v22 = vadd.f32 %v2638_v60, %v2573_v1  ;;  %v2935_v60 = vld [vmem:[#allocation6 + $0x28] sm:$0xff] }
 0x6fe   : > { %v2768_v30 = vpop.f32.mrf.mxu3  ;;  %v2914_v25 = vsel %vm5327_vm9, 0.0, %v2904_v5  ;;  %vm7528_vm9 = vmmov %vm7484_vm0 }
 0x6ff   : > { %v2804_v9 = vadd.f32 %v2768_v30, %v2630_v24  ;;  %4457 = vmatmul.msk.f32.gmra.mxu2 %vm7524_vm8, %v2914_v25  ;;  %vm7535_vm1 = vmmov %vm7484_vm0 }
 0x700   : > { %vm7536_vm8 = vmmov %vm7531_vm2 }
 0x701   : > { %v2820_v28 = vmax.f32 %v2804_v9, 0.0 }
 0x703   : > { %v2836_v11 = vrot.slane %v2820_v28, 7  ;;  %v2884_v0 = vrot.slane %v2820_v28, 1  ;;  %4427 = vmatmul.msk.f32.gmra.mxu0 %vm7525_vm6, %v2820_v28  ;;  %4476 = vmatmul.msk.f32.gmra.mxu3 %vm7484_vm0, %v6116_v20  ;;  %vm7538_vm6 = vmmov %vm7484_vm0  ;;  %v2644_v17 = vpop.f32.mrf.mxu1  ;;  %v2582_v28 = vpop.f32.mrf.mxu0 }
 0x704   : > { %v2645_v1 = vadd.f32 %v2644_v17, %v2579_v34 }
 0x705   : > { %v2903_v49 = vsel %vm7526_vm14, %v2883_v37, %v2884_v0  ;;  %v6525_v39 = vsel %vm7527_vm4, %v2835_v52, %v2836_v11  ;;  %vm7539_vm14 = vmmov %vm7484_vm0  ;;  %v2642_v37 = vadd.f32 %v2641_v53, %v2576_v36 }
 0x706   : > { %v2771_v59 = vpop.f32.mrf.mxu3  ;;  %v2915_v13 = vsel %vm5347_vm10, 0.0, %v2903_v49  ;;  %vm7533_vm10 = vmmov %vm7484_vm0  ;;  %v2934_v49 = vld [vmem:[#allocation6 + $0x20] sm:$0xff] }
 0x707   : > { %v2805_v38 = vadd.f32 %v2771_v59, %v2633_v32  ;;  %4458 = vmatmul.msk.f32.gmra.mxu2 %vm7528_vm9, %v2915_v13  ;;  %vm7541_vm9 = vmmov %vm7532_vm5 }
 0x709   : > { %v2821_v18 = vmax.f32 %v2805_v38, 0.0 }
 0x70b   : > { %v2837_v7 = vrot.slane %v2821_v18, 7  ;;  %v2885_v20 = vrot.slane %v2821_v18, 1  ;;  %4428 = vmatmul.msk.f32.gmra.mxu0 %vm7529_vm3, %v2821_v18  ;;  %4477 = vmatmul.msk.f32.gmra.mxu3 %vm7530_vm7, %v6126_v21  ;;  %vm7543_vm3 = vmmov %vm7484_vm0 }
 0x70c   : > { %vm7544_vm7 = vmmov %vm7484_vm0 }
 0x70d   : > { %v2902_v61 = vsel %vm7531_vm2, %v2884_v0, %v2885_v20  ;;  %v6537_v57 = vsel %vm7532_vm5, %v2836_v11, %v2837_v7  ;;  %v2936_v11 = vld [vmem:[#allocation6 + $0x30] sm:$0xff]  ;;  %v2647_v0 = vpop.f32.mrf.mxu1 }
 0x70e   : > { %v2774_v8 = vpop.f32.mrf.mxu3  ;;  %v2916_v48 = vsel %vm5367_vm11, 0.0, %v2902_v61  ;;  %vm7537_vm11 = vmmov %vm7527_vm4  ;;  %3117 = vmatpush.msra.mxu1 %v2936_v11  ;;  %v2648_v36 = vadd.f32 %v2647_v0, %v2582_v28 }
 0x70f   : > { %v2806_v50 = vadd.f32 %v2774_v8, %v2636_v40  ;;  %4459 = vmatmul.msk.f32.gmra.mxu2 %vm7533_vm10, %v2916_v48  ;;  %vm7540_vm4 = vmmov %vm7531_vm2  ;;  %v2585_v8 = vpop.f32.mrf.mxu0  ;;  %v2930_v48 = vld [vmem:[#allocation6] sm:$0xff] }
 0x710   : > { %3118 = vmatpush.msra.mxu1 %v2935_v60  ;;  %vm7548_vm10 = vmmov %vm7484_vm0 }
 0x711   : > { %v2822_v23 = vmax.f32 %v2806_v50, 0.0 }
 0x712   : > { %3119 = vmatpush.msra.mxu1 %v2934_v49 }
 0x713   : > { %v2838_v55 = vrot.slane %v2822_v23, 7  ;;  %v2886_v21 = vrot.slane %v2822_v23, 1  ;;  %4429 = vmatmul.msk.f32.gmra.mxu0 %vm7534_vm15, %v2822_v23  ;;  %4478 = vmatmul.msk.f32.gmra.mxu3 %vm7535_vm1, %v6136_v14  ;;  %vm7549_vm15 = vmmov %vm7484_vm0 }
 0x714   : > { %vm7550_vm1 = vmmov %vm7484_vm0 }
 0x715   : > { %v2901_v46 = vsel %vm7536_vm8, %v2885_v20, %v2886_v21  ;;  %v6549_v16 = vsel %vm7537_vm11, %v2837_v7, %v2838_v55  ;;  %v2932_v20 = vld [vmem:[#allocation6 + $0x10] sm:$0xff]  ;;  %v2650_v53 = vpop.f32.mrf.mxu1  ;;  %vm7551_vm8 = vmmov %vm7540_vm4 }
 0x716   : > { %v2777_v10 = vpop.f32.mrf.mxu3  ;;  %v2917_v31 = vsel %vm5387_vm12, 0.0, %v2901_v46  ;;  %vm7542_vm12 = vmmov %vm7484_vm0 }
 0x717   : > { %v2807_v62 = vadd.f32 %v2777_v10, %v2639_v22  ;;  %4460 = vmatmul.msk.f32.gmra.mxu2 %vm7538_vm6, %v2917_v31  ;;  %vm7553_vm6 = vnez %v7323_v58  ;;  %v2651_v10 = vadd.f32 %v2650_v53, %v2585_v8  ;;  %v7586_v53 = vld [vmem:[#allocation13_spill] sm:$0xff] }
 0x719   : > { %v2823_v14 = vmax.f32 %v2807_v62, 0.0  ;;  %v2588_v62 = vpop.f32.mrf.mxu0 }
 0x71b   : > { %v2839_v63 = vrot.slane %v2823_v14, 7  ;;  %v2887_v52 = vrot.slane %v2823_v14, 1  ;;  %4430 = vmatmul.msk.f32.gmra.mxu0 %vm7484_vm0, %v2823_v14  ;;  %4479 = vmatmul.msk.f32.gmra.mxu3 %vm7539_vm14, %v6146_v44  ;;  %vm7554_vm14 = vmmov %vm7484_vm0 }
 0x71d   : > { %v2900_v24 = vsel %vm7540_vm4, %v2886_v21, %v2887_v52  ;;  %v6561_v45 = vsel %vm7541_vm9, %v2838_v55, %v2839_v63  ;;  %vm7555_vm4 = vmmov %vm7484_vm0  ;;  %v2653_v14 = vpop.f32.mrf.mxu1 }
 0x71e   : > { %v2780_v5 = vpop.f32.mrf.mxu3  ;;  %v2918_v30 = vsel %vm5407_vm13, 0.0, %v2900_v24  ;;  %vm7545_vm13 = vmmov %vm7531_vm2  ;;  %v2654_v24 = vadd.f32 %v2653_v14, %v2588_v62 }
 0x71f   : > { %v2808_v25 = vadd.f32 %v2780_v5, %v2642_v37  ;;  %4461 = vmatmul.msk.f32.gmra.mxu2 %vm7542_vm12, %v2918_v30  ;;  %vm7546_vm2 = vmmov %vm7532_vm5  ;;  %vm7547_vm5 = vnez %v7321_v56  ;;  %v2931_v56 = vld [vmem:[#allocation6 + $0x8] sm:$0xff] }
 0x720   : > { %vm7552_vm11 = vmmov %vm7546_vm2 }
 0x721   : > { %v2824_v9 = vmax.f32 %v2808_v25, 0.0  ;;  %vm7556_vm9 = vmmov %vm7551_vm8  ;;  %v2591_v28 = vpop.f32.mrf.mxu0 }
 0x722   : > { %vm7557_vm12 = vmmov %vm7546_vm2 }
 0x723   : > { %v2840_v44 = vrot.slane %v2824_v9, 7  ;;  %v2888_v32 = vrot.slane %v2824_v9, 1  ;;  %4431 = vmatmul.msk.f32.gmra.mxu0 %vm7543_vm3, %v2824_v9  ;;  %4480 = vmatmul.msk.f32.gmra.mxu3 %vm7544_vm7, %v6155_v15  ;;  %v2933_v15 = vld [vmem:[#allocation6 + $0x18] sm:$0xff]  ;;  %vm7558_vm3 = vnez %v7325_v54  ;;  %vm7559_vm7 = vmmov %vm7484_vm0 }
 0x724   : > { %3120 = vmatpush.msra.mxu1 %v2933_v15 }
 0x725   : > { %v2899_v12 = vsel %vm7545_vm13, %v2887_v52, %v2888_v32  ;;  %v6573_v59 = vsel %vm7546_vm2, %v2839_v63, %v2840_v44  ;;  %vm7560_vm13 = vmmov %vm7484_vm0  ;;  %v2656_v11 = vpop.f32.mrf.mxu1 }
 0x726   : > { %v2783_v13 = vpop.f32.mrf.mxu3  ;;  %v2919_v38 = vsel %vm7547_vm5, 0.0, %v2899_v12  ;;  %3121 = vmatpush.msra.mxu1 %v2932_v20  ;;  %vm7561_vm2 = vmmov %vm7484_vm0  ;;  %v7570_v12 = vld [vmem:[#allocation9_spill] sm:$0xff] }
 0x727   : > { %v2809_v18 = vadd.f32 %v2783_v13, %v2645_v1  ;;  %4462 = vmatmul.msk.f32.gmra.mxu2 %vm7548_vm10, %v2919_v38  ;;  %vm7562_vm5 = vmmov %vm7551_vm8 }
 0x728   : > { %3122 = vmatpush.msra.mxu1 %v2931_v56  ;;  %vm7563_vm10 = vmmov %vm7552_vm11  ;;  %v7584_v56 = vld [vmem:[#allocation12_spill] sm:$0xff] }
 0x729   : > { %v2825_v7 = vmax.f32 %v2809_v18, 0.0 }
 0x72a   : > { %3123 = vmatpush.msra.mxu1 %v2930_v48 }
 0x72b   : > { %v2841_v40 = vrot.slane %v2825_v7, 7  ;;  %v2889_v61 = vrot.slane %v2825_v7, 1  ;;  %4432 = vmatmul.msk.f32.gmra.mxu0 %vm7549_vm15, %v2825_v7  ;;  %4481 = vmatmul.msk.f32.gmra.mxu3 %vm7550_vm1, %v6164_v26  ;;  %vm7564_vm15 = vnez %v7327_v3  ;;  %vm7565_vm1 = vmmov %vm7484_vm0 }
 0x72d   : > { %v2898_v50 = vsel %vm7551_vm8, %v2888_v32, %v2889_v61  ;;  %v6585_v23 = vsel %vm7552_vm11, %v2840_v44, %v2841_v40  ;;  %vm7566_vm8 = vmmov %vm7484_vm0 }
 0x72e   : > { %v2786_v55 = vpop.f32.mrf.mxu3  ;;  %v2920_v21 = vsel %vm7553_vm6, 0.0, %v2898_v50  ;;  %vm7567_vm11 = vmmov %vm7484_vm0 }
 0x72f   : > { %v2810_v22 = vadd.f32 %v2786_v55, %v2648_v36  ;;  %4463 = vmatmul.msk.f32.gmra.mxu2 %vm7484_vm0, %v2920_v21  ;;  %vm7568_vm6 = vmmov %vm7562_vm5  ;;  %v7579_v36 = vld [vmem:[#allocation11_spill] sm:$0xff]  ;;  %v7590_v55 = vld [vmem:[#allocation14_spill] sm:$0xff] }
 0x730   : > { %vm7569_vm0 = vmmov %vm7563_vm10 }
 0x731   : > { %v2826_v26 = vmax.f32 %v2810_v22, 0.0  ;;  %v7599_v22 = vld [vmem:[#allocation17_spill] sm:$0xff] }
 0x733   : > { %v2842_v41 = vrot.slane %v2826_v26, 7  ;;  %v2890_v46 = vrot.slane %v2826_v26, 1  ;;  %4433 = vmatmul.msk.f32.gmra.mxu0 %vm7554_vm14, %v2826_v26  ;;  %4482 = vmatmul.msk.f32.gmra.mxu3 %vm7555_vm4, %v6173_v47  ;;  %vm7571_vm14 = vnez %v7570_v12  ;;  %vm7572_vm4 = vmmov %vm7565_vm1 }
 0x735   : > { %v2897_v31 = vsel %vm7556_vm9, %v2889_v61, %v2890_v46  ;;  %v6597_v58 = vsel %vm7557_vm12, %v2841_v40, %v2842_v41  ;;  %vm7573_vm9 = vmmov %vm7565_vm1  ;;  %v7577_v40 = vld [vmem:[#allocation10_spill] sm:$0xff] }
 0x736   : > { %v2789_v34 = vpop.f32.mrf.mxu3  ;;  %v2921_v17 = vsel %vm7558_vm3, 0.0, %v2897_v31  ;;  %vm7574_vm12 = vmmov %vm7569_vm0 }
 0x737   : > { %v2811_v63 = vadd.f32 %v2789_v34, %v2651_v10  ;;  %4464 = vmatmul.msk.f32.gmra.mxu2 %vm7559_vm7, %v2921_v17  ;;  %vm7575_vm3 = vmmov %vm7562_vm5 }
 0x738   : > { %vm7576_vm7 = vmmov %vm7569_vm0 }
 0x739   : > { %v2827_v52 = vmax.f32 %v2811_v63, 0.0 }
 0x73b   : > { %v2843_v37 = vrot.slane %v2827_v52, 7  ;;  %v2891_v47 = vrot.slane %v2827_v52, 1  ;;  %4434 = vmatmul.msk.f32.gmra.mxu0 %vm7560_vm13, %v2827_v52  ;;  %4483 = vmatmul.msk.f32.gmra.mxu3 %vm7561_vm2, %v6188_v29  ;;  %v2657_v29 = vadd.f32 %v2656_v11, %v2591_v28  ;;  %vm7578_vm13 = vnez %v7577_v40  ;;  %v7622_v52 = vld [vmem:[#allocation25_spill] sm:$0xff] }
 0x73c   : > { %vm7580_vm2 = vnez %v7579_v36 }
 0x73d   : > { %v2896_v5 = vsel %vm7562_vm5, %v2890_v46, %v2891_v47  ;;  %v2848_v54 = vsel %vm7563_vm10, %v2842_v41, %v2843_v37  ;;  %vm7581_vm5 = vmmov %vm7565_vm1 }
 0x73e   : > { %v2792_v30 = vpop.f32.mrf.mxu3  ;;  %v2922_v25 = vsel %vm7564_vm15, 0.0, %v2896_v5  ;;  %vm7582_vm10 = vmmov %vm7565_vm1 }
 0x73f   : > { %v2812_v9 = vadd.f32 %v2792_v30, %v2654_v24  ;;  %4465 = vmatmul.msk.f32.gmra.mxu2 %vm7565_vm1, %v2922_v25  ;;  %vm7583_vm15 = vmmov %vm7575_vm3  ;;  %vm7585_vm1 = vnez %v7584_v56 }
 0x740   : > { %v2863_v48 = vsel %vm7585_vm1, 0.0, %v6465_v43 }
 0x741   : > { %v2828_v0 = vmax.f32 %v2812_v9, 0.0  ;;  %v7628_v9 = vld [vmem:[#allocation27_spill] sm:$0xff] }
 0x743   : > { %v2844_v44 = vrot.slane %v2828_v0, 7  ;;  %v2892_v32 = vrot.slane %v2828_v0, 1  ;;  %4435 = vmatmul.msk.f32.gmra.mxu0 %vm7566_vm8, %v2828_v0  ;;  %4484 = vmatmul.msk.f32.gmra.mxu3 %vm7567_vm11, %v6201_v6  ;;  %vm7587_vm8 = vnez %v7586_v53  ;;  %vm7588_vm11 = vmmov %vm7572_vm4 }
 0x745   : > { %v2895_v1 = vsel %vm7568_vm6, %v2891_v47, %v2892_v32  ;;  %v2847_v3 = vsel %vm7569_vm0, %v2843_v37, %v2844_v44  ;;  %vm7589_vm6 = vmmov %vm7572_vm4  ;;  %vm7591_vm0 = vnez %v7590_v55 }
 0x746   : > { %v2795_v60 = vpop.f32.mrf.mxu3  ;;  %v2923_v49 = vsel %vm7571_vm14, 0.0, %v2895_v1  ;;  %v2864_v21 = vsel %vm7591_vm0, 0.0, %v6477_v33  ;;  %vm7592_vm14 = vmmov %vm7572_vm4  ;;  %v7602_v33 = vld [vmem:[#allocation18_spill] sm:$0xff] }
 0x747   : > { %v2813_v13 = vadd.f32 %v2795_v60, %v2657_v29  ;;  %4466 = vmatmul.msk.f32.gmra.mxu2 %vm7572_vm4, %v2923_v49  ;;  %vm7594_vm4 = vnez %v7593_v27 }
 0x748   : > { %v2865_v35 = vsel %vm7594_vm4, 0.0, %v6489_v51  ;;  %v7605_v51 = vld [vmem:[#allocation19_spill] sm:$0xff] }
 0x749   : > { %v2829_v38 = vmax.f32 %v2813_v13, 0.0 }
 0x74b   : > { %v2845_v18 = vrot.slane %v2829_v38, 7  ;;  %v2893_v15 = vrot.slane %v2829_v38, 1  ;;  %4436 = vmatmul.msk.f32.gmra.mxu0 %vm7573_vm9, %v2829_v38  ;;  %vm7595_vm9 = vmmov %vm7581_vm5 }
 0x74d   : > { %v2861_v6 = vsel %vm7574_vm12, %v2845_v18, %v2830_v42  ;;  %v2894_v7 = vsel %vm7575_vm3, %v2892_v32, %v2893_v15  ;;  %v2846_v20 = vsel %vm7576_vm7, %v2844_v44, %v2845_v18  ;;  %v2909_v42 = vsel %vm7583_vm15, %v2893_v15, %v2878_v4  ;;  %v7596_v4 = vld [vmem:[#allocation16_spill] sm:$0xff]  ;;  %vm7598_vm3 = vmmov %vm7581_vm5  ;;  %v6709_v44 = vld [vmem:[%s7220_s9] ss:$0 sm:$0xff] }
 0x74e   : > { %v2862_v61 = vsel %vm7578_vm13, 0.0, %v2861_v6  ;;  %v2924_v8 = vsel %vm7580_vm2, 0.0, %v2894_v7  ;;  %v2925_v50 = vsel %vm7587_vm8, 0.0, %v2909_v42  ;;  %vm7597_vm12 = vnez %v7596_v4  ;;  %vm7601_vm13 = vmmov %vm7598_vm3  ;;  %v3354_v14 = vpop.f32.mrf.mxu3 }
 0x74f   : > { %4437 = vmatmul.msk.f32.vlgmr.msra.gmra.mxu1 %vm7581_vm5, %v2862_v61  ;;  %4467 = vmatmul.msk.f32.gmra.mxu2 %vm7582_vm10, %v2924_v8  ;;  %v2866_v43 = vsel %vm7597_vm12, 0.0, %v6501_v2  ;;  %vm7600_vm7 = vnez %v7599_v22  ;;  %vm7603_vm2 = vnez %v7602_v33  ;;  %vm7604_vm5 = vmmov %vm7598_vm3  ;;  %vm7606_vm10 = vnez %v7605_v51  ;;  %v7608_v2 = vld [vmem:[#allocation20_spill] sm:$0xff] }
 0x750   : > { %v2867_v26 = vsel %vm7600_vm7, 0.0, %v6513_v19  ;;  %v2868_v41 = vsel %vm7603_vm2, 0.0, %v6525_v39  ;;  %v2869_v46 = vsel %vm7606_vm10, 0.0, %v6537_v57  ;;  %vm7607_vm15 = vmmov %vm7598_vm3  ;;  %vm7609_vm1 = vnez %v7608_v2  ;;  %v7611_v19 = vld [vmem:[#allocation21_spill] sm:$0xff]  ;;  %v7614_v39 = vld [vmem:[#allocation22_spill] sm:$0xff] }
 0x751   : > { %v2870_v10 = vsel %vm7609_vm1, 0.0, %v6549_v16  ;;  %vm7610_vm8 = vmmov %vm7598_vm3  ;;  %vm7615_vm0 = vnez %v7614_v39  ;;  %v7617_v57 = vld [vmem:[#allocation23_spill] sm:$0xff]  ;;  %v7620_v16 = vld [vmem:[#allocation24_spill] sm:$0xff]  ;;  %vm7623_vm7 = vnez %v7622_v52  ;;  %vm7629_vm10 = vnez %v7628_v9 }
 0x752   : > { %v2872_v62 = vsel %vm7615_vm0, 0.0, %v6573_v59  ;;  %vm7618_vm4 = vnez %v7617_v57  ;;  %vm7621_vm12 = vnez %v7620_v16  ;;  %v2875_v59 = vsel %vm7623_vm7, 0.0, %v2848_v54  ;;  %v6704_v54 = vld [vmem:[%s7220_s9 + $0x1] ss:$0 sm:$0xff]  ;;  %vm7631_vm1 = vmmov %vm7598_vm3 }
 0x753   : > { %v2873_v34 = vsel %vm7618_vm4, 0.0, %v6585_v23  ;;  %v2874_v17 = vsel %vm7621_vm12, 0.0, %v6597_v58  ;;  %v7625_v23 = vld [vmem:[#allocation26_spill] sm:$0xff]  ;;  %v2877_v28 = vsel %vm7629_vm10, 0.0, %v2846_v20  ;;  %v3355_v60 = vadd.f32 %v6704_v54, %v3354_v14  ;;  %vm7635_vm0 = vmmov %vm7631_vm1 }
 0x754   : > { %vm7626_vm2 = vnez %v7625_v23  ;;  %vm7637_vm4 = vmmov %vm7635_vm0 }
 0x755   : > { %v2876_v5 = vsel %vm7626_vm2, 0.0, %v2847_v3  ;;  %vm7640_vm12 = vmmov %vm7635_vm0 }
 0x756   : > { %v3357_v47 = vpop.f32.mrf.mxu3  ;;  %vm7642_vm7 = vmmov %vm7635_vm0 }
 0x757   : > { %4438 = vmatmul.msk.f32.gmra.mxu1 %vm7588_vm11, %v2863_v48  ;;  %4468 = vmatmul.msk.f32.gmra.mxu2 %vm7589_vm6, %v2925_v50  ;;  %vm7612_vm11 = vnez %v7611_v19  ;;  %vm7613_vm6 = vmmov %vm7598_vm3  ;;  %v3358_v20 = vadd.f32 %v6704_v54, %v3357_v47 }
 0x758   : > { %v2871_v31 = vsel %vm7612_vm11, 0.0, %v6561_v45  ;;  %v3012_v45 = vpop.f32.mrf.mxu0  ;;  %vm7633_vm11 = vmmov %vm7631_vm1 }
 0x759   : > { %vm7644_vm2 = vmmov %vm7635_vm0 }
 0x75a   : > { %vm7646_vm10 = vmmov %vm7635_vm0 }
 0x75e   : > { %v3360_v58 = vpop.f32.mrf.mxu3 }
 0x75f   : > { %4439 = vmatmul.msk.f32.gmra.mxu1 %vm7592_vm14, %v2864_v21  ;;  %vm7616_vm14 = vmmov %vm7598_vm3  ;;  %v3361_v55 = vadd.f32 %v6704_v54, %v3360_v58 }
 0x760   : > { %v3015_v37 = vpop.f32.mrf.mxu0 }
 0x762   : > { %v3247_v63 = vpop.f32.mrf.mxu2 }
 0x766   : > { %v3363_v29 = vpop.f32.mrf.mxu3 }
 0x767   : > { %4440 = vmatmul.msk.f32.gmra.mxu1 %vm7595_vm9, %v2865_v35  ;;  %vm7619_vm9 = vmmov %vm7598_vm3 }
 0x768   : > { %v3018_v30 = vpop.f32.mrf.mxu0 }
 0x76a   : > { %v3250_v24 = vpop.f32.mrf.mxu2 }
 0x76e   : > { %v3366_v40 = vpop.f32.mrf.mxu3 }
 0x76f   : > { %4441 = vmatmul.msk.f32.gmra.mxu1 %vm7598_vm3, %v2866_v43 }
 0x770   : > { %v3021_v32 = vpop.f32.mrf.mxu0 }
 0x772   : > { %v3253_v25 = vpop.f32.mrf.mxu2 }
 0x776   : > { %v3369_v35 = vpop.f32.mrf.mxu3 }
 0x777   : > { %4442 = vmatmul.msk.f32.gmra.mxu1 %vm7601_vm13, %v2867_v26  ;;  %vm7624_vm13 = vmmov %vm7598_vm3  ;;  %v3370_v58 = vadd.f32 %v6704_v54, %v3369_v35 }
 0x778   : > { %v3024_v7 = vpop.f32.mrf.mxu0 }
 0x77a   : > { %v3256_v3 = vpop.f32.mrf.mxu2 }
 0x77e   : > { %v3372_v39 = vpop.f32.mrf.mxu3 }
 0x77f   : > { %4443 = vmatmul.msk.f32.gmra.mxu1 %vm7604_vm5, %v2868_v41  ;;  %vm7627_vm5 = vmmov %vm7598_vm3 }
 0x780   : > { %v3027_v27 = vpop.f32.mrf.mxu0 }
 0x782   : > { %v3259_v36 = vpop.f32.mrf.mxu2 }
 0x787   : > { %4444 = vmatmul.msk.f32.gmra.mxu1 %vm7607_vm15, %v2869_v46  ;;  %vm7630_vm15 = vmmov %vm7598_vm3  ;;  %v3364_v46 = vadd.f32 %v6704_v54, %v3363_v29 }
 0x788   : > { %v3030_v19 = vpop.f32.mrf.mxu0 }
 0x78a   : > { %v3262_v43 = vpop.f32.mrf.mxu2 }
 0x78f   : > { %4445 = vmatmul.msk.f32.gmra.mxu1 %vm7610_vm8, %v2870_v10  ;;  %vm7632_vm8 = vmmov %vm7631_vm1 }
 0x790   : > { %v3033_v47 = vpop.f32.mrf.mxu0 }
 0x797   : > { %4446 = vmatmul.msk.f32.gmra.mxu1 %vm7613_vm6, %v2871_v31  ;;  %vm7634_vm6 = vmmov %vm7631_vm1 }
 0x79f   : > { %4447 = vmatmul.msk.f32.gmra.mxu1 %vm7616_vm14, %v2872_v62  ;;  %vm7636_vm14 = vmmov %vm7635_vm0 }
 0x7a7   : > { %4448 = vmatmul.msk.f32.gmra.mxu1 %vm7619_vm9, %v2873_v34  ;;  %v3265_v34 = vpop.f32.mrf.mxu2  ;;  %vm7639_vm9 = vmmov %vm7635_vm0 }
 0x7af   : > { %4449 = vmatmul.msk.f32.gmra.mxu1 %vm7598_vm3, %v2874_v17  ;;  %vm7641_vm3 = vmmov %vm7635_vm0 }
 0x7b7   : > { %4450 = vmatmul.msk.f32.gmra.mxu1 %vm7624_vm13, %v2875_v59  ;;  %vm7643_vm13 = vmmov %vm7635_vm0 }
 0x7bf   : > { %4451 = vmatmul.msk.f32.gmra.mxu1 %vm7627_vm5, %v2876_v5  ;;  %vm7645_vm5 = vmmov %vm7635_vm0 }
 0x7c7   : > { %4452 = vmatmul.msk.f32.gmra.mxu1 %vm7630_vm15, %v2877_v28  ;;  %vm7647_vm15 = vmmov %vm7635_vm0 }
 0x7cc   : > { %v3125_v11 = vpop.f32.mrf.mxu1 }
 0x7cd   : > { %v3126_v0 = vadd.f32 %v3125_v11, %v3012_v45  ;;  %v3367_v45 = vadd.f32 %v6704_v54, %v3366_v40 }
 0x7cf   : > { %v3295_v1 = vadd.f32 %v3247_v63, %v3126_v0 }
 0x7d1   : > { %v3312_v12 = vadd.f32 %v6709_v44, %v3295_v1  ;;  %v3036_v1 = vpop.f32.mrf.mxu0 }
 0x7d3   : > { %v6713_v49 = vadd.f32 %v3355_v60, %v3312_v12 }
 0x7d4   : > { %v3128_v13 = vpop.f32.mrf.mxu1 }
 0x7d5   : > { %v3129_v38 = vadd.f32 %v3128_v13, %v3015_v37  ;;  %v3418_v18 = vmax.f32 %v6713_v49, 0.0 }
 0x7d7   : > { %v3296_v15 = vadd.f32 %v3250_v24, %v3129_v38  ;;  %v3434_v6 = vsel %vm7631_vm1, %v3418_v18, 0.0  ;;  %v3375_v24 = vpop.f32.mrf.mxu3  ;;  %vm7648_vm1 = vmmov %vm7635_vm0 }
 0x7d8   : > { %3435 = vadd.xlane.f32.xlu2 %v3434_v6 }
 0x7d9   : > { %v3313_v61 = vadd.f32 %v6709_v44, %v3296_v15 }
 0x7db   : > { %v6721_v8 = vadd.f32 %v3358_v20, %v3313_v61  ;;  %v3039_v20 = vpop.f32.mrf.mxu0 }
 0x7dc   : > { %v3131_v42 = vpop.f32.mrf.mxu1 }
 0x7dd   : > { %v3132_v56 = vadd.f32 %v3131_v42, %v3018_v30  ;;  %v3419_v48 = vmax.f32 %v6721_v8, 0.0  ;;  %v3268_v30 = vpop.f32.mrf.mxu2 }
 0x7df   : > { %v3297_v53 = vadd.f32 %v3253_v25, %v3132_v56  ;;  %v3437_v50 = vsel %vm7632_vm8, %v3419_v48, 0.0  ;;  %v3378_v60 = vpop.f32.mrf.mxu3  ;;  %vm7649_vm8 = vmmov %vm7635_vm0 }
 0x7e0   : > { %3438 = vadd.xlane.f32.xlu0 %v3437_v50 }
 0x7e1   : > { %v3314_v21 = vadd.f32 %v6709_v44, %v3297_v53 }
 0x7e3   : > { %v6729_v4 = vadd.f32 %v3361_v55, %v3314_v21  ;;  %v3042_v42 = vpop.f32.mrf.mxu0 }
 0x7e4   : > { %v3134_v22 = vpop.f32.mrf.mxu1 }
 0x7e5   : > { %v3135_v26 = vadd.f32 %v3134_v22, %v3021_v32  ;;  %v3420_v33 = vmax.f32 %v6729_v4, 0.0  ;;  %v3271_v13 = vpop.f32.mrf.mxu2 }
 0x7e7   : > { %v3298_v41 = vadd.f32 %v3256_v3, %v3135_v26  ;;  %v3440_v51 = vsel %vm7633_vm11, %v3420_v33, 0.0  ;;  %v3373_v3 = vadd.f32 %v6704_v54, %v3372_v39  ;;  %v3381_v40 = vpop.f32.mrf.mxu3  ;;  %vm7650_vm11 = vmmov %vm7635_vm0 }
 0x7e8   : > { %3441 = vadd.xlane.f32.xlu1 %v3440_v51 }
 0x7e9   : > { %v3315_v2 = vadd.f32 %v6709_v44, %v3298_v41 }
 0x7eb   : > { %v6737_v10 = vadd.f32 %v3364_v46, %v3315_v2  ;;  %v6769_v21 = vpop.f32.mrf.mxu0 }
 0x7ec   : > { %v3137_v31 = vpop.f32.mrf.mxu1 }
 0x7ed   : > { %v3138_v62 = vadd.f32 %v3137_v31, %v3024_v7  ;;  %v3421_v57 = vmax.f32 %v6737_v10, 0.0  ;;  %v3274_v61 = vpop.f32.mrf.mxu2 }
 0x7ef   : > { %v3299_v16 = vadd.f32 %v3259_v36, %v3138_v62  ;;  %v3443_v17 = vsel %vm7634_vm6, %v3421_v57, 0.0  ;;  %v6767_v53 = vpop.f32.mrf.mxu3  ;;  %vm7651_vm6 = vmmov %vm7635_vm0 }
 0x7f0   : > { %3444 = vadd.xlane.f32.xlu2 %v3443_v17 }
 0x7f1   : > { %v3316_v14 = vadd.f32 %v6709_v44, %v3299_v16 }
 0x7f3   : > { %v6745_v63 = vadd.f32 %v3367_v45, %v3316_v14  ;;  %v6775_v22 = vpop.f32.mrf.mxu0 }
 0x7f4   : > { %v3140_v52 = vpop.f32.mrf.mxu1 }
 0x7f5   : > { %v3141_v59 = vadd.f32 %v3140_v52, %v3027_v27  ;;  %v3422_v37 = vmax.f32 %v6745_v63, 0.0  ;;  %v3277_v50 = vpop.f32.mrf.mxu2 }
 0x7f7   : > { %v3300_v23 = vadd.f32 %v3262_v43, %v3141_v59  ;;  %v3446_v5 = vsel %vm7635_vm0, %v3422_v37, 0.0  ;;  %v6771_v27 = vpop.f32.mrf.mxu3 }
 0x7f8   : > { %3447 = vadd.xlane.f32.xlu0 %v3446_v5 }
 0x7f9   : > { %v3317_v25 = vadd.f32 %v6709_v44, %v3300_v23 }
 0x7fb   : > { %v6753_v9 = vadd.f32 %v3370_v58, %v3317_v25  ;;  %v6783_v46 = vpop.f32.mrf.mxu0  ;;  %v7638_v25 = vld [vmem:[#allocation28_spill] sm:$0xff] }
 0x7fc   : > { %v3143_v28 = vpop.f32.mrf.mxu1 }
 0x7fd   : > { %v3144_v11 = vadd.f32 %v3143_v28, %v3030_v19  ;;  %v3423_v0 = vmax.f32 %v6753_v9, 0.0  ;;  %v6773_v35 = vpop.f32.mrf.mxu2 }
 0x7ff   : > { %v3301_v32 = vadd.f32 %v3265_v34, %v3144_v11  ;;  %v3449_v29 = vsel %vm7636_vm14, %v3423_v0, 0.0  ;;  %v6777_v26 = vpop.f32.mrf.mxu3  ;;  %vm7652_vm14 = vmmov %vm7635_vm0 }
 0x800   : > { %3450 = vadd.xlane.f32.xlu1 %v3449_v29 }
 0x801   : > { %v3318_v12 = vadd.f32 %v6709_v44, %v3301_v32 }
 0x803   : > { %v6761_v38 = vadd.f32 %v3373_v3, %v3318_v12  ;;  %v3054_v39 = vpop.f32.mrf.mxu0  ;;  %v3376_v3 = vadd.f32 %v6704_v54, %v3375_v24 }
 0x804   : > { %v3146_v15 = vpop.f32.mrf.mxu1 }
 0x805   : > { %v3424_v6 = vmax.f32 %v6761_v38, 0.0  ;;  %v6779_v41 = vpop.f32.mrf.mxu2  ;;  %v3147_v23 = vadd.f32 %v3146_v15, %v3033_v47 }
 0x807   : > { %v3452_v7 = vsel %vm7637_vm4, %v3424_v6, 0.0  ;;  %v6785_v2 = vpop.f32.mrf.mxu3  ;;  %v3302_v5 = vadd.f32 %v3268_v30, %v3147_v23  ;;  %vm7653_vm4 = vmmov %vm7635_vm0 }
 0x808   : > { %3453 = vadd.xlane.f32.xlu0 %v3452_v7 }
 0x809   : > { %v3319_v29 = vadd.f32 %v6709_v44, %v3302_v5 }
 0x80b   : > { %v6805_v47 = vadd.f32 %v3376_v3, %v3319_v29 }
 0x80c   : > { %v3149_v36 = vpop.f32.mrf.mxu1 }
 0x80d   : > { %v6787_v19 = vpop.f32.mrf.mxu2  ;;  %v3150_v11 = vadd.f32 %v3149_v36, %v3036_v1  ;;  %v3425_v24 = vmax.f32 %v6805_v47, 0.0  ;;  %v3379_v36 = vadd.f32 %v6704_v54, %v3378_v60 }
 0x80f   : > { %v3396_v16 = vpop.f32.mrf.mxu3  ;;  %v3303_v7 = vadd.f32 %v3271_v13, %v3150_v11 }
 0x810   : > { %v3397_v14 = vadd.f32 %v6704_v54, %v3396_v16 }
 0x811   : > { %v3320_v49 = vadd.f32 %v6709_v44, %v3303_v7 }
 0x814   : > { %v3152_v56 = vpop.f32.mrf.mxu1 }
 0x815   : > { %v3289_v17 = vpop.f32.mrf.mxu2 }
 0x817   : > { %v3399_v38 = vpop.f32.mrf.mxu3 }
 0x81c   : > { %v3155_v55 = vpop.f32.mrf.mxu1 }
 0x81d   : > { %v3156_v60 = vadd.f32 %v3155_v55, %v3042_v42 }
 0x824   : > { %v3158_v43 = vpop.f32.mrf.mxu1 }
 0x82c   : > { %v6781_v51 = vpop.f32.mrf.mxu1 }
 0x834   : > { %v6789_v31 = vpop.f32.mrf.mxu1 }
 0x83c   : > { %v3167_v62 = vpop.f32.mrf.mxu1 }
 0x83d   : > { %v3168_v34 = vadd.f32 %v3167_v62, %v3054_v39 }
 0x83f   : > { %v3309_v45 = vadd.f32 %v3289_v17, %v3168_v34  ;;  %v3455_v34 = vsel %vm7640_vm12, %v3425_v24, 0.0  ;;  %v6821_v17 = vadd.f32 %v3379_v36, %v3320_v49 }
 0x841   : > { %v3326_v52 = vadd.f32 %v6709_v44, %v3309_v45  ;;  %v3382_v45 = vadd.f32 %v6704_v54, %v3381_v40  ;;  %v3159_v40 = vadd.f32 %v3158_v43, %v6769_v21 }
 0x843   : > { %v6793_v59 = vadd.f32 %v3397_v14, %v3326_v52  ;;  %v3305_v52 = vadd.f32 %v3277_v50, %v3156_v60  ;;  %v3306_v29 = vadd.f32 %v6773_v35, %v3159_v40 }
 0x844   : > { %v3170_v9 = vpop.f32.mrf.mxu1 }
 0x84b   : > { %v3436_v58 = vpop.xlane.xlu2 %3435 }
 0x84c   : > { %v3482_v28 = vmul.f32 %v3436_v58, %v7638_v25 }
 0x84e   : > { %v6798_v32 = vsub.f32 %v3418_v18, %v3482_v28  ;;  %v3153_v18 = vadd.f32 %v3152_v56, %v3039_v20  ;;  %v3385_v28 = vadd.f32 %v6704_v54, %v6767_v53  ;;  %v3323_v53 = vadd.f32 %v6709_v44, %v3306_v29 }
 0x850   : > { %v3514_v12 = vmul.f32 %v6798_v32, %v6798_v32  ;;  %v3304_v62 = vadd.f32 %v3274_v61, %v3153_v18  ;;  %v3426_v61 = vmax.f32 %v6821_v17, 0.0  ;;  %v3165_v18 = vadd.f32 %v6789_v31, %v6783_v46 }
 0x852   : > { %v3530_v39 = vsel %vm7639_vm9, %v3514_v12, 0.0  ;;  %v3321_v20 = vadd.f32 %v6709_v44, %v3304_v62  ;;  %v3458_v5 = vsel %vm7643_vm13, %v3426_v61, 0.0  ;;  %v3162_v12 = vadd.f32 %v6781_v51, %v6775_v22  ;;  %vm7655_vm13 = vmmov %vm7635_vm0 }
 0x853   : > { %3531 = vadd.xlane.f32.xlu2 %v3530_v39  ;;  %v3439_v30 = vpop.xlane.xlu0 %3438  ;;  %v3388_v39 = vadd.f32 %v6704_v54, %v6771_v27 }
 0x854   : > { %v3483_v1 = vmul.f32 %v3439_v30, %v7638_v25  ;;  %v6837_v58 = vadd.f32 %v3382_v45, %v3321_v20  ;;  %v3394_v45 = vadd.f32 %v6704_v54, %v6785_v2 }
 0x855   : > { %v6876_v51 = vadd.f32 %v3388_v39, %v3323_v53  ;;  %v3821_v53 = vld [vmem:[%s7221_s10 + $0x8] sm:$0xff] }
 0x856   : > { %v6811_v15 = vsub.f32 %v3419_v48, %v3483_v1  ;;  %v3427_v55 = vmax.f32 %v6837_v58, 0.0  ;;  %v3307_v1 = vadd.f32 %v6779_v41, %v3162_v12  ;;  %v3820_v12 = vld [vmem:[%s7221_s10] sm:$0xff] }
 0x857   : > { %v3429_v36 = vmax.f32 %v6876_v51, 0.0 }
 0x858   : > { %v3515_v13 = vmul.f32 %v6811_v15, %v6811_v15  ;;  %v3461_v21 = vsel %vm7645_vm5, %v3427_v55, 0.0  ;;  %v3324_v27 = vadd.f32 %v6709_v44, %v3307_v1 }
 0x859   : > { %v3467_v46 = vsel %vm7649_vm8, %v3429_v36, 0.0 }
 0x85a   : > { %v3533_v16 = vsel %vm7641_vm3, %v3515_v13, 0.0  ;;  %v3391_v13 = vadd.f32 %v6704_v54, %v6777_v26  ;;  %v3057_v26 = vpop.f32.mrf.mxu0 }
 0x85b   : > { %3456 = vadd.xlane.f32.xlu2 %v3455_v34  ;;  %v3442_v8 = vpop.xlane.xlu1 %3441  ;;  %3534 = vadd.xlane.f32.xlu1 %v3533_v16  ;;  %v3308_v34 = vadd.f32 %v6787_v19, %v3165_v18  ;;  %v3171_v20 = vadd.f32 %v3170_v9, %v3057_v26 }
 0x85c   : > { %v3484_v48 = vmul.f32 %v3442_v8, %v7638_v25  ;;  %v6896_v31 = vadd.f32 %v3391_v13, %v3324_v27 }
 0x85e   : > { %v6827_v56 = vsub.f32 %v3420_v33, %v3484_v48  ;;  %v3322_v33 = vadd.f32 %v6709_v44, %v3305_v52  ;;  %v3325_v48 = vadd.f32 %v6709_v44, %v3308_v34  ;;  %v3430_v60 = vmax.f32 %v6896_v31, 0.0  ;;  %v3292_v52 = vpop.f32.mrf.mxu2 }
 0x860   : > { %v3516_v14 = vmul.f32 %v6827_v56, %v6827_v56  ;;  %v6856_v43 = vadd.f32 %v3385_v28, %v3322_v33  ;;  %v3400_v33 = vadd.f32 %v6704_v54, %v3399_v38  ;;  %v3826_v54 = vld [vmem:[%s7221_s10 + $0x30] sm:$0xff] }
 0x862   : > { %v3536_v23 = vsel %vm7642_vm7, %v3516_v14, 0.0  ;;  %v3428_v7 = vmax.f32 %v6856_v43, 0.0  ;;  %vm7654_vm7 = vmmov %vm7635_vm0 }
 0x863   : > { %v3445_v42 = vpop.xlane.xlu2 %3444  ;;  %3537 = vadd.xlane.f32.xlu0 %v3536_v23  ;;  %3459 = vadd.xlane.f32.xlu1 %v3458_v5  ;;  %v3310_v23 = vadd.f32 %v3292_v52, %v3171_v20  ;;  %v3470_v5 = vsel %vm7650_vm11, %v3430_v60, 0.0 }
 0x864   : > { %v3485_v4 = vmul.f32 %v3445_v42, %v7638_v25  ;;  %v3464_v49 = vsel %vm7646_vm10, %v3428_v7, 0.0 }
 0x866   : > { %v6844_v50 = vsub.f32 %v3421_v57, %v3485_v4  ;;  %v6913_v4 = vadd.f32 %v3394_v45, %v3325_v48 }
 0x868   : > { %v3517_v11 = vmul.f32 %v6844_v50, %v6844_v50  ;;  %v3431_v2 = vmax.f32 %v6913_v4, 0.0 }
 0x86a   : > { %v3539_v3 = vsel %vm7644_vm2, %v3517_v11, 0.0  ;;  %v3473_v40 = vsel %vm7635_vm0, %v3431_v2, 0.0 }
 0x86b   : > { %3540 = vadd.xlane.f32.xlu2 %v3539_v3  ;;  %3462 = vadd.xlane.f32.xlu0 %v3461_v21  ;;  %v3448_v10 = vpop.xlane.xlu0 %3447  ;;  %v3825_v3 = vld [vmem:[%s7221_s10 + $0x28] sm:$0xff]  ;;  %v3824_v21 = vld [vmem:[%s7221_s10 + $0x20] sm:$0xff] }
 0x86c   : > { %v3486_v57 = vmul.f32 %v3448_v10, %v7638_v25  ;;  %v3823_v10 = vld [vmem:[%s7221_s10 + $0x18] sm:$0xff] }
 0x86e   : > { %v6864_v35 = vsub.f32 %v3422_v37, %v3486_v57  ;;  %v3822_v57 = vld [vmem:[%s7221_s10 + $0x10] sm:$0xff] }
 0x870   : > { %v3518_v30 = vmul.f32 %v6864_v35, %v6864_v35 }
 0x872   : > { %v3542_v22 = vsel %vm7647_vm15, %v3518_v30, 0.0  ;;  %vm7656_vm15 = vmmov %vm7635_vm0 }
 0x873   : > { %3465 = vadd.xlane.f32.xlu2 %v3464_v49  ;;  %v3451_v63 = vpop.xlane.xlu1 %3450  ;;  %3543 = vadd.xlane.f32.xlu1 %v3542_v22 }
 0x874   : > { %v3487_v37 = vmul.f32 %v3451_v63, %v7638_v25 }
 0x876   : > { %v6884_v41 = vsub.f32 %v3423_v0, %v3487_v37 }
 0x878   : > { %v3519_v62 = vmul.f32 %v6884_v41, %v6884_v41 }
 0x87a   : > { %v3545_v16 = vsel %vm7648_vm1, %v3519_v62, 0.0  ;;  %vm7657_vm1 = vmmov %vm7635_vm0 }
 0x87b   : > { %3546 = vadd.xlane.f32.xlu0 %v3545_v16  ;;  %3468 = vadd.xlane.f32.xlu1 %v3467_v46  ;;  %v3454_v0 = vpop.xlane.xlu0 %3453 }
 0x87c   : > { %v3488_v8 = vmul.f32 %v3454_v0, %v7638_v25 }
 0x87e   : > { %v6902_v19 = vsub.f32 %v3424_v6, %v3488_v8  ;;  %v3327_v6 = vadd.f32 %v6709_v44, %v3310_v23  ;;  %v3827_v44 = vld [vmem:[%s7221_s10 + $0x38] sm:$0xff] }
 0x87f   : > { %3884 = vmatpush.msrb.mxu0 %v3827_v44  ;;  %4523 = vmatpush.msra.mxu3 %v3827_v44 }
 0x880   : > { %v3520_v14 = vmul.f32 %v6902_v19, %v6902_v19  ;;  %v6921_v28 = vadd.f32 %v3400_v33, %v3327_v6 }
 0x881   : > { %3885 = vmatpush.msrb.mxu0 %v3826_v54  ;;  %4524 = vmatpush.msra.mxu3 %v3826_v54 }
 0x882   : > { %v3548_v42 = vsel %vm7651_vm6, %v3520_v14, 0.0  ;;  %v3433_v11 = vmax.f32 %v6921_v28, 0.0  ;;  %v3432_v14 = vmax.f32 %v6793_v59, 0.0 }
 0x883   : > { %3471 = vadd.xlane.f32.xlu0 %v3470_v5  ;;  %3549 = vadd.xlane.f32.xlu2 %v3548_v42  ;;  %v6971_v5 = vld [vmem:[%s7220_s9 + $0x2] ss:$0 sm:$0xff] }
 0x884   : > { %v3479_v29 = vsel %vm7652_vm14, %v3433_v11, 0.0  ;;  %3886 = vmatpush.msrb.mxu0 %v3825_v3  ;;  %4525 = vmatpush.msra.mxu3 %v3825_v3  ;;  %vm7658_vm14 = vmmov %vm7635_vm0 }
 0x886   : > { %3887 = vmatpush.msrb.mxu0 %v3824_v21  ;;  %4526 = vmatpush.msra.mxu3 %v3824_v21 }
 0x888   : > { %3888 = vmatpush.msrb.mxu0 %v3823_v10  ;;  %4527 = vmatpush.msra.mxu3 %v3823_v10 }
 0x88a   : > { %3889 = vmatpush.msrb.mxu0 %v3822_v57  ;;  %4528 = vmatpush.msra.mxu3 %v3822_v57 }
 0x88b   : > { %3474 = vadd.xlane.f32.xlu2 %v3473_v40  ;;  %v3476_v40 = vsel %vm7655_vm13, %v3432_v14, 0.0 }
 0x88c   : > { %3890 = vmatpush.msrb.mxu0 %v3821_v53  ;;  %4529 = vmatpush.msra.mxu3 %v3821_v53 }
 0x88e   : > { %3891 = vmatpush.msrb.mxu0 %v3820_v12  ;;  %4530 = vmatpush.msra.mxu3 %v3820_v12 }
 0x893   : > { %3480 = vadd.xlane.f32.xlu2 %v3479_v29 }
 0x8c6   : > { %v3532_v39 = vpop.xlane.xlu2 %3531 }
 0x8c7   : > { %v3578_v30 = vmul.f32 %v3532_v39, %v7638_v25 }
 0x8c9   : > { %v3594_v1 = vadd.f32 1e-05, %v3578_v30 }
 0x8cb   : > { %4616 = vrsqrt.f32 %v3594_v1  ;;  %vm3616_vm12 = vweird.f32 %v3594_v1 }
 0x8ce   : > { %v3457_v49 = vpop.xlane.xlu2 %3456  ;;  %v3535_v22 = vpop.xlane.xlu1 %3534 }
 0x8cf   : > { %v3489_v63 = vmul.f32 %v3457_v49, %v7638_v25  ;;  %v3579_v37 = vmul.f32 %v3535_v22, %v7638_v25 }
 0x8d1   : > { %v4617_v27 = vpop.eup %4616  ;;  %v6956_v18 = vsub.f32 %v3425_v24, %v3489_v63  ;;  %v3595_v13 = vadd.f32 1e-05, %v3579_v37 }
 0x8d2   : > { %v3611_v62 = vmul.f32 %v4617_v27, %v3594_v1  ;;  %vm3617_vm9 = vweird.f32 %v4617_v27 }
 0x8d3   : > { %4618 = vrsqrt.f32 %v3595_v13  ;;  %v3521_v34 = vmul.f32 %v6956_v18, %v6956_v18  ;;  %vm3618_vm3 = vmor %vm3616_vm12, %vm3617_vm9  ;;  %vm3626_vm5 = vweird.f32 %v3595_v13 }
 0x8d4   : > { %v3612_v16 = vmul.f32 %v4617_v27, %v3611_v62 }
 0x8d5   : > { %v3551_v46 = vsel %vm7653_vm4, %v3521_v34, 0.0 }
 0x8d6   : > { %v3613_v9 = vmul.f32 0.5, %v3612_v16  ;;  %v3460_v0 = vpop.xlane.xlu1 %3459  ;;  %3552 = vadd.xlane.f32.xlu1 %v3551_v46  ;;  %v3538_v8 = vpop.xlane.xlu0 %3537 }
 0x8d7   : > { %v3490_v26 = vmul.f32 %v3460_v0, %v7638_v25  ;;  %v3580_v48 = vmul.f32 %v3538_v8, %v7638_v25 }
 0x8d8   : > { %v3614_v47 = vsub.f32 1.5, %v3613_v9 }
 0x8d9   : > { %v4619_v24 = vpop.eup %4618  ;;  %v6965_v20 = vsub.f32 %v3426_v61, %v3490_v26  ;;  %v3596_v45 = vadd.f32 1e-05, %v3580_v48  ;;  %v6978_v61 = vld [vmem:[%s7220_s9 + $0x3] ss:$0 sm:$0xff] }
 0x8da   : > { %v3615_v52 = vmul.f32 %v4617_v27, %v3614_v47  ;;  %v3621_v23 = vmul.f32 %v4619_v24, %v3595_v13  ;;  %vm3627_vm2 = vweird.f32 %v4619_v24 }
 0x8db   : > { %4620 = vrsqrt.f32 %v3596_v45  ;;  %v3522_v42 = vmul.f32 %v6965_v20, %v6965_v20  ;;  %vm3628_vm10 = vmor %vm3626_vm5, %vm3627_vm2  ;;  %vm3636_vm11 = vweird.f32 %v3596_v45 }
 0x8dc   : > { %v3619_v38 = vsel %vm3618_vm3, %v4617_v27, %v3615_v52  ;;  %v3622_v17 = vmul.f32 %v4619_v24, %v3621_v23  ;;  %vm7659_vm3 = vmmov %vm7635_vm0 }
 0x8dd   : > { %v3770_v6 = vmul.f32 %v3619_v38, %v6798_v32  ;;  %v3554_v33 = vsel %vm7654_vm7, %v3522_v42, 0.0  ;;  %vm7660_vm7 = vmmov %vm7635_vm0 }
 0x8de   : > { %v3623_v29 = vmul.f32 0.5, %v3622_v17  ;;  %v3541_v44 = vpop.xlane.xlu2 %3540  ;;  %3555 = vadd.xlane.f32.xlu0 %v3554_v33  ;;  %3477 = vadd.xlane.f32.xlu1 %v3476_v40  ;;  %v3463_v54 = vpop.xlane.xlu0 %3462 }
 0x8df   : > { %v3787_v3 = vmul.f32 %v6971_v5, %v3770_v6  ;;  %v3581_v21 = vmul.f32 %v3541_v44, %v7638_v25  ;;  %v3491_v10 = vmul.f32 %v3463_v54, %v7638_v25 }
 0x8e0   : > { %v3624_v57 = vsub.f32 1.5, %v3623_v29 }
 0x8e1   : > { %v4621_v32 = vpop.eup %4620  ;;  %v3804_v53 = vadd.f32 %v6978_v61, %v3787_v3  ;;  %v3597_v12 = vadd.f32 1e-05, %v3581_v21  ;;  %v6991_v39 = vsub.f32 %v3427_v55, %v3491_v10 }
 0x8e2   : > { %v3625_v30 = vmul.f32 %v4619_v24, %v3624_v57  ;;  %v3631_v1 = vmul.f32 %v4621_v32, %v3596_v45  ;;  %vm3637_vm8 = vweird.f32 %v4621_v32 }
 0x8e3   : > { %4622 = vrsqrt.f32 %v3597_v12  ;;  %4485 = vmatmul.msk.f32.vlgmr.msrb.gmra.mxu0 %vm7656_vm15, %v3804_v53  ;;  %v3523_v49 = vmul.f32 %v6991_v39, %v6991_v39  ;;  %vm3638_vm6 = vmor %vm3636_vm11, %vm3637_vm8  ;;  %vm3646_vm9 = vweird.f32 %v3597_v12 }
 0x8e4   : > { %v3629_v22 = vsel %vm3628_vm10, %v4619_v24, %v3625_v30  ;;  %v3632_v63 = vmul.f32 %v4621_v32, %v3631_v1  ;;  %vm7661_vm10 = vmmov %vm7635_vm0 }
 0x8e5   : > { %v3771_v37 = vmul.f32 %v3629_v22, %v6811_v15  ;;  %v3557_v27 = vsel %vm7657_vm1, %v3523_v49, 0.0  ;;  %vm7662_vm15 = vmmov %vm7635_vm0 }
 0x8e6   : > { %v3633_v62 = vmul.f32 0.5, %v3632_v63  ;;  %v3466_v58 = vpop.xlane.xlu2 %3465  ;;  %v3544_v55 = vpop.xlane.xlu1 %3543  ;;  %3558 = vadd.xlane.f32.xlu0 %v3557_v27 }
 0x8e7   : > { %v3492_v13 = vmul.f32 %v3466_v58, %v7638_v25  ;;  %v3582_v34 = vmul.f32 %v3544_v55, %v7638_v25  ;;  %v3788_v16 = vmul.f32 %v6971_v5, %v3771_v37 }
 0x8e8   : > { %v3634_v46 = vsub.f32 1.5, %v3633_v62 }
 0x8e9   : > { %v4623_v9 = vpop.eup %4622  ;;  %v7003_v0 = vsub.f32 %v3428_v7, %v3492_v13  ;;  %v3598_v15 = vadd.f32 1e-05, %v3582_v34  ;;  %v3805_v8 = vadd.f32 %v6978_v61, %v3788_v16 }
 0x8ea   : > { %v3635_v26 = vmul.f32 %v4621_v32, %v3634_v46  ;;  %v3641_v48 = vmul.f32 %v4623_v9, %v3597_v12  ;;  %vm3647_vm4 = vweird.f32 %v4623_v9 }
 0x8eb   : > { %4624 = vrsqrt.f32 %v3598_v15  ;;  %4486 = vmatmul.msk.f32.gmra.mxu0 %vm7635_vm0, %v3805_v8  ;;  %v3524_v47 = vmul.f32 %v7003_v0, %v7003_v0  ;;  %vm3648_vm12 = vmor %vm3646_vm9, %vm3647_vm4  ;;  %vm3656_vm2 = vweird.f32 %v3598_v15 }
 0x8ec   : > { %v3639_v24 = vsel %vm3638_vm6, %v4621_v32, %v3635_v26  ;;  %v3642_v52 = vmul.f32 %v4623_v9, %v3641_v48  ;;  %vm7663_vm6 = vmmov %vm7635_vm0 }
 0x8ed   : > { %v3772_v23 = vmul.f32 %v3639_v24, %v6827_v56  ;;  %v3560_v43 = vsel %vm7658_vm14, %v3524_v47, 0.0 }
 0x8ee   : > { %v3643_v7 = vmul.f32 0.5, %v3642_v52  ;;  %3561 = vadd.xlane.f32.xlu1 %v3560_v43  ;;  %v3469_v42 = vpop.xlane.xlu1 %3468  ;;  %v3547_v38 = vpop.xlane.xlu0 %3546 }
 0x8ef   : > { %v3493_v45 = vmul.f32 %v3469_v42, %v7638_v25  ;;  %v3583_v17 = vmul.f32 %v3547_v38, %v7638_v25  ;;  %v3789_v6 = vmul.f32 %v6971_v5, %v3772_v23 }
 0x8f0   : > { %v3644_v33 = vsub.f32 1.5, %v3643_v7 }
 0x8f1   : > { %v4625_v40 = vpop.eup %4624  ;;  %v7016_v29 = vsub.f32 %v3429_v36, %v3493_v45  ;;  %v3599_v56 = vadd.f32 1e-05, %v3583_v17  ;;  %v3806_v44 = vadd.f32 %v6978_v61, %v3789_v6 }
 0x8f2   : > { %v3645_v54 = vmul.f32 %v4623_v9, %v3644_v33  ;;  %v3651_v3 = vmul.f32 %v4625_v40, %v3598_v15  ;;  %vm3657_vm13 = vweird.f32 %v4625_v40 }
 0x8f3   : > { %4626 = vrsqrt.f32 %v3599_v56  ;;  %4487 = vmatmul.msk.f32.gmra.mxu0 %vm7659_vm3, %v3806_v44  ;;  %v3525_v21 = vmul.f32 %v7016_v29, %v7016_v29  ;;  %vm3658_vm5 = vmor %vm3656_vm2, %vm3657_vm13  ;;  %vm3666_vm8 = vweird.f32 %v3599_v56 }
 0x8f4   : > { %v3649_v10 = vsel %vm3648_vm12, %v4623_v9, %v3645_v54  ;;  %v3652_v57 = vmul.f32 %v4625_v40, %v3651_v3  ;;  %vm7664_vm12 = vmmov %vm7635_vm0  ;;  %v3976_v3 = vld [vmem:[%s7224_s13 + $0x18] sm:$0xff] }
 0x8f5   : > { %v3773_v32 = vmul.f32 %v3649_v10, %v6844_v50  ;;  %v3563_v51 = vsel %vm7660_vm7, %v3525_v21, 0.0  ;;  %vm7665_vm3 = vmmov %vm7635_vm0  ;;  %4038 = vmatpush.msrb.mxu1 %v3976_v3  ;;  %v3975_v21 = vld [vmem:[%s7224_s13 + $0x10] sm:$0xff]  ;;  %v3973_v10 = vld [vmem:[%s7224_s13] sm:$0xff] }
 0x8f6   : > { %v3653_v36 = vmul.f32 0.5, %v3652_v57  ;;  %3564 = vadd.xlane.f32.xlu2 %v3563_v51  ;;  %v3550_v53 = vpop.xlane.xlu2 %3549  ;;  %v3472_v30 = vpop.xlane.xlu0 %3471  ;;  %vm7666_vm7 = vmmov %vm7635_vm0 }
 0x8f7   : > { %v3584_v12 = vmul.f32 %v3550_v53, %v7638_v25  ;;  %v3494_v1 = vmul.f32 %v3472_v30, %v7638_v25  ;;  %v3790_v49 = vmul.f32 %v6971_v5, %v3773_v32  ;;  %4039 = vmatpush.msrb.mxu1 %v3975_v21  ;;  %vm7667_vm13 = vmmov %vm7635_vm0 }
 0x8f8   : > { %v3654_v22 = vsub.f32 1.5, %v3653_v36 }
 0x8f9   : > { %v4627_v63 = vpop.eup %4626  ;;  %v3600_v37 = vadd.f32 1e-05, %v3584_v12  ;;  %v7029_v27 = vsub.f32 %v3430_v60, %v3494_v1  ;;  %v3807_v50 = vadd.f32 %v6978_v61, %v3790_v49 }
 0x8fa   : > { %v3655_v62 = vmul.f32 %v4625_v40, %v3654_v22  ;;  %v3661_v58 = vmul.f32 %v4627_v63, %v3599_v56  ;;  %vm3667_vm1 = vweird.f32 %v4627_v63 }
 0x8fb   : > { %4628 = vrsqrt.f32 %v3600_v37  ;;  %4488 = vmatmul.msk.f32.gmra.mxu0 %vm7661_vm10, %v3807_v50  ;;  %v3526_v55 = vmul.f32 %v7029_v27, %v7029_v27  ;;  %vm3668_vm11 = vmor %vm3666_vm8, %vm3667_vm1  ;;  %vm3676_vm4 = vweird.f32 %v3600_v37 }
 0x8fc   : > { %v3659_v13 = vsel %vm3658_vm5, %v4625_v40, %v3655_v62  ;;  %v3662_v34 = vmul.f32 %v4627_v63, %v3661_v58 }
 0x8fd   : > { %v3774_v16 = vmul.f32 %v3659_v13, %v6864_v35  ;;  %v3566_v31 = vsel %vm7662_vm15, %v3526_v55, 0.0  ;;  %vm3977_vm15 = vcmask 261120  }
 0x8fe   : > { %v3663_v60 = vmul.f32 0.5, %v3662_v34  ;;  %v3475_v46 = vpop.xlane.xlu2 %3474  ;;  %3567 = vadd.xlane.f32.xlu0 %v3566_v31 }
 0x8ff   : > { %v3495_v9 = vmul.f32 %v3475_v46, %v7638_v25  ;;  %v3791_v15 = vmul.f32 %v6971_v5, %v3774_v16 }
 0x900   : > { %v3664_v8 = vsub.f32 1.5, %v3663_v60  ;;  %v3941_v60 = vld [vmem:[%s7222_s11] sm:$0xff] }
 0x901   : > { %v4629_v26 = vpop.eup %4628  ;;  %v7041_v48 = vsub.f32 %v3431_v2, %v3495_v9  ;;  %v3808_v47 = vadd.f32 %v6978_v61, %v3791_v15 }
 0x902   : > { %v3665_v24 = vmul.f32 %v4627_v63, %v3664_v8  ;;  %v3671_v35 = vmul.f32 %v4629_v26, %v3600_v37  ;;  %vm3677_vm14 = vweird.f32 %v4629_v26 }
 0x903   : > { %4489 = vmatmul.msk.f32.gmra.mxu0 %vm7663_vm6, %v3808_v47  ;;  %v3527_v52 = vmul.f32 %v7041_v48, %v7041_v48  ;;  %vm3678_vm9 = vmor %vm3676_vm4, %vm3677_vm14 }
 0x904   : > { %v3669_v23 = vsel %vm3668_vm11, %v4627_v63, %v3665_v24  ;;  %v3672_v43 = vmul.f32 %v4629_v26, %v3671_v35  ;;  %vm7668_vm6 = vmmov %vm7635_vm0 }
 0x905   : > { %v3775_v7 = vmul.f32 %v3669_v23, %v6884_v41  ;;  %v3569_v42 = vsel %vm7635_vm0, %v3527_v52, 0.0 }
 0x906   : > { %v3673_v4 = vmul.f32 0.5, %v3672_v43  ;;  %3570 = vadd.xlane.f32.xlu1 %v3569_v42  ;;  %v3481_v2 = vpop.xlane.xlu2 %3480 }
 0x907   : > { %v3497_v38 = vmul.f32 %v3481_v2, %v7638_v25  ;;  %v3792_v45 = vmul.f32 %v6971_v5, %v3775_v7  ;;  %v3942_v2 = vld [vmem:[%s7222_s11 + $0x8] sm:$0xff] }
 0x908   : > { %v3674_v17 = vsub.f32 1.5, %v3673_v4 }
 0x909   : > { %v7053_v6 = vsub.f32 %v3433_v11, %v3497_v38  ;;  %v3809_v33 = vadd.f32 %v6978_v61, %v3792_v45 }
 0x90a   : > { %v3675_v40 = vmul.f32 %v4629_v26, %v3674_v17 }
 0x90b   : > { %4490 = vmatmul.msk.f32.gmra.mxu0 %vm7664_vm12, %v3809_v33  ;;  %v3529_v41 = vmul.f32 %v7053_v6, %v7053_v6 }
 0x90c   : > { %v3679_v56 = vsel %vm3678_vm9, %v4629_v26, %v3675_v40  ;;  %vm7669_vm9 = vmmov %vm7665_vm3 }
 0x90d   : > { %v3776_v44 = vmul.f32 %v3679_v56, %v6902_v19  ;;  %v3575_v54 = vsel %vm7665_vm3, %v3529_v41, 0.0  ;;  %v3974_v19 = vld [vmem:[%s7224_s13 + $0x8] sm:$0xff] }
 0x90e   : > { %3576 = vadd.xlane.f32.xlu0 %v3575_v54  ;;  %4040 = vmatpush.msrb.mxu1 %v3974_v19 }
 0x90f   : > { %v3793_v28 = vmul.f32 %v6971_v5, %v3776_v44 }
 0x910   : > { %4041 = vmatpush.msrb.mxu1 %v3973_v10 }
 0x911   : > { %v3810_v11 = vadd.f32 %v6978_v61, %v3793_v28 }
 0x913   : > { %4491 = vmatmul.msk.f32.gmra.mxu0 %vm7666_vm7, %v3810_v11 }
 0x949   : > { %v3553_v57 = vpop.xlane.xlu1 %3552 }
 0x94a   : > { %v3585_v32 = vmul.f32 %v3553_v57, %v7638_v25 }
 0x94c   : > { %v3601_v51 = vadd.f32 1e-05, %v3585_v32 }
 0x94e   : > { %4630 = vrsqrt.f32 %v3601_v51  ;;  %vm3686_vm5 = vweird.f32 %v3601_v51 }
 0x951   : > { %v3478_v36 = vpop.xlane.xlu1 %3477  ;;  %v3556_v53 = vpop.xlane.xlu0 %3555 }
 0x952   : > { %v3496_v30 = vmul.f32 %v3478_v36, %v7638_v25  ;;  %v3586_v12 = vmul.f32 %v3556_v53, %v7638_v25 }
 0x954   : > { %v4631_v1 = vpop.eup %4630  ;;  %v7081_v49 = vsub.f32 %v3432_v14, %v3496_v30  ;;  %v3602_v22 = vadd.f32 1e-05, %v3586_v12 }
 0x955   : > { %v3681_v63 = vmul.f32 %v4631_v1, %v3601_v51  ;;  %vm3687_vm2 = vweird.f32 %v4631_v1 }
 0x956   : > { %4632 = vrsqrt.f32 %v3602_v22  ;;  %v3528_v37 = vmul.f32 %v7081_v49, %v7081_v49  ;;  %vm3688_vm10 = vmor %vm3686_vm5, %vm3687_vm2  ;;  %vm3696_vm8 = vweird.f32 %v3602_v22 }
 0x957   : > { %v3682_v50 = vmul.f32 %v4631_v1, %v3681_v63 }
 0x958   : > { %v3572_v62 = vsel %vm7667_vm13, %v3528_v37, 0.0  ;;  %vm7670_vm13 = vmmov %vm7668_vm6 }
 0x959   : > { %v3683_v58 = vmul.f32 0.5, %v3682_v50  ;;  %3573 = vadd.xlane.f32.xlu2 %v3572_v62  ;;  %v3559_v55 = vpop.xlane.xlu0 %3558 }
 0x95a   : > { %v3587_v13 = vmul.f32 %v3559_v55, %v7638_v25 }
 0x95b   : > { %v3684_v34 = vsub.f32 1.5, %v3683_v58 }
 0x95c   : > { %v4633_v16 = vpop.eup %4632  ;;  %v3603_v59 = vadd.f32 1e-05, %v3587_v13 }
 0x95d   : > { %v3685_v14 = vmul.f32 %v4631_v1, %v3684_v34  ;;  %v3691_v31 = vmul.f32 %v4633_v16, %v3602_v22  ;;  %vm3697_vm1 = vweird.f32 %v4633_v16 }
 0x95e   : > { %4634 = vrsqrt.f32 %v3603_v59  ;;  %vm3698_vm11 = vmor %vm3696_vm8, %vm3697_vm1  ;;  %vm3706_vm14 = vweird.f32 %v3603_v59 }
 0x95f   : > { %v3689_v46 = vsel %vm3688_vm10, %v4631_v1, %v3685_v14  ;;  %v3692_v9 = vmul.f32 %v4633_v16, %v3691_v31  ;;  %vm7671_vm1 = vmmov %vm7668_vm6 }
 0x960   : > { %v3777_v15 = vmul.f32 %v3689_v46, %v6956_v18  ;;  %v3893_v8 = vpop.f32.mrf.mxu0 }
 0x961   : > { %v3693_v26 = vmul.f32 0.5, %v3692_v9  ;;  %v3957_v47 = vmul.f32 %v3941_v60, %v3893_v8  ;;  %v3562_v24 = vpop.xlane.xlu1 %3561 }
 0x962   : > { %v3588_v35 = vmul.f32 %v3562_v24, %v7638_v25  ;;  %v3794_v52 = vmul.f32 %v6971_v5, %v3777_v15 }
 0x963   : > { %v3694_v23 = vsub.f32 1.5, %v3693_v26  ;;  %4501 = vmatmul.msk.f32.vlgmr.msrb.gmra.mxu1 %vm3977_vm15, %v3957_v47 }
 0x964   : > { %v4635_v43 = vpop.eup %4634  ;;  %v3604_v7 = vadd.f32 1e-05, %v3588_v35  ;;  %v3811_v42 = vadd.f32 %v6978_v61, %v3794_v52 }
 0x965   : > { %v3695_v4 = vmul.f32 %v4633_v16, %v3694_v23  ;;  %v3701_v18 = vmul.f32 %v4635_v43, %v3603_v59  ;;  %vm3707_vm0 = vweird.f32 %v4635_v43 }
 0x966   : > { %4636 = vrsqrt.f32 %v3604_v7  ;;  %4492 = vmatmul.msk.f32.gmra.mxu0 %vm7668_vm6, %v3811_v42  ;;  %vm3708_vm4 = vmor %vm3706_vm14, %vm3707_vm0  ;;  %vm3716_vm3 = vweird.f32 %v3604_v7 }
 0x967   : > { %v3699_v38 = vsel %vm3698_vm11, %v4633_v16, %v3695_v4  ;;  %v3702_v45 = vmul.f32 %v4635_v43, %v3701_v18  ;;  %vm7672_vm0 = vmmov %vm7671_vm1 }
 0x968   : > { %v3778_v17 = vmul.f32 %v3699_v38, %v6965_v20  ;;  %v3896_v33 = vpop.f32.mrf.mxu0  ;;  %v3943_v20 = vld [vmem:[%s7222_s11 + $0x10] sm:$0xff] }
 0x969   : > { %v3703_v40 = vmul.f32 0.5, %v3702_v45  ;;  %v3958_v41 = vmul.f32 %v3942_v2, %v3896_v33  ;;  %v3565_v56 = vpop.xlane.xlu2 %3564 }
 0x96a   : > { %v3589_v44 = vmul.f32 %v3565_v56, %v7638_v25  ;;  %v3795_v54 = vmul.f32 %v6971_v5, %v3778_v17 }
 0x96b   : > { %v3704_v28 = vsub.f32 1.5, %v3703_v40  ;;  %4502 = vmatmul.msk.f32.gmra.mxu1 %vm3977_vm15, %v3958_v41 }
 0x96c   : > { %v4637_v11 = vpop.eup %4636  ;;  %v3605_v3 = vadd.f32 1e-05, %v3589_v44  ;;  %v3812_v21 = vadd.f32 %v6978_v61, %v3795_v54 }
 0x96d   : > { %v3705_v19 = vmul.f32 %v4635_v43, %v3704_v28  ;;  %v3711_v10 = vmul.f32 %v4637_v11, %v3604_v7  ;;  %vm3717_vm12 = vweird.f32 %v4637_v11 }
 0x96e   : > { %4638 = vrsqrt.f32 %v3605_v3  ;;  %4493 = vmatmul.msk.f32.gmra.mxu0 %vm7669_vm9, %v3812_v21  ;;  %vm3718_vm7 = vmor %vm3716_vm3, %vm3717_vm12  ;;  %vm3726_vm5 = vweird.f32 %v3605_v3 }
 0x96f   : > { %v3709_v57 = vsel %vm3708_vm4, %v4635_v43, %v3705_v19  ;;  %v3712_v32 = vmul.f32 %v4637_v11, %v3711_v10  ;;  %vm7673_vm12 = vmmov %vm7672_vm0 }
 0x970   : > { %v3779_v51 = vmul.f32 %v3709_v57, %v6991_v39  ;;  %v3899_v36 = vpop.f32.mrf.mxu0  ;;  %v3944_v39 = vld [vmem:[%s7222_s11 + $0x18] sm:$0xff] }
 0x971   : > { %v3713_v53 = vmul.f32 0.5, %v3712_v32  ;;  %v3959_v30 = vmul.f32 %v3943_v20, %v3899_v36  ;;  %v3568_v12 = vpop.xlane.xlu0 %3567 }
 0x972   : > { %v3590_v1 = vmul.f32 %v3568_v12, %v7638_v25  ;;  %v3796_v22 = vmul.f32 %v6971_v5, %v3779_v51 }
 0x973   : > { %v3714_v63 = vsub.f32 1.5, %v3713_v53  ;;  %4503 = vmatmul.msk.f32.gmra.mxu1 %vm3977_vm15, %v3959_v30 }
 0x974   : > { %v4639_v37 = vpop.eup %4638  ;;  %v3606_v50 = vadd.f32 1e-05, %v3590_v1  ;;  %v3813_v62 = vadd.f32 %v6978_v61, %v3796_v22 }
 0x975   : > { %v3715_v58 = vmul.f32 %v4637_v11, %v3714_v63  ;;  %v3721_v55 = vmul.f32 %v4639_v37, %v3605_v3  ;;  %vm3727_vm2 = vweird.f32 %v4639_v37 }
 0x976   : > { %4640 = vrsqrt.f32 %v3606_v50  ;;  %4494 = vmatmul.msk.f32.gmra.mxu0 %vm7670_vm13, %v3813_v62  ;;  %vm3728_vm10 = vmor %vm3726_vm5, %vm3727_vm2  ;;  %vm3736_vm11 = vweird.f32 %v3606_v50 }
 0x977   : > { %v3719_v13 = vsel %vm3718_vm7, %v4637_v11, %v3715_v58  ;;  %v3722_v34 = vmul.f32 %v4639_v37, %v3721_v55  ;;  %vm7674_vm2 = vmmov %vm7672_vm0 }
 0x978   : > { %v3780_v16 = vmul.f32 %v3719_v13, %v7003_v0  ;;  %v3902_v59 = vpop.f32.mrf.mxu0  ;;  %v3945_v0 = vld [vmem:[%s7222_s11 + $0x20] sm:$0xff]  ;;  %vm7675_vm5 = vmmov %vm7672_vm0 }
 0x979   : > { %v3723_v14 = vmul.f32 0.5, %v3722_v34  ;;  %v3960_v31 = vmul.f32 %v3944_v39, %v3902_v59  ;;  %v3571_v60 = vpop.xlane.xlu1 %3570 }
 0x97a   : > { %v3591_v46 = vmul.f32 %v3571_v60, %v7638_v25  ;;  %v3797_v9 = vmul.f32 %v6971_v5, %v3780_v16 }
 0x97b   : > { %v3724_v15 = vsub.f32 1.5, %v3723_v14  ;;  %4504 = vmatmul.msk.f32.gmra.mxu1 %vm3977_vm15, %v3960_v31 }
 0x97c   : > { %v4641_v8 = vpop.eup %4640  ;;  %v3607_v26 = vadd.f32 1e-05, %v3591_v46  ;;  %v3814_v47 = vadd.f32 %v6978_v61, %v3797_v9 }
 0x97d   : > { %v3725_v24 = vmul.f32 %v4639_v37, %v3724_v15  ;;  %v3731_v35 = vmul.f32 %v4641_v8, %v3606_v50  ;;  %vm3737_vm8 = vweird.f32 %v4641_v8 }
 0x97e   : > { %4642 = vrsqrt.f32 %v3607_v26  ;;  %4495 = vmatmul.msk.f32.gmra.mxu0 %vm7671_vm1, %v3814_v47  ;;  %vm3738_vm6 = vmor %vm3736_vm11, %vm3737_vm8  ;;  %vm3746_vm4 = vweird.f32 %v3607_v26 }
 0x97f   : > { %v3729_v52 = vsel %vm3728_vm10, %v4639_v37, %v3725_v24  ;;  %v3732_v23 = vmul.f32 %v4641_v8, %v3731_v35  ;;  %vm7676_vm11 = vmmov %vm7672_vm0  ;;  %v3949_v35 = vld [vmem:[%s7222_s11 + $0x40] sm:$0xff] }
 0x980   : > { %v3781_v43 = vmul.f32 %v3729_v52, %v7016_v29  ;;  %v3905_v7 = vpop.f32.mrf.mxu0  ;;  %v3946_v29 = vld [vmem:[%s7222_s11 + $0x28] sm:$0xff] }
 0x981   : > { %v3733_v42 = vmul.f32 0.5, %v3732_v23  ;;  %v3961_v4 = vmul.f32 %v3945_v0, %v3905_v7  ;;  %v3577_v18 = vpop.xlane.xlu0 %3576 }
 0x982   : > { %v3593_v2 = vmul.f32 %v3577_v18, %v7638_v25  ;;  %v3798_v38 = vmul.f32 %v6971_v5, %v3781_v43 }
 0x983   : > { %v3734_v45 = vsub.f32 1.5, %v3733_v42  ;;  %4505 = vmatmul.msk.f32.gmra.mxu1 %vm3977_vm15, %v3961_v4  ;;  %v3952_v42 = vld [vmem:[%s7222_s11 + $0x58] sm:$0xff] }
 0x984   : > { %v4643_v17 = vpop.eup %4642  ;;  %v3609_v33 = vadd.f32 1e-05, %v3593_v2  ;;  %v3815_v40 = vadd.f32 %v6978_v61, %v3798_v38  ;;  %v3953_v2 = vld [vmem:[%s7222_s11 + $0x60] sm:$0xff] }
 0x985   : > { %v3735_v41 = vmul.f32 %v4641_v8, %v3734_v45  ;;  %v3741_v56 = vmul.f32 %v4643_v17, %v3607_v26  ;;  %vm3747_vm14 = vweird.f32 %v4643_v17 }
 0x986   : > { %4644 = vrsqrt.f32 %v3609_v33  ;;  %4496 = vmatmul.msk.f32.gmra.mxu0 %vm7672_vm0, %v3815_v40  ;;  %vm3748_vm9 = vmor %vm3746_vm4, %vm3747_vm14  ;;  %vm3766_vm7 = vweird.f32 %v3609_v33 }
 0x987   : > { %v3739_v44 = vsel %vm3738_vm6, %v4641_v8, %v3735_v41  ;;  %v3742_v54 = vmul.f32 %v4643_v17, %v3741_v56  ;;  %v3955_v56 = vld [vmem:[%s7222_s11 + $0x70] sm:$0xff] }
 0x988   : > { %v3782_v28 = vmul.f32 %v3739_v44, %v7029_v27  ;;  %v3908_v11 = vpop.f32.mrf.mxu0  ;;  %v3947_v27 = vld [vmem:[%s7222_s11 + $0x30] sm:$0xff] }
 0x989   : > { %v3743_v3 = vmul.f32 0.5, %v3742_v54  ;;  %v3962_v21 = vmul.f32 %v3946_v29, %v3908_v11  ;;  %v3956_v11 = vld [vmem:[%s7222_s11 + $0x78] sm:$0xff] }
 0x98a   : > { %v3799_v19 = vmul.f32 %v6971_v5, %v3782_v28 }
 0x98b   : > { %v3744_v10 = vsub.f32 1.5, %v3743_v3  ;;  %4506 = vmatmul.msk.f32.gmra.mxu1 %vm3977_vm15, %v3962_v21 }
 0x98c   : > { %v4645_v20 = vpop.eup %4644  ;;  %v3816_v57 = vadd.f32 %v6978_v61, %v3799_v19 }
 0x98d   : > { %v3745_v32 = vmul.f32 %v4643_v17, %v3744_v10  ;;  %v3761_v51 = vmul.f32 %v4645_v20, %v3609_v33  ;;  %vm3767_vm3 = vweird.f32 %v4645_v20 }
 0x98e   : > { %4497 = vmatmul.msk.f32.gmra.mxu0 %vm7673_vm12, %v3816_v57  ;;  %vm3768_vm13 = vmor %vm3766_vm7, %vm3767_vm3 }
 0x98f   : > { %v3749_v36 = vsel %vm3748_vm9, %v4643_v17, %v3745_v32  ;;  %v3762_v53 = vmul.f32 %v4645_v20, %v3761_v51  ;;  %v3954_v17 = vld [vmem:[%s7222_s11 + $0x68] sm:$0xff] }
 0x990   : > { %v3783_v30 = vmul.f32 %v3749_v36, %v7041_v48  ;;  %v3911_v12 = vpop.f32.mrf.mxu0 }
 0x991   : > { %v3763_v1 = vmul.f32 0.5, %v3762_v53  ;;  %v3963_v22 = vmul.f32 %v3947_v27, %v3911_v12 }
 0x992   : > { %v3800_v63 = vmul.f32 %v6971_v5, %v3783_v30 }
 0x993   : > { %v3764_v37 = vsub.f32 1.5, %v3763_v1  ;;  %4507 = vmatmul.msk.f32.gmra.mxu1 %vm3977_vm15, %v3963_v22 }
 0x994   : > { %v3817_v50 = vadd.f32 %v6978_v61, %v3800_v63  ;;  %v4091_v63 = vld [vmem:[%s7223_s12] sm:$0xff] }
 0x995   : > { %v3765_v62 = vmul.f32 %v4645_v20, %v3764_v37  ;;  %v4092_v37 = vld [vmem:[%s7223_s12 + $0x8] sm:$0xff] }
 0x996   : > { %4498 = vmatmul.msk.f32.gmra.mxu0 %vm7674_vm2, %v3817_v50  ;;  %v4581_v50 = vld [vmem:[%s7225_s14] ss:$0 sm:$0xff] }
 0x997   : > { %v3769_v58 = vsel %vm3768_vm13, %v4645_v20, %v3765_v62 }
 0x998   : > { %v3785_v55 = vmul.f32 %v3769_v58, %v7053_v6  ;;  %v3948_v6 = vld [vmem:[%s7222_s11 + $0x38] sm:$0xff] }
 0x99a   : > { %v3802_v48 = vmul.f32 %v6971_v5, %v3785_v55 }
 0x99c   : > { %v3819_v39 = vadd.f32 %v6978_v61, %v3802_v48 }
 0x99e   : > { %4500 = vmatmul.msk.f32.vlgmr.msra.gmra.mxu3 %vm7675_vm5, %v3819_v39 }
 0x9cc   : > { %v3574_v13 = vpop.xlane.xlu2 %3573 }
 0x9cd   : > { %v3592_v34 = vmul.f32 %v3574_v13, %v7638_v25 }
 0x9cf   : > { %v3608_v16 = vadd.f32 1e-05, %v3592_v34 }
 0x9d1   : > { %4646 = vrsqrt.f32 %v3608_v16  ;;  %vm3756_vm1 = vweird.f32 %v3608_v16 }
 0x9d7   : > { %v4647_v59 = vpop.eup %4646 }
 0x9d8   : > { %v3751_v14 = vmul.f32 %v4647_v59, %v3608_v16  ;;  %vm3757_vm10 = vweird.f32 %v4647_v59 }
 0x9d9   : > { %vm3758_vm8 = vmor %vm3756_vm1, %vm3757_vm10 }
 0x9da   : > { %v3752_v31 = vmul.f32 %v4647_v59, %v3751_v14 }
 0x9dc   : > { %v3753_v60 = vmul.f32 0.5, %v3752_v31 }
 0x9de   : > { %v3754_v46 = vsub.f32 1.5, %v3753_v60 }
 0x9e0   : > { %v3755_v9 = vmul.f32 %v4647_v59, %v3754_v46  ;;  %v4043_v41 = vpop.f32.mrf.mxu1 }
 0x9e2   : > { %v3759_v15 = vsel %vm3758_vm8, %v4647_v59, %v3755_v9 }
 0x9e3   : > { %v3784_v8 = vmul.f32 %v3759_v15, %v7081_v49  ;;  %v3914_v26 = vpop.f32.mrf.mxu0  ;;  %v3950_v49 = vld [vmem:[%s7222_s11 + $0x48] sm:$0xff] }
 0x9e4   : > { %v3964_v25 = vmul.f32 %v3948_v6, %v3914_v26 }
 0x9e5   : > { %v3801_v47 = vmul.f32 %v6971_v5, %v3784_v8 }
 0x9e6   : > { %4508 = vmatmul.msk.f32.gmra.mxu1 %vm3977_vm15, %v3964_v25 }
 0x9e7   : > { %v3818_v24 = vadd.f32 %v6978_v61, %v3801_v47  ;;  %v3951_v61 = vld [vmem:[%s7222_s11 + $0x50] sm:$0xff] }
 0x9e8   : > { %v4046_v54 = vpop.f32.mrf.mxu1 }
 0x9e9   : > { %4499 = vmatmul.msk.f32.gmra.mxu0 %vm7676_vm11, %v3818_v24 }
 0x9eb   : > { %v3917_v0 = vpop.f32.mrf.mxu0 }
 0x9ec   : > { %v3965_v52 = vmul.f32 %v3949_v35, %v3917_v0 }
 0x9ee   : > { %4509 = vmatmul.msk.f32.gmra.mxu1 %vm3977_vm15, %v3965_v52 }
 0x9f0   : > { %v4049_v21 = vpop.f32.mrf.mxu1 }
 0x9f3   : > { %v3920_v23 = vpop.f32.mrf.mxu0 }
 0x9f4   : > { %v3966_v5 = vmul.f32 %v3950_v49, %v3920_v23 }
 0x9f6   : > { %4510 = vmatmul.msk.f32.gmra.mxu1 %vm3977_vm15, %v3966_v5 }
 0x9f8   : > { %v4052_v19 = vpop.f32.mrf.mxu1 }
 0x9fb   : > { %v3923_v43 = vpop.f32.mrf.mxu0 }
 0x9fc   : > { %v3967_v7 = vmul.f32 %v3951_v61, %v3923_v43 }
 0x9fe   : > { %4511 = vmatmul.msk.f32.gmra.mxu1 %vm3977_vm15, %v3967_v7 }
 0xa00   : > { %v4055_v10 = vpop.f32.mrf.mxu1 }
 0xa03   : > { %v3926_v4 = vpop.f32.mrf.mxu0 }
 0xa04   : > { %v3968_v18 = vmul.f32 %v3952_v42, %v3926_v4 }
 0xa06   : > { %4512 = vmatmul.msk.f32.gmra.mxu1 %vm3977_vm15, %v3968_v18 }
 0xa08   : > { %v4058_v20 = vpop.f32.mrf.mxu1 }
 0xa0b   : > { %v3929_v38 = vpop.f32.mrf.mxu0 }
 0xa0c   : > { %v3969_v45 = vmul.f32 %v3953_v2, %v3929_v38 }
 0xa0e   : > { %4513 = vmatmul.msk.f32.gmra.mxu1 %vm3977_vm15, %v3969_v45 }
 0xa10   : > { %v4061_v57 = vpop.f32.mrf.mxu1 }
 0xa13   : > { %v3932_v33 = vpop.f32.mrf.mxu0 }
 0xa14   : > { %v3970_v40 = vmul.f32 %v3954_v17, %v3932_v33 }
 0xa16   : > { %4514 = vmatmul.msk.f32.gmra.mxu1 %vm3977_vm15, %v3970_v40 }
 0xa21   : > { %v3938_v28 = vpop.f32.mrf.mxu3 }
 0xa22   : > { %v3972_v3 = vmul.f32 %v3956_v11, %v3938_v28 }
 0xa63   : > { %v4064_v32 = vpop.f32.mrf.mxu1 }
 0xa66   : > { %v3935_v29 = vpop.f32.mrf.mxu0 }
 0xa67   : > { %v3971_v44 = vmul.f32 %v3955_v56, %v3935_v29 }
 0xa69   : > { %4515 = vmatmul.msk.f32.gmra.mxu1 %vm3977_vm15, %v3971_v44 }
 0xa6b   : > { %v4067_v51 = vpop.f32.mrf.mxu1 }
 0xa71   : > { %4516 = vmatmul.msk.f32.gmra.mxu1 %vm3977_vm15, %v3972_v3  ;;  %vm7677_vm15 = vcmask 31744  }
 0xa72   : > { %vm7678_vm6 = vmmov %vm7677_vm15 }
 0xa73   : > { %v4070_v27 = vpop.f32.mrf.mxu1 }
 0xa7b   : > { %v4073_v36 = vpop.f32.mrf.mxu1 }
 0xa83   : > { %v4076_v53 = vpop.f32.mrf.mxu1 }
 0xa8b   : > { %v4079_v30 = vpop.f32.mrf.mxu1 }
 0xa93   : > { %v4082_v12 = vpop.f32.mrf.mxu1 }
 0xae6   : > { %v4085_v1 = vpop.f32.mrf.mxu1 }
 0xaee   : > { %v4088_v22 = vpop.f32.mrf.mxu1 }
 0xaef   : > { %4097 = vmatpush.msra.mxu2 %v4088_v22 }
 0xaf1   : > { %4098 = vmatpush.msra.mxu2 %v4085_v1 }
 0xaf3   : > { %4099 = vmatpush.msra.mxu2 %v4082_v12 }
 0xaf5   : > { %4100 = vmatpush.msra.mxu2 %v4079_v30 }
 0xaf7   : > { %4101 = vmatpush.msra.mxu2 %v4076_v53 }
 0xaf9   : > { %4102 = vmatpush.msra.mxu2 %v4073_v36 }
 0xafb   : > { %4103 = vmatpush.msra.mxu2 %v4070_v27 }
 0xafd   : > { %4104 = vmatpush.msra.mxu2 %v4067_v51 }
 0xaff   : > { %4105 = vmatpush.msra.mxu2 %v4064_v32 }
 0xb01   : > { %4106 = vmatpush.msra.mxu2 %v4061_v57 }
 0xb03   : > { %4107 = vmatpush.msra.mxu2 %v4058_v20 }
 0xb05   : > { %4108 = vmatpush.msra.mxu2 %v4055_v10 }
 0xb07   : > { %4109 = vmatpush.msra.mxu2 %v4052_v19 }
 0xb09   : > { %4110 = vmatpush.msra.mxu2 %v4049_v21 }
 0xb0b   : > { %4111 = vmatpush.msra.mxu2 %v4046_v54 }
 0xb0d   : > { %4112 = vmatpush.msra.mxu2 %v4043_v41 }
 0xb0e   : > { %4113 = vmatmul.f32.vlgmr.msra.gmra.mxu2 %v4091_v63 }
 0xb16   : > { %4116 = vmatmul.f32.gmra.mxu2 %v4092_v37 }
 0xb91   : > { %v4114_v62 = vpop.f32.mrf.mxu2 }
 0xb92   : > { %v4115_v58 = vadd.f32 %v4581_v50, %v4114_v62 }
 0xb94   : > { %4120 = vst.msk [vmem:[%s544_s6] sm:$0xff] %vm7677_vm15, %v4115_v58 }
 0xb99   : > { %v4117_v55 = vpop.f32.mrf.mxu2 }
 0xb9a   : > { %v4118_v48 = vadd.f32 %v4581_v50, %v4117_v55 }
 0xb9c   : > { %4121 = vst.msk [vmem:[%s544_s6 + $0x8] sm:$0xff] %vm7678_vm6, %v4118_v48 }
 0xb9d PF: > { %s27_s18 = sadd.s32 1, %s4812_s18  }
 0xb9e   : > { %p24_p7 = scmp.ge.s32.totalorder %s27_s18, 4  }
 0xba0   :  { %26 = sbr.rel (!%p24_p7) target bundleno = 4 (0x4), region = 133 }
 0xba5   :  { %4143 = vsyncpa [#allocation3], 1 }
 0xba6   :  { %4145 = vsyncpa [#allocation3 + $0x1], 1 }
 0xba7   :  { %4146 = vsyncpa [#allocation5], 1 }

</bundles_post_ra>
